<compile_context>
chip_gen: v7x
topology: tpu7x:2x2x1
jax: 0.10.0
libtpu: 0.0.40
codegen_flags: <defaults>
</compile_context>

<pallas_src>
import jax
import jax.numpy as jnp
import numpy as np
from jax.experimental import pallas as pl
from jax.experimental.pallas import tpu as pltpu

_RADIX = 3  # bits decided per mining step (2^k - 1 candidates per step)


def _row_count(mask, ):
    """Per-row count of True over the lane (prior) axis -> (TB, 1) int32."""
    return jnp.sum(mask.astype(jnp.int32), axis=-1, keepdims=True)


def _multibox_kernel(conf_t_ref, loc_t_ref, loc_d_ref, conf_d_ref, acc_ref):
    # Zero this core-partition's accumulator row on its first tile.
    @pl.when(pl.program_id(1) == 0)
    def _init():
        acc_ref[...] = jnp.zeros_like(acc_ref)

    conf_t = conf_t_ref[0]                    # (TB, P) int32, priors on lanes
    TB, P = conf_t.shape
    pos = conf_t > 0                          # (TB, P)
    regard = conf_t == -1
    tgt = jnp.where(regard, 0, conf_t)        # conf_t[regard] = 0

    # ---- localization: smooth L1 over positive priors, (4, TB, P) slabs ----
    diff = loc_d_ref[0] - loc_t_ref[0]        # (4, TB, P)
    ad = jnp.abs(diff)
    sl1 = jnp.where(ad < 1.0, 0.5 * diff * diff, ad - 0.5)
    loss_l_tile = jnp.sum(jnp.where(pos[None], sl1, 0.0))

    # ---- per-prior cross entropy; class axis unrolled over (TB, P) slabs ----
    C = conf_d_ref.shape[1]
    m = conf_d_ref[0, 0]                      # (TB, P)
    for c in range(1, C):
        m = jnp.maximum(m, conf_d_ref[0, c])
    s = jnp.zeros_like(m)
    score_t = jnp.zeros_like(m)
    for c in range(C):
        xc = conf_d_ref[0, c]                 # (TB, P)
        s = s + jnp.exp(xc - m)
        score_t = score_t + jnp.where(tgt == c, xc, 0.0)
    ce = jnp.log(s) + m - score_t             # (TB, P), >= ~0

    # ---- hard negative mining (per image row) ----
    mined = jnp.where(pos | regard, 0.0, ce)
    num_pos = _row_count(pos)                                   # (TB, 1)
    num_neg = jnp.minimum(3 * num_pos, P - 1)                   # (TB, 1)

    # mined >= 0, so its f32 bit pattern is order-isomorphic as an int32.
    bits = jnp.maximum(pltpu.bitcast(mined, jnp.int32), 0)      # guard -0.0

    # Radix select: thr = largest t with count(bits >= t) >= num_neg per row.
    thr = jnp.zeros_like(num_neg)
    b = 30
    while b >= 0:
        w = min(_RADIX, b + 1)
        lo = b - w + 1
        j_sel = jnp.zeros_like(thr)
        for j in range(1, 1 << w):            # counts monotone in j
            cand = thr | jnp.int32(j << lo)
            cnt = _row_count(bits >= cand)
            j_sel = j_sel + (cnt >= num_neg).astype(jnp.int32)
        thr = thr | (j_sel * jnp.int32(1 << lo))
        b = lo - 1

    count_gt = _row_count(bits > thr)
    remaining = num_neg - count_gt            # exact ties still to take
    tied = bits == thr

    # Smallest index bound I with count(tied & idx <= I) >= remaining
    # (deterministic smallest-index-first tie-break), same radix trick.
    idx = jax.lax.broadcasted_iota(jnp.int32, (TB, P), 1)
    nbits_idx = max((P - 1).bit_length(), 1)
    bound = jnp.zeros_like(thr)
    b = nbits_idx - 1
    while b >= 0:
        w = min(_RADIX, b + 1)
        lo = b - w + 1
        low_ones = (1 << lo) - 1
        j_fail = jnp.zeros_like(bound)
        for j in range(0, (1 << w) - 1):      # top candidate always passes
            cand_hi = bound | jnp.int32((j << lo) | low_ones)
            cnt = _row_count(tied & (idx <= cand_hi))
            j_fail = j_fail + (cnt < remaining).astype(jnp.int32)
        bound = bound | (j_fail * jnp.int32(1 << lo))
        b = lo - 1

    neg = (bits > thr) | (tied & (idx <= bound) & (remaining > 0))
    sel = pos | neg
    loss_c_tile = jnp.sum(jnp.where(sel, ce, 0.0))
    n_tile = jnp.sum(num_pos).astype(jnp.float32)

    # ---- single lane-dense accumulator row: [loss_l, loss_c, num_pos, 0...] ----
    lane = jax.lax.broadcasted_iota(jnp.int32, acc_ref.shape, 2)
    row = (jnp.where(lane == 0, loss_l_tile, 0.0)
           + jnp.where(lane == 1, loss_c_tile, 0.0)
           + jnp.where(lane == 2, n_tile, 0.0))
    acc_ref[...] = acc_ref[...] + row


def _largest_divisor_leq(n, k):
    k = max(1, min(n, k))
    for t in range(k, 0, -1):
        if n % t == 0:
            return t
    return 1


def multibox_loss(loc_t, loc_data, conf_t, conf_data, num_classes, *,
                  tile_images=8, num_core_partitions=2):
    """Pallas implementation of MultiBoxLoss.forward -> (loss_l, loss_c)."""
    B, P, four = loc_data.shape
    C = conf_data.shape[-1]
    assert four == 4 and C == num_classes

    # TB images per grid step; NT tiles total, split across G core partitions.
    # VMEM per step ~ 2 * TB * P * (36 + 4C) bytes (double-buffered); TB=8 with
    # SSD (P~8732, C=21) is ~17 MiB, inside the 32 MiB limit (v7x-safe).
    # v5e/v6e can raise tile_images (and vmem_limit_bytes) further.
    TB = _largest_divisor_leq(B, tile_images)
    NT = B // TB
    G = num_core_partitions if NT % num_core_partitions == 0 else 1
    per = NT // G

    # Lane-dense layouts: priors P -> 128-lane axis, TB -> sublanes.
    labels = conf_t.reshape(NT, TB, P).astype(jnp.int32)              # (NT,TB,P)
    loc_t_k = jnp.transpose(loc_t.reshape(NT, TB, P, 4),
                            (0, 3, 1, 2)).astype(jnp.float32)         # (NT,4,TB,P)
    loc_d_k = jnp.transpose(loc_data.reshape(NT, TB, P, 4),
                            (0, 3, 1, 2)).astype(jnp.float32)         # (NT,4,TB,P)
    conf_k = jnp.transpose(conf_data.reshape(NT, TB, P, C),
                           (0, 3, 1, 2)).astype(jnp.float32)          # (NT,C,TB,P)

    def in_map3(c, b):
        return (c * per + b, 0, 0)

    def in_map4(c, b):
        return (c * per + b, 0, 0, 0)

    acc = pl.pallas_call(
        _multibox_kernel,
        out_shape=jax.ShapeDtypeStruct((G, 1, 128), jnp.float32),
        grid_spec=pltpu.PrefetchScalarGridSpec(
            num_scalar_prefetch=0,
            grid=(G, per),
            in_specs=[
                pl.BlockSpec((1, TB, P), in_map3),     # conf_t (labels)
                pl.BlockSpec((1, 4, TB, P), in_map4),  # loc_t
                pl.BlockSpec((1, 4, TB, P), in_map4),  # loc_data
                pl.BlockSpec((1, C, TB, P), in_map4),  # conf_data
            ],
            out_specs=pl.BlockSpec((1, 1, 128), lambda c, b: (c, 0, 0)),
        ),
        # TODO(synk): verify on v7x (xprof) that the leading "parallel" axis
        # really shards across both TensorCores; if not, switch to CORE_PARALLEL.
        compiler_params=pltpu.CompilerParams(
            dimension_semantics=("parallel", "arbitrary"),
            vmem_limit_bytes=32 * 1024 * 1024),
    )(labels, loc_t_k, loc_d_k, conf_k)

    totals = jnp.sum(acc[:, 0, :3], axis=0)   # [sum loss_l, sum loss_c, N]
    N = totals[2]
    # NOTE: if the batch has zero positive priors, N == 0 and both losses are
    # inf/NaN -- identical to the PyTorch module (documented precondition).
    return totals[0] / N, totals[1] / N


def multibox_loss_ref(loc_t, loc_data, conf_t, conf_data, num_classes):
    """Pure-JAX reference (same index tie-break convention) for validation."""
    B, P = conf_t.shape
    pos = conf_t > 0
    regard = conf_t == -1
    tgt = jnp.where(regard, 0, conf_t)

    diff = loc_data - loc_t
    ad = jnp.abs(diff)
    sl1 = jnp.where(ad < 1.0, 0.5 * diff * diff, ad - 0.5)
    loss_l = jnp.sum(jnp.where(pos[..., None], sl1, 0.0))

    lse = jax.scipy.special.logsumexp(conf_data, axis=-1)
    score_t = jnp.take_along_axis(conf_data, tgt[..., None], axis=-1)[..., 0]
    ce = lse - score_t

    mined = jnp.where(pos | regard, 0.0, ce)
    num_pos = jnp.sum(pos.astype(jnp.int32), axis=1)
    num_neg = jnp.minimum(3 * num_pos, P - 1)
    li = mined[:, :, None]
    lj = mined[:, None, :]
    col = jnp.arange(P)[None, None, :]
    row = jnp.arange(P)[None, :, None]
    rank = jnp.sum((lj > li).astype(jnp.int32)
                   + ((lj == li) & (col < row)).astype(jnp.int32), axis=2)
    neg = rank < num_neg[:, None]
    sel = pos | neg
    loss_c = jnp.sum(jnp.where(sel, ce, 0.0))

    N = jnp.sum(pos).astype(jnp.float32)
    return loss_l / N, loss_c / N


if __name__ == "__main__":
    B, P, C = 8, 256, 8   # batch, num_priors, num_classes
    key = jax.random.PRNGKey(0)
    k1, k2, k3, k4, k5, k6 = jax.random.split(key, 6)

    loc_t = jax.random.normal(k1, (B, P, 4), dtype=jnp.float32)
    loc_data = jax.random.normal(k2, (B, P, 4), dtype=jnp.float32)
    conf_data = jax.random.normal(k3, (B, P, C), dtype=jnp.float32)

    # Labels in [-1, C-1]: -1 = ignore, 0 = background, >0 = positive.
    # First half: positive-heavy  -> num_neg = P-1, exercises the tie path.
    # Second half: background-heavy -> num_neg = 3*num_pos, threshold path.
    dense = jax.random.randint(k4, (B // 2, P), -1, C)
    u = jax.random.uniform(k5, (B - B // 2, P))
    sparse_pos = jax.random.randint(k6, (B - B // 2, P), 1, C)
    sparse = jnp.where(u < 0.08, sparse_pos, jnp.where(u > 0.96, -1, 0))
    conf_t = jnp.concatenate([dense, sparse], axis=0).astype(jnp.int32)
    conf_t = conf_t.at[:, 0].set(1)   # guarantee at least one positive

    ref_l, ref_c = multibox_loss_ref(loc_t, loc_data, conf_t, conf_data, C)

    # Path 1: single 8-image tile per grid step (default config).
    loss_l, loss_c = multibox_loss(loc_t, loc_data, conf_t, conf_data, C)
    jax.block_until_ready((loss_l, loss_c))
    np.testing.assert_allclose(np.asarray(loss_l), np.asarray(ref_l),
                               rtol=1e-4, atol=1e-4)
    np.testing.assert_allclose(np.asarray(loss_c), np.asarray(ref_c),
                               rtol=1e-4, atol=1e-4)

    # Path 2: multi-tile + dual core-partition accumulation path.
    loss_l2, loss_c2 = multibox_loss(loc_t, loc_data, conf_t, conf_data, C,
                                     tile_images=2)
    jax.block_until_ready((loss_l2, loss_c2))
    np.testing.assert_allclose(np.asarray(loss_l2), np.asarray(ref_l),
                               rtol=1e-4, atol=1e-4)
    np.testing.assert_allclose(np.asarray(loss_c2), np.asarray(ref_c),
                               rtol=1e-4, atol=1e-4)

    print("KERNEL_OK")
</pallas_src>

<mosaic_0001>
module attributes {stable_mosaic.version = 11 : i64} {
  func.func @_multibox_kernel(%arg0: i32, %arg1: i32, %arg2: memref<1x8x256xi32, #tpu.memory_space<vmem>>, %arg3: memref<1x4x8x256xf32, #tpu.memory_space<vmem>>, %arg4: memref<1x4x8x256xf32, #tpu.memory_space<vmem>>, %arg5: memref<1x8x8x256xf32, #tpu.memory_space<vmem>>, %arg6: memref<1x1x128xf32, #tpu.memory_space<vmem>>) attributes {dimension_semantics = [#tpu.dimension_semantics<parallel>, #tpu.dimension_semantics<arbitrary>], iteration_bounds = array<i64: 1, 1>, scalar_prefetch = 0 : i64, scratch_operands = 0 : i64, tpu.core_type = #tpu.core_type<tc>, window_params = [{transform_indices = @transform_0, window_bounds = array<i64: 1, 8, 256>}, {transform_indices = @transform_1, window_bounds = array<i64: 1, 4, 8, 256>}, {transform_indices = @transform_2, window_bounds = array<i64: 1, 4, 8, 256>}, {transform_indices = @transform_3, window_bounds = array<i64: 1, 8, 8, 256>}, {transform_indices = @transform_4, window_bounds = array<i64: 1, 1, 128>}]} {
    %c0_i32 = arith.constant 0 : i32
    %0 = arith.cmpi eq, %arg1, %c0_i32 : i32
    %1 = arith.extui %0 : i1 to i32
    %c0_i32_0 = arith.constant 0 : i32
    %2 = arith.cmpi ne, %1, %c0_i32_0 : i32
    scf.if %2 {
      %cst_233 = arith.constant 0.000000e+00 : f32
      %1162 = vector.broadcast %cst_233 : f32 to vector<1x1x128xf32>
      %c0_234 = arith.constant 0 : index
      %c0_235 = arith.constant 0 : index
      %c0_236 = arith.constant 0 : index
      %1163 = vector.load %arg6[%c0_234, %c0_235, %c0_236] : memref<1x1x128xf32, #tpu.memory_space<vmem>>, vector<1x1x128xf32>
      tpu.vector_store %arg6[%c0_234, %c0_235, %c0_236], %1162 {strides = array<i32>} : memref<1x1x128xf32, #tpu.memory_space<vmem>>, vector<1x1x128xf32>,
    } else {
    }
    %c0 = arith.constant 0 : index
    %c0_1 = arith.constant 0 : index
    %c0_2 = arith.constant 0 : index
    %3 = vector.load %arg2[%c0, %c0_1, %c0_2] : memref<1x8x256xi32, #tpu.memory_space<vmem>>, vector<1x8x256xi32>
    %4 = vector.shape_cast %3 : vector<1x8x256xi32> to vector<8x256xi32>
    %c0_i32_3 = arith.constant 0 : i32
    %5 = vector.broadcast %c0_i32_3 : i32 to vector<8x256xi32>
    %6 = arith.cmpi sgt, %4, %5 : vector<8x256xi32>
    %c-1_i32 = arith.constant -1 : i32
    %7 = vector.broadcast %c-1_i32 : i32 to vector<8x256xi32>
    %8 = arith.cmpi eq, %4, %7 : vector<8x256xi32>
    %c0_i32_4 = arith.constant 0 : i32
    %9 = vector.broadcast %c0_i32_4 : i32 to vector<8x256xi32>
    %10 = arith.select %8, %9, %4 : vector<8x256xi1>, vector<8x256xi32>
    %c0_5 = arith.constant 0 : index
    %c0_6 = arith.constant 0 : index
    %c0_7 = arith.constant 0 : index
    %c0_8 = arith.constant 0 : index
    %11 = vector.load %arg4[%c0_5, %c0_6, %c0_7, %c0_8] : memref<1x4x8x256xf32, #tpu.memory_space<vmem>>, vector<1x4x8x256xf32>
    %12 = vector.shape_cast %11 : vector<1x4x8x256xf32> to vector<4x8x256xf32>
    %c0_9 = arith.constant 0 : index
    %c0_10 = arith.constant 0 : index
    %c0_11 = arith.constant 0 : index
    %c0_12 = arith.constant 0 : index
    %13 = vector.load %arg3[%c0_9, %c0_10, %c0_11, %c0_12] : memref<1x4x8x256xf32, #tpu.memory_space<vmem>>, vector<1x4x8x256xf32>
    %14 = vector.shape_cast %13 : vector<1x4x8x256xf32> to vector<4x8x256xf32>
    %15 = arith.subf %12, %14 : vector<4x8x256xf32>
    %16 = math.absf %15 : vector<4x8x256xf32>
    %cst = arith.constant 1.000000e+00 : f32
    %17 = vector.broadcast %cst : f32 to vector<4x8x256xf32>
    %18 = arith.cmpf olt, %16, %17 : vector<4x8x256xf32>
    %cst_13 = arith.constant 5.000000e-01 : f32
    %19 = vector.broadcast %cst_13 : f32 to vector<4x8x256xf32>
    %20 = arith.mulf %19, %15 : vector<4x8x256xf32>
    %21 = arith.mulf %20, %15 : vector<4x8x256xf32>
    %cst_14 = arith.constant 5.000000e-01 : f32
    %22 = vector.broadcast %cst_14 : f32 to vector<4x8x256xf32>
    %23 = arith.subf %16, %22 : vector<4x8x256xf32>
    %24 = arith.select %18, %21, %23 : vector<4x8x256xi1>, vector<4x8x256xf32>
    %25 = vector.shape_cast %6 : vector<8x256xi1> to vector<1x8x256xi1>
    %cst_15 = arith.constant 0.000000e+00 : f32
    %26 = vector.shape_cast %25 : vector<1x8x256xi1> to vector<1x8x256xi1>
    %27 = vector.broadcast %26 : vector<1x8x256xi1> to vector<4x8x256xi1>
    %28 = vector.broadcast %cst_15 : f32 to vector<4x8x256xf32>
    %29 = arith.select %27, %24, %28 : vector<4x8x256xi1>, vector<4x8x256xf32>
    %30 = vector.shape_cast %29 : vector<4x8x256xf32> to vector<1x4x8x256xf32>
    %cst_16 = arith.constant dense<0.000000e+00> : vector<1xf32>
    %31 = vector.multi_reduction <add>, %30, %cst_16 [1, 2, 3] : vector<1x4x8x256xf32> to vector<1xf32>
    %32 = vector.shape_cast %31 : vector<1xf32> to vector<1x1x1x1xf32>
    %33 = vector.extract %32[0, 0, 0, 0] : f32 from vector<1x1x1x1xf32>
    %c0_17 = arith.constant 0 : index
    %c0_18 = arith.constant 0 : index
    %c0_19 = arith.constant 0 : index
    %c0_20 = arith.constant 0 : index
    %34 = vector.load %arg5[%c0_17, %c0_18, %c0_19, %c0_20] : memref<1x8x8x256xf32, #tpu.memory_space<vmem>>, vector<1x1x8x256xf32>
    %35 = vector.shape_cast %34 : vector<1x1x8x256xf32> to vector<8x256xf32>
    %c0_21 = arith.constant 0 : index
    %c1 = arith.constant 1 : index
    %c0_22 = arith.constant 0 : index
    %c0_23 = arith.constant 0 : index
    %36 = vector.load %arg5[%c0_21, %c1, %c0_22, %c0_23] : memref<1x8x8x256xf32, #tpu.memory_space<vmem>>, vector<1x1x8x256xf32>
    %37 = vector.shape_cast %36 : vector<1x1x8x256xf32> to vector<8x256xf32>
    %38 = arith.maximumf %35, %37 : vector<8x256xf32>
    %c0_24 = arith.constant 0 : index
    %c2 = arith.constant 2 : index
    %c0_25 = arith.constant 0 : index
    %c0_26 = arith.constant 0 : index
    %39 = vector.load %arg5[%c0_24, %c2, %c0_25, %c0_26] : memref<1x8x8x256xf32, #tpu.memory_space<vmem>>, vector<1x1x8x256xf32>
    %40 = vector.shape_cast %39 : vector<1x1x8x256xf32> to vector<8x256xf32>
    %41 = arith.maximumf %38, %40 : vector<8x256xf32>
    %c0_27 = arith.constant 0 : index
    %c3 = arith.constant 3 : index
    %c0_28 = arith.constant 0 : index
    %c0_29 = arith.constant 0 : index
    %42 = vector.load %arg5[%c0_27, %c3, %c0_28, %c0_29] : memref<1x8x8x256xf32, #tpu.memory_space<vmem>>, vector<1x1x8x256xf32>
    %43 = vector.shape_cast %42 : vector<1x1x8x256xf32> to vector<8x256xf32>
    %44 = arith.maximumf %41, %43 : vector<8x256xf32>
    %c0_30 = arith.constant 0 : index
    %c4 = arith.constant 4 : index
    %c0_31 = arith.constant 0 : index
    %c0_32 = arith.constant 0 : index
    %45 = vector.load %arg5[%c0_30, %c4, %c0_31, %c0_32] : memref<1x8x8x256xf32, #tpu.memory_space<vmem>>, vector<1x1x8x256xf32>
    %46 = vector.shape_cast %45 : vector<1x1x8x256xf32> to vector<8x256xf32>
    %47 = arith.maximumf %44, %46 : vector<8x256xf32>
    %c0_33 = arith.constant 0 : index
    %c5 = arith.constant 5 : index
    %c0_34 = arith.constant 0 : index
    %c0_35 = arith.constant 0 : index
    %48 = vector.load %arg5[%c0_33, %c5, %c0_34, %c0_35] : memref<1x8x8x256xf32, #tpu.memory_space<vmem>>, vector<1x1x8x256xf32>
    %49 = vector.shape_cast %48 : vector<1x1x8x256xf32> to vector<8x256xf32>
    %50 = arith.maximumf %47, %49 : vector<8x256xf32>
    %c0_36 = arith.constant 0 : index
    %c6 = arith.constant 6 : index
    %c0_37 = arith.constant 0 : index
    %c0_38 = arith.constant 0 : index
    %51 = vector.load %arg5[%c0_36, %c6, %c0_37, %c0_38] : memref<1x8x8x256xf32, #tpu.memory_space<vmem>>, vector<1x1x8x256xf32>
    %52 = vector.shape_cast %51 : vector<1x1x8x256xf32> to vector<8x256xf32>
    %53 = arith.maximumf %50, %52 : vector<8x256xf32>
    %c0_39 = arith.constant 0 : index
    %c7 = arith.constant 7 : index
    %c0_40 = arith.constant 0 : index
    %c0_41 = arith.constant 0 : index
    %54 = vector.load %arg5[%c0_39, %c7, %c0_40, %c0_41] : memref<1x8x8x256xf32, #tpu.memory_space<vmem>>, vector<1x1x8x256xf32>
    %55 = vector.shape_cast %54 : vector<1x1x8x256xf32> to vector<8x256xf32>
    %56 = arith.maximumf %53, %55 : vector<8x256xf32>
    %cst_42 = arith.constant 0.000000e+00 : f32
    %57 = vector.broadcast %cst_42 : f32 to vector<8x256xf32>
    %cst_43 = arith.constant 0.000000e+00 : f32
    %58 = vector.broadcast %cst_43 : f32 to vector<8x256xf32>
    %c0_44 = arith.constant 0 : index
    %c0_45 = arith.constant 0 : index
    %c0_46 = arith.constant 0 : index
    %c0_47 = arith.constant 0 : index
    %59 = vector.load %arg5[%c0_44, %c0_45, %c0_46, %c0_47] : memref<1x8x8x256xf32, #tpu.memory_space<vmem>>, vector<1x1x8x256xf32>
    %60 = vector.shape_cast %59 : vector<1x1x8x256xf32> to vector<8x256xf32>
    %61 = arith.subf %60, %56 : vector<8x256xf32>
    %62 = math.exp %61 : vector<8x256xf32>
    %63 = arith.addf %57, %62 : vector<8x256xf32>
    %c0_i32_48 = arith.constant 0 : i32
    %64 = vector.broadcast %c0_i32_48 : i32 to vector<8x256xi32>
    %65 = arith.cmpi eq, %10, %64 : vector<8x256xi32>
    %cst_49 = arith.constant 0.000000e+00 : f32
    %66 = vector.broadcast %cst_49 : f32 to vector<8x256xf32>
    %67 = arith.select %65, %60, %66 : vector<8x256xi1>, vector<8x256xf32>
    %68 = arith.addf %58, %67 : vector<8x256xf32>
    %c0_50 = arith.constant 0 : index
    %c1_51 = arith.constant 1 : index
    %c0_52 = arith.constant 0 : index
    %c0_53 = arith.constant 0 : index
    %69 = vector.load %arg5[%c0_50, %c1_51, %c0_52, %c0_53] : memref<1x8x8x256xf32, #tpu.memory_space<vmem>>, vector<1x1x8x256xf32>
    %70 = vector.shape_cast %69 : vector<1x1x8x256xf32> to vector<8x256xf32>
    %71 = arith.subf %70, %56 : vector<8x256xf32>
    %72 = math.exp %71 : vector<8x256xf32>
    %73 = arith.addf %63, %72 : vector<8x256xf32>
    %c1_i32 = arith.constant 1 : i32
    %74 = vector.broadcast %c1_i32 : i32 to vector<8x256xi32>
    %75 = arith.cmpi eq, %10, %74 : vector<8x256xi32>
    %cst_54 = arith.constant 0.000000e+00 : f32
    %76 = vector.broadcast %cst_54 : f32 to vector<8x256xf32>
    %77 = arith.select %75, %70, %76 : vector<8x256xi1>, vector<8x256xf32>
    %78 = arith.addf %68, %77 : vector<8x256xf32>
    %c0_55 = arith.constant 0 : index
    %c2_56 = arith.constant 2 : index
    %c0_57 = arith.constant 0 : index
    %c0_58 = arith.constant 0 : index
    %79 = vector.load %arg5[%c0_55, %c2_56, %c0_57, %c0_58] : memref<1x8x8x256xf32, #tpu.memory_space<vmem>>, vector<1x1x8x256xf32>
    %80 = vector.shape_cast %79 : vector<1x1x8x256xf32> to vector<8x256xf32>
    %81 = arith.subf %80, %56 : vector<8x256xf32>
    %82 = math.exp %81 : vector<8x256xf32>
    %83 = arith.addf %73, %82 : vector<8x256xf32>
    %c2_i32 = arith.constant 2 : i32
    %84 = vector.broadcast %c2_i32 : i32 to vector<8x256xi32>
    %85 = arith.cmpi eq, %10, %84 : vector<8x256xi32>
    %cst_59 = arith.constant 0.000000e+00 : f32
    %86 = vector.broadcast %cst_59 : f32 to vector<8x256xf32>
    %87 = arith.select %85, %80, %86 : vector<8x256xi1>, vector<8x256xf32>
    %88 = arith.addf %78, %87 : vector<8x256xf32>
    %c0_60 = arith.constant 0 : index
    %c3_61 = arith.constant 3 : index
    %c0_62 = arith.constant 0 : index
    %c0_63 = arith.constant 0 : index
    %89 = vector.load %arg5[%c0_60, %c3_61, %c0_62, %c0_63] : memref<1x8x8x256xf32, #tpu.memory_space<vmem>>, vector<1x1x8x256xf32>
    %90 = vector.shape_cast %89 : vector<1x1x8x256xf32> to vector<8x256xf32>
    %91 = arith.subf %90, %56 : vector<8x256xf32>
    %92 = math.exp %91 : vector<8x256xf32>
    %93 = arith.addf %83, %92 : vector<8x256xf32>
    %c3_i32 = arith.constant 3 : i32
    %94 = vector.broadcast %c3_i32 : i32 to vector<8x256xi32>
    %95 = arith.cmpi eq, %10, %94 : vector<8x256xi32>
    %cst_64 = arith.constant 0.000000e+00 : f32
    %96 = vector.broadcast %cst_64 : f32 to vector<8x256xf32>
    %97 = arith.select %95, %90, %96 : vector<8x256xi1>, vector<8x256xf32>
    %98 = arith.addf %88, %97 : vector<8x256xf32>
    %c0_65 = arith.constant 0 : index
    %c4_66 = arith.constant 4 : index
    %c0_67 = arith.constant 0 : index
    %c0_68 = arith.constant 0 : index
    %99 = vector.load %arg5[%c0_65, %c4_66, %c0_67, %c0_68] : memref<1x8x8x256xf32, #tpu.memory_space<vmem>>, vector<1x1x8x256xf32>
    %100 = vector.shape_cast %99 : vector<1x1x8x256xf32> to vector<8x256xf32>
    %101 = arith.subf %100, %56 : vector<8x256xf32>
    %102 = math.exp %101 : vector<8x256xf32>
    %103 = arith.addf %93, %102 : vector<8x256xf32>
    %c4_i32 = arith.constant 4 : i32
    %104 = vector.broadcast %c4_i32 : i32 to vector<8x256xi32>
    %105 = arith.cmpi eq, %10, %104 : vector<8x256xi32>
    %cst_69 = arith.constant 0.000000e+00 : f32
    %106 = vector.broadcast %cst_69 : f32 to vector<8x256xf32>
    %107 = arith.select %105, %100, %106 : vector<8x256xi1>, vector<8x256xf32>
    %108 = arith.addf %98, %107 : vector<8x256xf32>
    %c0_70 = arith.constant 0 : index
    %c5_71 = arith.constant 5 : index
    %c0_72 = arith.constant 0 : index
    %c0_73 = arith.constant 0 : index
    %109 = vector.load %arg5[%c0_70, %c5_71, %c0_72, %c0_73] : memref<1x8x8x256xf32, #tpu.memory_space<vmem>>, vector<1x1x8x256xf32>
    %110 = vector.shape_cast %109 : vector<1x1x8x256xf32> to vector<8x256xf32>
    %111 = arith.subf %110, %56 : vector<8x256xf32>
    %112 = math.exp %111 : vector<8x256xf32>
    %113 = arith.addf %103, %112 : vector<8x256xf32>
    %c5_i32 = arith.constant 5 : i32
    %114 = vector.broadcast %c5_i32 : i32 to vector<8x256xi32>
    %115 = arith.cmpi eq, %10, %114 : vector<8x256xi32>
    %cst_74 = arith.constant 0.000000e+00 : f32
    %116 = vector.broadcast %cst_74 : f32 to vector<8x256xf32>
    %117 = arith.select %115, %110, %116 : vector<8x256xi1>, vector<8x256xf32>
    %118 = arith.addf %108, %117 : vector<8x256xf32>
    %c0_75 = arith.constant 0 : index
    %c6_76 = arith.constant 6 : index
    %c0_77 = arith.constant 0 : index
    %c0_78 = arith.constant 0 : index
    %119 = vector.load %arg5[%c0_75, %c6_76, %c0_77, %c0_78] : memref<1x8x8x256xf32, #tpu.memory_space<vmem>>, vector<1x1x8x256xf32>
    %120 = vector.shape_cast %119 : vector<1x1x8x256xf32> to vector<8x256xf32>
    %121 = arith.subf %120, %56 : vector<8x256xf32>
    %122 = math.exp %121 : vector<8x256xf32>
    %123 = arith.addf %113, %122 : vector<8x256xf32>
    %c6_i32 = arith.constant 6 : i32
    %124 = vector.broadcast %c6_i32 : i32 to vector<8x256xi32>
    %125 = arith.cmpi eq, %10, %124 : vector<8x256xi32>
    %cst_79 = arith.constant 0.000000e+00 : f32
    %126 = vector.broadcast %cst_79 : f32 to vector<8x256xf32>
    %127 = arith.select %125, %120, %126 : vector<8x256xi1>, vector<8x256xf32>
    %128 = arith.addf %118, %127 : vector<8x256xf32>
    %c0_80 = arith.constant 0 : index
    %c7_81 = arith.constant 7 : index
    %c0_82 = arith.constant 0 : index
    %c0_83 = arith.constant 0 : index
    %129 = vector.load %arg5[%c0_80, %c7_81, %c0_82, %c0_83] : memref<1x8x8x256xf32, #tpu.memory_space<vmem>>, vector<1x1x8x256xf32>
    %130 = vector.shape_cast %129 : vector<1x1x8x256xf32> to vector<8x256xf32>
    %131 = arith.subf %130, %56 : vector<8x256xf32>
    %132 = math.exp %131 : vector<8x256xf32>
    %133 = arith.addf %123, %132 : vector<8x256xf32>
    %c7_i32 = arith.constant 7 : i32
    %134 = vector.broadcast %c7_i32 : i32 to vector<8x256xi32>
    %135 = arith.cmpi eq, %10, %134 : vector<8x256xi32>
    %cst_84 = arith.constant 0.000000e+00 : f32
    %136 = vector.broadcast %cst_84 : f32 to vector<8x256xf32>
    %137 = arith.select %135, %130, %136 : vector<8x256xi1>, vector<8x256xf32>
    %138 = arith.addf %128, %137 : vector<8x256xf32>
    %139 = math.log %133 : vector<8x256xf32>
    %140 = arith.addf %139, %56 : vector<8x256xf32>
    %141 = arith.subf %140, %138 : vector<8x256xf32>
    %142 = arith.ori %6, %8 : vector<8x256xi1>
    %cst_85 = arith.constant 0.000000e+00 : f32
    %143 = vector.broadcast %cst_85 : f32 to vector<8x256xf32>
    %144 = arith.select %142, %143, %141 : vector<8x256xi1>, vector<8x256xf32>
    %145 = arith.extui %6 : vector<8x256xi1> to vector<8x256xi32>
    %cst_86 = arith.constant dense<0> : vector<8xi32>
    %146 = vector.multi_reduction <add>, %145, %cst_86 [1] : vector<8x256xi32> to vector<8xi32>
    %147 = vector.shape_cast %146 : vector<8xi32> to vector<8x1xi32>
    %c3_i32_87 = arith.constant 3 : i32
    %148 = vector.broadcast %c3_i32_87 : i32 to vector<8x1xi32>
    %149 = arith.muli %148, %147 : vector<8x1xi32>
    %c255_i32 = arith.constant 255 : i32
    %150 = vector.broadcast %c255_i32 : i32 to vector<8x1xi32>
    %151 = arith.minsi %149, %150 : vector<8x1xi32>
    %152 = tpu.bitcast %144 : vector<8x256xf32> -> vector<8x256xi32>
    %c0_i32_88 = arith.constant 0 : i32
    %153 = vector.broadcast %c0_i32_88 : i32 to vector<8x256xi32>
    %154 = arith.maxsi %152, %153 : vector<8x256xi32>
    %c0_i32_89 = arith.constant 0 : i32
    %155 = vector.broadcast %c0_i32_89 : i32 to vector<8x1xi32>
    %c0_i32_90 = arith.constant 0 : i32
    %156 = vector.broadcast %c0_i32_90 : i32 to vector<8x1xi32>
    %c268435456_i32 = arith.constant 268435456 : i32
    %157 = vector.broadcast %c268435456_i32 : i32 to vector<8x1xi32>
    %158 = arith.ori %155, %157 : vector<8x1xi32>
    %159 = vector.broadcast %158 : vector<8x1xi32> to vector<8x256xi32>
    %160 = arith.cmpi sge, %154, %159 : vector<8x256xi32>
    %161 = arith.extui %160 : vector<8x256xi1> to vector<8x256xi32>
    %cst_91 = arith.constant dense<0> : vector<8xi32>
    %162 = vector.multi_reduction <add>, %161, %cst_91 [1] : vector<8x256xi32> to vector<8xi32>
    %163 = vector.shape_cast %162 : vector<8xi32> to vector<8x1xi32>
    %164 = arith.cmpi sge, %163, %151 : vector<8x1xi32>
    %165 = arith.extui %164 : vector<8x1xi1> to vector<8x1xi32>
    %166 = arith.addi %156, %165 : vector<8x1xi32>
    %c536870912_i32 = arith.constant 536870912 : i32
    %167 = vector.broadcast %c536870912_i32 : i32 to vector<8x1xi32>
    %168 = arith.ori %155, %167 : vector<8x1xi32>
    %169 = vector.broadcast %168 : vector<8x1xi32> to vector<8x256xi32>
    %170 = arith.cmpi sge, %154, %169 : vector<8x256xi32>
    %171 = arith.extui %170 : vector<8x256xi1> to vector<8x256xi32>
    %cst_92 = arith.constant dense<0> : vector<8xi32>
    %172 = vector.multi_reduction <add>, %171, %cst_92 [1] : vector<8x256xi32> to vector<8xi32>
    %173 = vector.shape_cast %172 : vector<8xi32> to vector<8x1xi32>
    %174 = arith.cmpi sge, %173, %151 : vector<8x1xi32>
    %175 = arith.extui %174 : vector<8x1xi1> to vector<8x1xi32>
    %176 = arith.addi %166, %175 : vector<8x1xi32>
    %c805306368_i32 = arith.constant 805306368 : i32
    %177 = vector.broadcast %c805306368_i32 : i32 to vector<8x1xi32>
    %178 = arith.ori %155, %177 : vector<8x1xi32>
    %179 = vector.broadcast %178 : vector<8x1xi32> to vector<8x256xi32>
    %180 = arith.cmpi sge, %154, %179 : vector<8x256xi32>
    %181 = arith.extui %180 : vector<8x256xi1> to vector<8x256xi32>
    %cst_93 = arith.constant dense<0> : vector<8xi32>
    %182 = vector.multi_reduction <add>, %181, %cst_93 [1] : vector<8x256xi32> to vector<8xi32>
    %183 = vector.shape_cast %182 : vector<8xi32> to vector<8x1xi32>
    %184 = arith.cmpi sge, %183, %151 : vector<8x1xi32>
    %185 = arith.extui %184 : vector<8x1xi1> to vector<8x1xi32>
    %186 = arith.addi %176, %185 : vector<8x1xi32>
    %c1073741824_i32 = arith.constant 1073741824 : i32
    %187 = vector.broadcast %c1073741824_i32 : i32 to vector<8x1xi32>
    %188 = arith.ori %155, %187 : vector<8x1xi32>
    %189 = vector.broadcast %188 : vector<8x1xi32> to vector<8x256xi32>
    %190 = arith.cmpi sge, %154, %189 : vector<8x256xi32>
    %191 = arith.extui %190 : vector<8x256xi1> to vector<8x256xi32>
    %cst_94 = arith.constant dense<0> : vector<8xi32>
    %192 = vector.multi_reduction <add>, %191, %cst_94 [1] : vector<8x256xi32> to vector<8xi32>
    %193 = vector.shape_cast %192 : vector<8xi32> to vector<8x1xi32>
    %194 = arith.cmpi sge, %193, %151 : vector<8x1xi32>
    %195 = arith.extui %194 : vector<8x1xi1> to vector<8x1xi32>
    %196 = arith.addi %186, %195 : vector<8x1xi32>
    %c1342177280_i32 = arith.constant 1342177280 : i32
    %197 = vector.broadcast %c1342177280_i32 : i32 to vector<8x1xi32>
    %198 = arith.ori %155, %197 : vector<8x1xi32>
    %199 = vector.broadcast %198 : vector<8x1xi32> to vector<8x256xi32>
    %200 = arith.cmpi sge, %154, %199 : vector<8x256xi32>
    %201 = arith.extui %200 : vector<8x256xi1> to vector<8x256xi32>
    %cst_95 = arith.constant dense<0> : vector<8xi32>
    %202 = vector.multi_reduction <add>, %201, %cst_95 [1] : vector<8x256xi32> to vector<8xi32>
    %203 = vector.shape_cast %202 : vector<8xi32> to vector<8x1xi32>
    %204 = arith.cmpi sge, %203, %151 : vector<8x1xi32>
    %205 = arith.extui %204 : vector<8x1xi1> to vector<8x1xi32>
    %206 = arith.addi %196, %205 : vector<8x1xi32>
    %c1610612736_i32 = arith.constant 1610612736 : i32
    %207 = vector.broadcast %c1610612736_i32 : i32 to vector<8x1xi32>
    %208 = arith.ori %155, %207 : vector<8x1xi32>
    %209 = vector.broadcast %208 : vector<8x1xi32> to vector<8x256xi32>
    %210 = arith.cmpi sge, %154, %209 : vector<8x256xi32>
    %211 = arith.extui %210 : vector<8x256xi1> to vector<8x256xi32>
    %cst_96 = arith.constant dense<0> : vector<8xi32>
    %212 = vector.multi_reduction <add>, %211, %cst_96 [1] : vector<8x256xi32> to vector<8xi32>
    %213 = vector.shape_cast %212 : vector<8xi32> to vector<8x1xi32>
    %214 = arith.cmpi sge, %213, %151 : vector<8x1xi32>
    %215 = arith.extui %214 : vector<8x1xi1> to vector<8x1xi32>
    %216 = arith.addi %206, %215 : vector<8x1xi32>
    %c1879048192_i32 = arith.constant 1879048192 : i32
    %217 = vector.broadcast %c1879048192_i32 : i32 to vector<8x1xi32>
    %218 = arith.ori %155, %217 : vector<8x1xi32>
    %219 = vector.broadcast %218 : vector<8x1xi32> to vector<8x256xi32>
    %220 = arith.cmpi sge, %154, %219 : vector<8x256xi32>
    %221 = arith.extui %220 : vector<8x256xi1> to vector<8x256xi32>
    %cst_97 = arith.constant dense<0> : vector<8xi32>
    %222 = vector.multi_reduction <add>, %221, %cst_97 [1] : vector<8x256xi32> to vector<8xi32>
    %223 = vector.shape_cast %222 : vector<8xi32> to vector<8x1xi32>
    %224 = arith.cmpi sge, %223, %151 : vector<8x1xi32>
    %225 = arith.extui %224 : vector<8x1xi1> to vector<8x1xi32>
    %226 = arith.addi %216, %225 : vector<8x1xi32>
    %c268435456_i32_98 = arith.constant 268435456 : i32
    %227 = vector.broadcast %c268435456_i32_98 : i32 to vector<8x1xi32>
    %228 = arith.muli %226, %227 : vector<8x1xi32>
    %229 = arith.ori %155, %228 : vector<8x1xi32>
    %c0_i32_99 = arith.constant 0 : i32
    %230 = vector.broadcast %c0_i32_99 : i32 to vector<8x1xi32>
    %c33554432_i32 = arith.constant 33554432 : i32
    %231 = vector.broadcast %c33554432_i32 : i32 to vector<8x1xi32>
    %232 = arith.ori %229, %231 : vector<8x1xi32>
    %233 = vector.broadcast %232 : vector<8x1xi32> to vector<8x256xi32>
    %234 = arith.cmpi sge, %154, %233 : vector<8x256xi32>
    %235 = arith.extui %234 : vector<8x256xi1> to vector<8x256xi32>
    %cst_100 = arith.constant dense<0> : vector<8xi32>
    %236 = vector.multi_reduction <add>, %235, %cst_100 [1] : vector<8x256xi32> to vector<8xi32>
    %237 = vector.shape_cast %236 : vector<8xi32> to vector<8x1xi32>
    %238 = arith.cmpi sge, %237, %151 : vector<8x1xi32>
    %239 = arith.extui %238 : vector<8x1xi1> to vector<8x1xi32>
    %240 = arith.addi %230, %239 : vector<8x1xi32>
    %c67108864_i32 = arith.constant 67108864 : i32
    %241 = vector.broadcast %c67108864_i32 : i32 to vector<8x1xi32>
    %242 = arith.ori %229, %241 : vector<8x1xi32>
    %243 = vector.broadcast %242 : vector<8x1xi32> to vector<8x256xi32>
    %244 = arith.cmpi sge, %154, %243 : vector<8x256xi32>
    %245 = arith.extui %244 : vector<8x256xi1> to vector<8x256xi32>
    %cst_101 = arith.constant dense<0> : vector<8xi32>
    %246 = vector.multi_reduction <add>, %245, %cst_101 [1] : vector<8x256xi32> to vector<8xi32>
    %247 = vector.shape_cast %246 : vector<8xi32> to vector<8x1xi32>
    %248 = arith.cmpi sge, %247, %151 : vector<8x1xi32>
    %249 = arith.extui %248 : vector<8x1xi1> to vector<8x1xi32>
    %250 = arith.addi %240, %249 : vector<8x1xi32>
    %c100663296_i32 = arith.constant 100663296 : i32
    %251 = vector.broadcast %c100663296_i32 : i32 to vector<8x1xi32>
    %252 = arith.ori %229, %251 : vector<8x1xi32>
    %253 = vector.broadcast %252 : vector<8x1xi32> to vector<8x256xi32>
    %254 = arith.cmpi sge, %154, %253 : vector<8x256xi32>
    %255 = arith.extui %254 : vector<8x256xi1> to vector<8x256xi32>
    %cst_102 = arith.constant dense<0> : vector<8xi32>
    %256 = vector.multi_reduction <add>, %255, %cst_102 [1] : vector<8x256xi32> to vector<8xi32>
    %257 = vector.shape_cast %256 : vector<8xi32> to vector<8x1xi32>
    %258 = arith.cmpi sge, %257, %151 : vector<8x1xi32>
    %259 = arith.extui %258 : vector<8x1xi1> to vector<8x1xi32>
    %260 = arith.addi %250, %259 : vector<8x1xi32>
    %c134217728_i32 = arith.constant 134217728 : i32
    %261 = vector.broadcast %c134217728_i32 : i32 to vector<8x1xi32>
    %262 = arith.ori %229, %261 : vector<8x1xi32>
    %263 = vector.broadcast %262 : vector<8x1xi32> to vector<8x256xi32>
    %264 = arith.cmpi sge, %154, %263 : vector<8x256xi32>
    %265 = arith.extui %264 : vector<8x256xi1> to vector<8x256xi32>
    %cst_103 = arith.constant dense<0> : vector<8xi32>
    %266 = vector.multi_reduction <add>, %265, %cst_103 [1] : vector<8x256xi32> to vector<8xi32>
    %267 = vector.shape_cast %266 : vector<8xi32> to vector<8x1xi32>
    %268 = arith.cmpi sge, %267, %151 : vector<8x1xi32>
    %269 = arith.extui %268 : vector<8x1xi1> to vector<8x1xi32>
    %270 = arith.addi %260, %269 : vector<8x1xi32>
    %c167772160_i32 = arith.constant 167772160 : i32
    %271 = vector.broadcast %c167772160_i32 : i32 to vector<8x1xi32>
    %272 = arith.ori %229, %271 : vector<8x1xi32>
    %273 = vector.broadcast %272 : vector<8x1xi32> to vector<8x256xi32>
    %274 = arith.cmpi sge, %154, %273 : vector<8x256xi32>
    %275 = arith.extui %274 : vector<8x256xi1> to vector<8x256xi32>
    %cst_104 = arith.constant dense<0> : vector<8xi32>
    %276 = vector.multi_reduction <add>, %275, %cst_104 [1] : vector<8x256xi32> to vector<8xi32>
    %277 = vector.shape_cast %276 : vector<8xi32> to vector<8x1xi32>
    %278 = arith.cmpi sge, %277, %151 : vector<8x1xi32>
    %279 = arith.extui %278 : vector<8x1xi1> to vector<8x1xi32>
    %280 = arith.addi %270, %279 : vector<8x1xi32>
    %c201326592_i32 = arith.constant 201326592 : i32
    %281 = vector.broadcast %c201326592_i32 : i32 to vector<8x1xi32>
    %282 = arith.ori %229, %281 : vector<8x1xi32>
    %283 = vector.broadcast %282 : vector<8x1xi32> to vector<8x256xi32>
    %284 = arith.cmpi sge, %154, %283 : vector<8x256xi32>
    %285 = arith.extui %284 : vector<8x256xi1> to vector<8x256xi32>
    %cst_105 = arith.constant dense<0> : vector<8xi32>
    %286 = vector.multi_reduction <add>, %285, %cst_105 [1] : vector<8x256xi32> to vector<8xi32>
    %287 = vector.shape_cast %286 : vector<8xi32> to vector<8x1xi32>
    %288 = arith.cmpi sge, %287, %151 : vector<8x1xi32>
    %289 = arith.extui %288 : vector<8x1xi1> to vector<8x1xi32>
    %290 = arith.addi %280, %289 : vector<8x1xi32>
    %c234881024_i32 = arith.constant 234881024 : i32
    %291 = vector.broadcast %c234881024_i32 : i32 to vector<8x1xi32>
    %292 = arith.ori %229, %291 : vector<8x1xi32>
    %293 = vector.broadcast %292 : vector<8x1xi32> to vector<8x256xi32>
    %294 = arith.cmpi sge, %154, %293 : vector<8x256xi32>
    %295 = arith.extui %294 : vector<8x256xi1> to vector<8x256xi32>
    %cst_106 = arith.constant dense<0> : vector<8xi32>
    %296 = vector.multi_reduction <add>, %295, %cst_106 [1] : vector<8x256xi32> to vector<8xi32>
    %297 = vector.shape_cast %296 : vector<8xi32> to vector<8x1xi32>
    %298 = arith.cmpi sge, %297, %151 : vector<8x1xi32>
    %299 = arith.extui %298 : vector<8x1xi1> to vector<8x1xi32>
    %300 = arith.addi %290, %299 : vector<8x1xi32>
    %c33554432_i32_107 = arith.constant 33554432 : i32
    %301 = vector.broadcast %c33554432_i32_107 : i32 to vector<8x1xi32>
    %302 = arith.muli %300, %301 : vector<8x1xi32>
    %303 = arith.ori %229, %302 : vector<8x1xi32>
    %c0_i32_108 = arith.constant 0 : i32
    %304 = vector.broadcast %c0_i32_108 : i32 to vector<8x1xi32>
    %c4194304_i32 = arith.constant 4194304 : i32
    %305 = vector.broadcast %c4194304_i32 : i32 to vector<8x1xi32>
    %306 = arith.ori %303, %305 : vector<8x1xi32>
    %307 = vector.broadcast %306 : vector<8x1xi32> to vector<8x256xi32>
    %308 = arith.cmpi sge, %154, %307 : vector<8x256xi32>
    %309 = arith.extui %308 : vector<8x256xi1> to vector<8x256xi32>
    %cst_109 = arith.constant dense<0> : vector<8xi32>
    %310 = vector.multi_reduction <add>, %309, %cst_109 [1] : vector<8x256xi32> to vector<8xi32>
    %311 = vector.shape_cast %310 : vector<8xi32> to vector<8x1xi32>
    %312 = arith.cmpi sge, %311, %151 : vector<8x1xi32>
    %313 = arith.extui %312 : vector<8x1xi1> to vector<8x1xi32>
    %314 = arith.addi %304, %313 : vector<8x1xi32>
    %c8388608_i32 = arith.constant 8388608 : i32
    %315 = vector.broadcast %c8388608_i32 : i32 to vector<8x1xi32>
    %316 = arith.ori %303, %315 : vector<8x1xi32>
    %317 = vector.broadcast %316 : vector<8x1xi32> to vector<8x256xi32>
    %318 = arith.cmpi sge, %154, %317 : vector<8x256xi32>
    %319 = arith.extui %318 : vector<8x256xi1> to vector<8x256xi32>
    %cst_110 = arith.constant dense<0> : vector<8xi32>
    %320 = vector.multi_reduction <add>, %319, %cst_110 [1] : vector<8x256xi32> to vector<8xi32>
    %321 = vector.shape_cast %320 : vector<8xi32> to vector<8x1xi32>
    %322 = arith.cmpi sge, %321, %151 : vector<8x1xi32>
    %323 = arith.extui %322 : vector<8x1xi1> to vector<8x1xi32>
    %324 = arith.addi %314, %323 : vector<8x1xi32>
    %c12582912_i32 = arith.constant 12582912 : i32
    %325 = vector.broadcast %c12582912_i32 : i32 to vector<8x1xi32>
    %326 = arith.ori %303, %325 : vector<8x1xi32>
    %327 = vector.broadcast %326 : vector<8x1xi32> to vector<8x256xi32>
    %328 = arith.cmpi sge, %154, %327 : vector<8x256xi32>
    %329 = arith.extui %328 : vector<8x256xi1> to vector<8x256xi32>
    %cst_111 = arith.constant dense<0> : vector<8xi32>
    %330 = vector.multi_reduction <add>, %329, %cst_111 [1] : vector<8x256xi32> to vector<8xi32>
    %331 = vector.shape_cast %330 : vector<8xi32> to vector<8x1xi32>
    %332 = arith.cmpi sge, %331, %151 : vector<8x1xi32>
    %333 = arith.extui %332 : vector<8x1xi1> to vector<8x1xi32>
    %334 = arith.addi %324, %333 : vector<8x1xi32>
    %c16777216_i32 = arith.constant 16777216 : i32
    %335 = vector.broadcast %c16777216_i32 : i32 to vector<8x1xi32>
    %336 = arith.ori %303, %335 : vector<8x1xi32>
    %337 = vector.broadcast %336 : vector<8x1xi32> to vector<8x256xi32>
    %338 = arith.cmpi sge, %154, %337 : vector<8x256xi32>
    %339 = arith.extui %338 : vector<8x256xi1> to vector<8x256xi32>
    %cst_112 = arith.constant dense<0> : vector<8xi32>
    %340 = vector.multi_reduction <add>, %339, %cst_112 [1] : vector<8x256xi32> to vector<8xi32>
    %341 = vector.shape_cast %340 : vector<8xi32> to vector<8x1xi32>
    %342 = arith.cmpi sge, %341, %151 : vector<8x1xi32>
    %343 = arith.extui %342 : vector<8x1xi1> to vector<8x1xi32>
    %344 = arith.addi %334, %343 : vector<8x1xi32>
    %c20971520_i32 = arith.constant 20971520 : i32
    %345 = vector.broadcast %c20971520_i32 : i32 to vector<8x1xi32>
    %346 = arith.ori %303, %345 : vector<8x1xi32>
    %347 = vector.broadcast %346 : vector<8x1xi32> to vector<8x256xi32>
    %348 = arith.cmpi sge, %154, %347 : vector<8x256xi32>
    %349 = arith.extui %348 : vector<8x256xi1> to vector<8x256xi32>
    %cst_113 = arith.constant dense<0> : vector<8xi32>
    %350 = vector.multi_reduction <add>, %349, %cst_113 [1] : vector<8x256xi32> to vector<8xi32>
    %351 = vector.shape_cast %350 : vector<8xi32> to vector<8x1xi32>
    %352 = arith.cmpi sge, %351, %151 : vector<8x1xi32>
    %353 = arith.extui %352 : vector<8x1xi1> to vector<8x1xi32>
    %354 = arith.addi %344, %353 : vector<8x1xi32>
    %c25165824_i32 = arith.constant 25165824 : i32
    %355 = vector.broadcast %c25165824_i32 : i32 to vector<8x1xi32>
    %356 = arith.ori %303, %355 : vector<8x1xi32>
    %357 = vector.broadcast %356 : vector<8x1xi32> to vector<8x256xi32>
    %358 = arith.cmpi sge, %154, %357 : vector<8x256xi32>
    %359 = arith.extui %358 : vector<8x256xi1> to vector<8x256xi32>
    %cst_114 = arith.constant dense<0> : vector<8xi32>
    %360 = vector.multi_reduction <add>, %359, %cst_114 [1] : vector<8x256xi32> to vector<8xi32>
    %361 = vector.shape_cast %360 : vector<8xi32> to vector<8x1xi32>
    %362 = arith.cmpi sge, %361, %151 : vector<8x1xi32>
    %363 = arith.extui %362 : vector<8x1xi1> to vector<8x1xi32>
    %364 = arith.addi %354, %363 : vector<8x1xi32>
    %c29360128_i32 = arith.constant 29360128 : i32
    %365 = vector.broadcast %c29360128_i32 : i32 to vector<8x1xi32>
    %366 = arith.ori %303, %365 : vector<8x1xi32>
    %367 = vector.broadcast %366 : vector<8x1xi32> to vector<8x256xi32>
    %368 = arith.cmpi sge, %154, %367 : vector<8x256xi32>
    %369 = arith.extui %368 : vector<8x256xi1> to vector<8x256xi32>
    %cst_115 = arith.constant dense<0> : vector<8xi32>
    %370 = vector.multi_reduction <add>, %369, %cst_115 [1] : vector<8x256xi32> to vector<8xi32>
    %371 = vector.shape_cast %370 : vector<8xi32> to vector<8x1xi32>
    %372 = arith.cmpi sge, %371, %151 : vector<8x1xi32>
    %373 = arith.extui %372 : vector<8x1xi1> to vector<8x1xi32>
    %374 = arith.addi %364, %373 : vector<8x1xi32>
    %c4194304_i32_116 = arith.constant 4194304 : i32
    %375 = vector.broadcast %c4194304_i32_116 : i32 to vector<8x1xi32>
    %376 = arith.muli %374, %375 : vector<8x1xi32>
    %377 = arith.ori %303, %376 : vector<8x1xi32>
    %c0_i32_117 = arith.constant 0 : i32
    %378 = vector.broadcast %c0_i32_117 : i32 to vector<8x1xi32>
    %c524288_i32 = arith.constant 524288 : i32
    %379 = vector.broadcast %c524288_i32 : i32 to vector<8x1xi32>
    %380 = arith.ori %377, %379 : vector<8x1xi32>
    %381 = vector.broadcast %380 : vector<8x1xi32> to vector<8x256xi32>
    %382 = arith.cmpi sge, %154, %381 : vector<8x256xi32>
    %383 = arith.extui %382 : vector<8x256xi1> to vector<8x256xi32>
    %cst_118 = arith.constant dense<0> : vector<8xi32>
    %384 = vector.multi_reduction <add>, %383, %cst_118 [1] : vector<8x256xi32> to vector<8xi32>
    %385 = vector.shape_cast %384 : vector<8xi32> to vector<8x1xi32>
    %386 = arith.cmpi sge, %385, %151 : vector<8x1xi32>
    %387 = arith.extui %386 : vector<8x1xi1> to vector<8x1xi32>
    %388 = arith.addi %378, %387 : vector<8x1xi32>
    %c1048576_i32 = arith.constant 1048576 : i32
    %389 = vector.broadcast %c1048576_i32 : i32 to vector<8x1xi32>
    %390 = arith.ori %377, %389 : vector<8x1xi32>
    %391 = vector.broadcast %390 : vector<8x1xi32> to vector<8x256xi32>
    %392 = arith.cmpi sge, %154, %391 : vector<8x256xi32>
    %393 = arith.extui %392 : vector<8x256xi1> to vector<8x256xi32>
    %cst_119 = arith.constant dense<0> : vector<8xi32>
    %394 = vector.multi_reduction <add>, %393, %cst_119 [1] : vector<8x256xi32> to vector<8xi32>
    %395 = vector.shape_cast %394 : vector<8xi32> to vector<8x1xi32>
    %396 = arith.cmpi sge, %395, %151 : vector<8x1xi32>
    %397 = arith.extui %396 : vector<8x1xi1> to vector<8x1xi32>
    %398 = arith.addi %388, %397 : vector<8x1xi32>
    %c1572864_i32 = arith.constant 1572864 : i32
    %399 = vector.broadcast %c1572864_i32 : i32 to vector<8x1xi32>
    %400 = arith.ori %377, %399 : vector<8x1xi32>
    %401 = vector.broadcast %400 : vector<8x1xi32> to vector<8x256xi32>
    %402 = arith.cmpi sge, %154, %401 : vector<8x256xi32>
    %403 = arith.extui %402 : vector<8x256xi1> to vector<8x256xi32>
    %cst_120 = arith.constant dense<0> : vector<8xi32>
    %404 = vector.multi_reduction <add>, %403, %cst_120 [1] : vector<8x256xi32> to vector<8xi32>
    %405 = vector.shape_cast %404 : vector<8xi32> to vector<8x1xi32>
    %406 = arith.cmpi sge, %405, %151 : vector<8x1xi32>
    %407 = arith.extui %406 : vector<8x1xi1> to vector<8x1xi32>
    %408 = arith.addi %398, %407 : vector<8x1xi32>
    %c2097152_i32 = arith.constant 2097152 : i32
    %409 = vector.broadcast %c2097152_i32 : i32 to vector<8x1xi32>
    %410 = arith.ori %377, %409 : vector<8x1xi32>
    %411 = vector.broadcast %410 : vector<8x1xi32> to vector<8x256xi32>
    %412 = arith.cmpi sge, %154, %411 : vector<8x256xi32>
    %413 = arith.extui %412 : vector<8x256xi1> to vector<8x256xi32>
    %cst_121 = arith.constant dense<0> : vector<8xi32>
    %414 = vector.multi_reduction <add>, %413, %cst_121 [1] : vector<8x256xi32> to vector<8xi32>
    %415 = vector.shape_cast %414 : vector<8xi32> to vector<8x1xi32>
    %416 = arith.cmpi sge, %415, %151 : vector<8x1xi32>
    %417 = arith.extui %416 : vector<8x1xi1> to vector<8x1xi32>
    %418 = arith.addi %408, %417 : vector<8x1xi32>
    %c2621440_i32 = arith.constant 2621440 : i32
    %419 = vector.broadcast %c2621440_i32 : i32 to vector<8x1xi32>
    %420 = arith.ori %377, %419 : vector<8x1xi32>
    %421 = vector.broadcast %420 : vector<8x1xi32> to vector<8x256xi32>
    %422 = arith.cmpi sge, %154, %421 : vector<8x256xi32>
    %423 = arith.extui %422 : vector<8x256xi1> to vector<8x256xi32>
    %cst_122 = arith.constant dense<0> : vector<8xi32>
    %424 = vector.multi_reduction <add>, %423, %cst_122 [1] : vector<8x256xi32> to vector<8xi32>
    %425 = vector.shape_cast %424 : vector<8xi32> to vector<8x1xi32>
    %426 = arith.cmpi sge, %425, %151 : vector<8x1xi32>
    %427 = arith.extui %426 : vector<8x1xi1> to vector<8x1xi32>
    %428 = arith.addi %418, %427 : vector<8x1xi32>
    %c3145728_i32 = arith.constant 3145728 : i32
    %429 = vector.broadcast %c3145728_i32 : i32 to vector<8x1xi32>
    %430 = arith.ori %377, %429 : vector<8x1xi32>
    %431 = vector.broadcast %430 : vector<8x1xi32> to vector<8x256xi32>
    %432 = arith.cmpi sge, %154, %431 : vector<8x256xi32>
    %433 = arith.extui %432 : vector<8x256xi1> to vector<8x256xi32>
    %cst_123 = arith.constant dense<0> : vector<8xi32>
    %434 = vector.multi_reduction <add>, %433, %cst_123 [1] : vector<8x256xi32> to vector<8xi32>
    %435 = vector.shape_cast %434 : vector<8xi32> to vector<8x1xi32>
    %436 = arith.cmpi sge, %435, %151 : vector<8x1xi32>
    %437 = arith.extui %436 : vector<8x1xi1> to vector<8x1xi32>
    %438 = arith.addi %428, %437 : vector<8x1xi32>
    %c3670016_i32 = arith.constant 3670016 : i32
    %439 = vector.broadcast %c3670016_i32 : i32 to vector<8x1xi32>
    %440 = arith.ori %377, %439 : vector<8x1xi32>
    %441 = vector.broadcast %440 : vector<8x1xi32> to vector<8x256xi32>
    %442 = arith.cmpi sge, %154, %441 : vector<8x256xi32>
    %443 = arith.extui %442 : vector<8x256xi1> to vector<8x256xi32>
    %cst_124 = arith.constant dense<0> : vector<8xi32>
    %444 = vector.multi_reduction <add>, %443, %cst_124 [1] : vector<8x256xi32> to vector<8xi32>
    %445 = vector.shape_cast %444 : vector<8xi32> to vector<8x1xi32>
    %446 = arith.cmpi sge, %445, %151 : vector<8x1xi32>
    %447 = arith.extui %446 : vector<8x1xi1> to vector<8x1xi32>
    %448 = arith.addi %438, %447 : vector<8x1xi32>
    %c524288_i32_125 = arith.constant 524288 : i32
    %449 = vector.broadcast %c524288_i32_125 : i32 to vector<8x1xi32>
    %450 = arith.muli %448, %449 : vector<8x1xi32>
    %451 = arith.ori %377, %450 : vector<8x1xi32>
    %c0_i32_126 = arith.constant 0 : i32
    %452 = vector.broadcast %c0_i32_126 : i32 to vector<8x1xi32>
    %c65536_i32 = arith.constant 65536 : i32
    %453 = vector.broadcast %c65536_i32 : i32 to vector<8x1xi32>
    %454 = arith.ori %451, %453 : vector<8x1xi32>
    %455 = vector.broadcast %454 : vector<8x1xi32> to vector<8x256xi32>
    %456 = arith.cmpi sge, %154, %455 : vector<8x256xi32>
    %457 = arith.extui %456 : vector<8x256xi1> to vector<8x256xi32>
    %cst_127 = arith.constant dense<0> : vector<8xi32>
    %458 = vector.multi_reduction <add>, %457, %cst_127 [1] : vector<8x256xi32> to vector<8xi32>
    %459 = vector.shape_cast %458 : vector<8xi32> to vector<8x1xi32>
    %460 = arith.cmpi sge, %459, %151 : vector<8x1xi32>
    %461 = arith.extui %460 : vector<8x1xi1> to vector<8x1xi32>
    %462 = arith.addi %452, %461 : vector<8x1xi32>
    %c131072_i32 = arith.constant 131072 : i32
    %463 = vector.broadcast %c131072_i32 : i32 to vector<8x1xi32>
    %464 = arith.ori %451, %463 : vector<8x1xi32>
    %465 = vector.broadcast %464 : vector<8x1xi32> to vector<8x256xi32>
    %466 = arith.cmpi sge, %154, %465 : vector<8x256xi32>
    %467 = arith.extui %466 : vector<8x256xi1> to vector<8x256xi32>
    %cst_128 = arith.constant dense<0> : vector<8xi32>
    %468 = vector.multi_reduction <add>, %467, %cst_128 [1] : vector<8x256xi32> to vector<8xi32>
    %469 = vector.shape_cast %468 : vector<8xi32> to vector<8x1xi32>
    %470 = arith.cmpi sge, %469, %151 : vector<8x1xi32>
    %471 = arith.extui %470 : vector<8x1xi1> to vector<8x1xi32>
    %472 = arith.addi %462, %471 : vector<8x1xi32>
    %c196608_i32 = arith.constant 196608 : i32
    %473 = vector.broadcast %c196608_i32 : i32 to vector<8x1xi32>
    %474 = arith.ori %451, %473 : vector<8x1xi32>
    %475 = vector.broadcast %474 : vector<8x1xi32> to vector<8x256xi32>
    %476 = arith.cmpi sge, %154, %475 : vector<8x256xi32>
    %477 = arith.extui %476 : vector<8x256xi1> to vector<8x256xi32>
    %cst_129 = arith.constant dense<0> : vector<8xi32>
    %478 = vector.multi_reduction <add>, %477, %cst_129 [1] : vector<8x256xi32> to vector<8xi32>
    %479 = vector.shape_cast %478 : vector<8xi32> to vector<8x1xi32>
    %480 = arith.cmpi sge, %479, %151 : vector<8x1xi32>
    %481 = arith.extui %480 : vector<8x1xi1> to vector<8x1xi32>
    %482 = arith.addi %472, %481 : vector<8x1xi32>
    %c262144_i32 = arith.constant 262144 : i32
    %483 = vector.broadcast %c262144_i32 : i32 to vector<8x1xi32>
    %484 = arith.ori %451, %483 : vector<8x1xi32>
    %485 = vector.broadcast %484 : vector<8x1xi32> to vector<8x256xi32>
    %486 = arith.cmpi sge, %154, %485 : vector<8x256xi32>
    %487 = arith.extui %486 : vector<8x256xi1> to vector<8x256xi32>
    %cst_130 = arith.constant dense<0> : vector<8xi32>
    %488 = vector.multi_reduction <add>, %487, %cst_130 [1] : vector<8x256xi32> to vector<8xi32>
    %489 = vector.shape_cast %488 : vector<8xi32> to vector<8x1xi32>
    %490 = arith.cmpi sge, %489, %151 : vector<8x1xi32>
    %491 = arith.extui %490 : vector<8x1xi1> to vector<8x1xi32>
    %492 = arith.addi %482, %491 : vector<8x1xi32>
    %c327680_i32 = arith.constant 327680 : i32
    %493 = vector.broadcast %c327680_i32 : i32 to vector<8x1xi32>
    %494 = arith.ori %451, %493 : vector<8x1xi32>
    %495 = vector.broadcast %494 : vector<8x1xi32> to vector<8x256xi32>
    %496 = arith.cmpi sge, %154, %495 : vector<8x256xi32>
    %497 = arith.extui %496 : vector<8x256xi1> to vector<8x256xi32>
    %cst_131 = arith.constant dense<0> : vector<8xi32>
    %498 = vector.multi_reduction <add>, %497, %cst_131 [1] : vector<8x256xi32> to vector<8xi32>
    %499 = vector.shape_cast %498 : vector<8xi32> to vector<8x1xi32>
    %500 = arith.cmpi sge, %499, %151 : vector<8x1xi32>
    %501 = arith.extui %500 : vector<8x1xi1> to vector<8x1xi32>
    %502 = arith.addi %492, %501 : vector<8x1xi32>
    %c393216_i32 = arith.constant 393216 : i32
    %503 = vector.broadcast %c393216_i32 : i32 to vector<8x1xi32>
    %504 = arith.ori %451, %503 : vector<8x1xi32>
    %505 = vector.broadcast %504 : vector<8x1xi32> to vector<8x256xi32>
    %506 = arith.cmpi sge, %154, %505 : vector<8x256xi32>
    %507 = arith.extui %506 : vector<8x256xi1> to vector<8x256xi32>
    %cst_132 = arith.constant dense<0> : vector<8xi32>
    %508 = vector.multi_reduction <add>, %507, %cst_132 [1] : vector<8x256xi32> to vector<8xi32>
    %509 = vector.shape_cast %508 : vector<8xi32> to vector<8x1xi32>
    %510 = arith.cmpi sge, %509, %151 : vector<8x1xi32>
    %511 = arith.extui %510 : vector<8x1xi1> to vector<8x1xi32>
    %512 = arith.addi %502, %511 : vector<8x1xi32>
    %c458752_i32 = arith.constant 458752 : i32
    %513 = vector.broadcast %c458752_i32 : i32 to vector<8x1xi32>
    %514 = arith.ori %451, %513 : vector<8x1xi32>
    %515 = vector.broadcast %514 : vector<8x1xi32> to vector<8x256xi32>
    %516 = arith.cmpi sge, %154, %515 : vector<8x256xi32>
    %517 = arith.extui %516 : vector<8x256xi1> to vector<8x256xi32>
    %cst_133 = arith.constant dense<0> : vector<8xi32>
    %518 = vector.multi_reduction <add>, %517, %cst_133 [1] : vector<8x256xi32> to vector<8xi32>
    %519 = vector.shape_cast %518 : vector<8xi32> to vector<8x1xi32>
    %520 = arith.cmpi sge, %519, %151 : vector<8x1xi32>
    %521 = arith.extui %520 : vector<8x1xi1> to vector<8x1xi32>
    %522 = arith.addi %512, %521 : vector<8x1xi32>
    %c65536_i32_134 = arith.constant 65536 : i32
    %523 = vector.broadcast %c65536_i32_134 : i32 to vector<8x1xi32>
    %524 = arith.muli %522, %523 : vector<8x1xi32>
    %525 = arith.ori %451, %524 : vector<8x1xi32>
    %c0_i32_135 = arith.constant 0 : i32
    %526 = vector.broadcast %c0_i32_135 : i32 to vector<8x1xi32>
    %c8192_i32 = arith.constant 8192 : i32
    %527 = vector.broadcast %c8192_i32 : i32 to vector<8x1xi32>
    %528 = arith.ori %525, %527 : vector<8x1xi32>
    %529 = vector.broadcast %528 : vector<8x1xi32> to vector<8x256xi32>
    %530 = arith.cmpi sge, %154, %529 : vector<8x256xi32>
    %531 = arith.extui %530 : vector<8x256xi1> to vector<8x256xi32>
    %cst_136 = arith.constant dense<0> : vector<8xi32>
    %532 = vector.multi_reduction <add>, %531, %cst_136 [1] : vector<8x256xi32> to vector<8xi32>
    %533 = vector.shape_cast %532 : vector<8xi32> to vector<8x1xi32>
    %534 = arith.cmpi sge, %533, %151 : vector<8x1xi32>
    %535 = arith.extui %534 : vector<8x1xi1> to vector<8x1xi32>
    %536 = arith.addi %526, %535 : vector<8x1xi32>
    %c16384_i32 = arith.constant 16384 : i32
    %537 = vector.broadcast %c16384_i32 : i32 to vector<8x1xi32>
    %538 = arith.ori %525, %537 : vector<8x1xi32>
    %539 = vector.broadcast %538 : vector<8x1xi32> to vector<8x256xi32>
    %540 = arith.cmpi sge, %154, %539 : vector<8x256xi32>
    %541 = arith.extui %540 : vector<8x256xi1> to vector<8x256xi32>
    %cst_137 = arith.constant dense<0> : vector<8xi32>
    %542 = vector.multi_reduction <add>, %541, %cst_137 [1] : vector<8x256xi32> to vector<8xi32>
    %543 = vector.shape_cast %542 : vector<8xi32> to vector<8x1xi32>
    %544 = arith.cmpi sge, %543, %151 : vector<8x1xi32>
    %545 = arith.extui %544 : vector<8x1xi1> to vector<8x1xi32>
    %546 = arith.addi %536, %545 : vector<8x1xi32>
    %c24576_i32 = arith.constant 24576 : i32
    %547 = vector.broadcast %c24576_i32 : i32 to vector<8x1xi32>
    %548 = arith.ori %525, %547 : vector<8x1xi32>
    %549 = vector.broadcast %548 : vector<8x1xi32> to vector<8x256xi32>
    %550 = arith.cmpi sge, %154, %549 : vector<8x256xi32>
    %551 = arith.extui %550 : vector<8x256xi1> to vector<8x256xi32>
    %cst_138 = arith.constant dense<0> : vector<8xi32>
    %552 = vector.multi_reduction <add>, %551, %cst_138 [1] : vector<8x256xi32> to vector<8xi32>
    %553 = vector.shape_cast %552 : vector<8xi32> to vector<8x1xi32>
    %554 = arith.cmpi sge, %553, %151 : vector<8x1xi32>
    %555 = arith.extui %554 : vector<8x1xi1> to vector<8x1xi32>
    %556 = arith.addi %546, %555 : vector<8x1xi32>
    %c32768_i32 = arith.constant 32768 : i32
    %557 = vector.broadcast %c32768_i32 : i32 to vector<8x1xi32>
    %558 = arith.ori %525, %557 : vector<8x1xi32>
    %559 = vector.broadcast %558 : vector<8x1xi32> to vector<8x256xi32>
    %560 = arith.cmpi sge, %154, %559 : vector<8x256xi32>
    %561 = arith.extui %560 : vector<8x256xi1> to vector<8x256xi32>
    %cst_139 = arith.constant dense<0> : vector<8xi32>
    %562 = vector.multi_reduction <add>, %561, %cst_139 [1] : vector<8x256xi32> to vector<8xi32>
    %563 = vector.shape_cast %562 : vector<8xi32> to vector<8x1xi32>
    %564 = arith.cmpi sge, %563, %151 : vector<8x1xi32>
    %565 = arith.extui %564 : vector<8x1xi1> to vector<8x1xi32>
    %566 = arith.addi %556, %565 : vector<8x1xi32>
    %c40960_i32 = arith.constant 40960 : i32
    %567 = vector.broadcast %c40960_i32 : i32 to vector<8x1xi32>
    %568 = arith.ori %525, %567 : vector<8x1xi32>
    %569 = vector.broadcast %568 : vector<8x1xi32> to vector<8x256xi32>
    %570 = arith.cmpi sge, %154, %569 : vector<8x256xi32>
    %571 = arith.extui %570 : vector<8x256xi1> to vector<8x256xi32>
    %cst_140 = arith.constant dense<0> : vector<8xi32>
    %572 = vector.multi_reduction <add>, %571, %cst_140 [1] : vector<8x256xi32> to vector<8xi32>
    %573 = vector.shape_cast %572 : vector<8xi32> to vector<8x1xi32>
    %574 = arith.cmpi sge, %573, %151 : vector<8x1xi32>
    %575 = arith.extui %574 : vector<8x1xi1> to vector<8x1xi32>
    %576 = arith.addi %566, %575 : vector<8x1xi32>
    %c49152_i32 = arith.constant 49152 : i32
    %577 = vector.broadcast %c49152_i32 : i32 to vector<8x1xi32>
    %578 = arith.ori %525, %577 : vector<8x1xi32>
    %579 = vector.broadcast %578 : vector<8x1xi32> to vector<8x256xi32>
    %580 = arith.cmpi sge, %154, %579 : vector<8x256xi32>
    %581 = arith.extui %580 : vector<8x256xi1> to vector<8x256xi32>
    %cst_141 = arith.constant dense<0> : vector<8xi32>
    %582 = vector.multi_reduction <add>, %581, %cst_141 [1] : vector<8x256xi32> to vector<8xi32>
    %583 = vector.shape_cast %582 : vector<8xi32> to vector<8x1xi32>
    %584 = arith.cmpi sge, %583, %151 : vector<8x1xi32>
    %585 = arith.extui %584 : vector<8x1xi1> to vector<8x1xi32>
    %586 = arith.addi %576, %585 : vector<8x1xi32>
    %c57344_i32 = arith.constant 57344 : i32
    %587 = vector.broadcast %c57344_i32 : i32 to vector<8x1xi32>
    %588 = arith.ori %525, %587 : vector<8x1xi32>
    %589 = vector.broadcast %588 : vector<8x1xi32> to vector<8x256xi32>
    %590 = arith.cmpi sge, %154, %589 : vector<8x256xi32>
    %591 = arith.extui %590 : vector<8x256xi1> to vector<8x256xi32>
    %cst_142 = arith.constant dense<0> : vector<8xi32>
    %592 = vector.multi_reduction <add>, %591, %cst_142 [1] : vector<8x256xi32> to vector<8xi32>
    %593 = vector.shape_cast %592 : vector<8xi32> to vector<8x1xi32>
    %594 = arith.cmpi sge, %593, %151 : vector<8x1xi32>
    %595 = arith.extui %594 : vector<8x1xi1> to vector<8x1xi32>
    %596 = arith.addi %586, %595 : vector<8x1xi32>
    %c8192_i32_143 = arith.constant 8192 : i32
    %597 = vector.broadcast %c8192_i32_143 : i32 to vector<8x1xi32>
    %598 = arith.muli %596, %597 : vector<8x1xi32>
    %599 = arith.ori %525, %598 : vector<8x1xi32>
    %c0_i32_144 = arith.constant 0 : i32
    %600 = vector.broadcast %c0_i32_144 : i32 to vector<8x1xi32>
    %c1024_i32 = arith.constant 1024 : i32
    %601 = vector.broadcast %c1024_i32 : i32 to vector<8x1xi32>
    %602 = arith.ori %599, %601 : vector<8x1xi32>
    %603 = vector.broadcast %602 : vector<8x1xi32> to vector<8x256xi32>
    %604 = arith.cmpi sge, %154, %603 : vector<8x256xi32>
    %605 = arith.extui %604 : vector<8x256xi1> to vector<8x256xi32>
    %cst_145 = arith.constant dense<0> : vector<8xi32>
    %606 = vector.multi_reduction <add>, %605, %cst_145 [1] : vector<8x256xi32> to vector<8xi32>
    %607 = vector.shape_cast %606 : vector<8xi32> to vector<8x1xi32>
    %608 = arith.cmpi sge, %607, %151 : vector<8x1xi32>
    %609 = arith.extui %608 : vector<8x1xi1> to vector<8x1xi32>
    %610 = arith.addi %600, %609 : vector<8x1xi32>
    %c2048_i32 = arith.constant 2048 : i32
    %611 = vector.broadcast %c2048_i32 : i32 to vector<8x1xi32>
    %612 = arith.ori %599, %611 : vector<8x1xi32>
    %613 = vector.broadcast %612 : vector<8x1xi32> to vector<8x256xi32>
    %614 = arith.cmpi sge, %154, %613 : vector<8x256xi32>
    %615 = arith.extui %614 : vector<8x256xi1> to vector<8x256xi32>
    %cst_146 = arith.constant dense<0> : vector<8xi32>
    %616 = vector.multi_reduction <add>, %615, %cst_146 [1] : vector<8x256xi32> to vector<8xi32>
    %617 = vector.shape_cast %616 : vector<8xi32> to vector<8x1xi32>
    %618 = arith.cmpi sge, %617, %151 : vector<8x1xi32>
    %619 = arith.extui %618 : vector<8x1xi1> to vector<8x1xi32>
    %620 = arith.addi %610, %619 : vector<8x1xi32>
    %c3072_i32 = arith.constant 3072 : i32
    %621 = vector.broadcast %c3072_i32 : i32 to vector<8x1xi32>
    %622 = arith.ori %599, %621 : vector<8x1xi32>
    %623 = vector.broadcast %622 : vector<8x1xi32> to vector<8x256xi32>
    %624 = arith.cmpi sge, %154, %623 : vector<8x256xi32>
    %625 = arith.extui %624 : vector<8x256xi1> to vector<8x256xi32>
    %cst_147 = arith.constant dense<0> : vector<8xi32>
    %626 = vector.multi_reduction <add>, %625, %cst_147 [1] : vector<8x256xi32> to vector<8xi32>
    %627 = vector.shape_cast %626 : vector<8xi32> to vector<8x1xi32>
    %628 = arith.cmpi sge, %627, %151 : vector<8x1xi32>
    %629 = arith.extui %628 : vector<8x1xi1> to vector<8x1xi32>
    %630 = arith.addi %620, %629 : vector<8x1xi32>
    %c4096_i32 = arith.constant 4096 : i32
    %631 = vector.broadcast %c4096_i32 : i32 to vector<8x1xi32>
    %632 = arith.ori %599, %631 : vector<8x1xi32>
    %633 = vector.broadcast %632 : vector<8x1xi32> to vector<8x256xi32>
    %634 = arith.cmpi sge, %154, %633 : vector<8x256xi32>
    %635 = arith.extui %634 : vector<8x256xi1> to vector<8x256xi32>
    %cst_148 = arith.constant dense<0> : vector<8xi32>
    %636 = vector.multi_reduction <add>, %635, %cst_148 [1] : vector<8x256xi32> to vector<8xi32>
    %637 = vector.shape_cast %636 : vector<8xi32> to vector<8x1xi32>
    %638 = arith.cmpi sge, %637, %151 : vector<8x1xi32>
    %639 = arith.extui %638 : vector<8x1xi1> to vector<8x1xi32>
    %640 = arith.addi %630, %639 : vector<8x1xi32>
    %c5120_i32 = arith.constant 5120 : i32
    %641 = vector.broadcast %c5120_i32 : i32 to vector<8x1xi32>
    %642 = arith.ori %599, %641 : vector<8x1xi32>
    %643 = vector.broadcast %642 : vector<8x1xi32> to vector<8x256xi32>
    %644 = arith.cmpi sge, %154, %643 : vector<8x256xi32>
    %645 = arith.extui %644 : vector<8x256xi1> to vector<8x256xi32>
    %cst_149 = arith.constant dense<0> : vector<8xi32>
    %646 = vector.multi_reduction <add>, %645, %cst_149 [1] : vector<8x256xi32> to vector<8xi32>
    %647 = vector.shape_cast %646 : vector<8xi32> to vector<8x1xi32>
    %648 = arith.cmpi sge, %647, %151 : vector<8x1xi32>
    %649 = arith.extui %648 : vector<8x1xi1> to vector<8x1xi32>
    %650 = arith.addi %640, %649 : vector<8x1xi32>
    %c6144_i32 = arith.constant 6144 : i32
    %651 = vector.broadcast %c6144_i32 : i32 to vector<8x1xi32>
    %652 = arith.ori %599, %651 : vector<8x1xi32>
    %653 = vector.broadcast %652 : vector<8x1xi32> to vector<8x256xi32>
    %654 = arith.cmpi sge, %154, %653 : vector<8x256xi32>
    %655 = arith.extui %654 : vector<8x256xi1> to vector<8x256xi32>
    %cst_150 = arith.constant dense<0> : vector<8xi32>
    %656 = vector.multi_reduction <add>, %655, %cst_150 [1] : vector<8x256xi32> to vector<8xi32>
    %657 = vector.shape_cast %656 : vector<8xi32> to vector<8x1xi32>
    %658 = arith.cmpi sge, %657, %151 : vector<8x1xi32>
    %659 = arith.extui %658 : vector<8x1xi1> to vector<8x1xi32>
    %660 = arith.addi %650, %659 : vector<8x1xi32>
    %c7168_i32 = arith.constant 7168 : i32
    %661 = vector.broadcast %c7168_i32 : i32 to vector<8x1xi32>
    %662 = arith.ori %599, %661 : vector<8x1xi32>
    %663 = vector.broadcast %662 : vector<8x1xi32> to vector<8x256xi32>
    %664 = arith.cmpi sge, %154, %663 : vector<8x256xi32>
    %665 = arith.extui %664 : vector<8x256xi1> to vector<8x256xi32>
    %cst_151 = arith.constant dense<0> : vector<8xi32>
    %666 = vector.multi_reduction <add>, %665, %cst_151 [1] : vector<8x256xi32> to vector<8xi32>
    %667 = vector.shape_cast %666 : vector<8xi32> to vector<8x1xi32>
    %668 = arith.cmpi sge, %667, %151 : vector<8x1xi32>
    %669 = arith.extui %668 : vector<8x1xi1> to vector<8x1xi32>
    %670 = arith.addi %660, %669 : vector<8x1xi32>
    %c1024_i32_152 = arith.constant 1024 : i32
    %671 = vector.broadcast %c1024_i32_152 : i32 to vector<8x1xi32>
    %672 = arith.muli %670, %671 : vector<8x1xi32>
    %673 = arith.ori %599, %672 : vector<8x1xi32>
    %c0_i32_153 = arith.constant 0 : i32
    %674 = vector.broadcast %c0_i32_153 : i32 to vector<8x1xi32>
    %c128_i32 = arith.constant 128 : i32
    %675 = vector.broadcast %c128_i32 : i32 to vector<8x1xi32>
    %676 = arith.ori %673, %675 : vector<8x1xi32>
    %677 = vector.broadcast %676 : vector<8x1xi32> to vector<8x256xi32>
    %678 = arith.cmpi sge, %154, %677 : vector<8x256xi32>
    %679 = arith.extui %678 : vector<8x256xi1> to vector<8x256xi32>
    %cst_154 = arith.constant dense<0> : vector<8xi32>
    %680 = vector.multi_reduction <add>, %679, %cst_154 [1] : vector<8x256xi32> to vector<8xi32>
    %681 = vector.shape_cast %680 : vector<8xi32> to vector<8x1xi32>
    %682 = arith.cmpi sge, %681, %151 : vector<8x1xi32>
    %683 = arith.extui %682 : vector<8x1xi1> to vector<8x1xi32>
    %684 = arith.addi %674, %683 : vector<8x1xi32>
    %c256_i32 = arith.constant 256 : i32
    %685 = vector.broadcast %c256_i32 : i32 to vector<8x1xi32>
    %686 = arith.ori %673, %685 : vector<8x1xi32>
    %687 = vector.broadcast %686 : vector<8x1xi32> to vector<8x256xi32>
    %688 = arith.cmpi sge, %154, %687 : vector<8x256xi32>
    %689 = arith.extui %688 : vector<8x256xi1> to vector<8x256xi32>
    %cst_155 = arith.constant dense<0> : vector<8xi32>
    %690 = vector.multi_reduction <add>, %689, %cst_155 [1] : vector<8x256xi32> to vector<8xi32>
    %691 = vector.shape_cast %690 : vector<8xi32> to vector<8x1xi32>
    %692 = arith.cmpi sge, %691, %151 : vector<8x1xi32>
    %693 = arith.extui %692 : vector<8x1xi1> to vector<8x1xi32>
    %694 = arith.addi %684, %693 : vector<8x1xi32>
    %c384_i32 = arith.constant 384 : i32
    %695 = vector.broadcast %c384_i32 : i32 to vector<8x1xi32>
    %696 = arith.ori %673, %695 : vector<8x1xi32>
    %697 = vector.broadcast %696 : vector<8x1xi32> to vector<8x256xi32>
    %698 = arith.cmpi sge, %154, %697 : vector<8x256xi32>
    %699 = arith.extui %698 : vector<8x256xi1> to vector<8x256xi32>
    %cst_156 = arith.constant dense<0> : vector<8xi32>
    %700 = vector.multi_reduction <add>, %699, %cst_156 [1] : vector<8x256xi32> to vector<8xi32>
    %701 = vector.shape_cast %700 : vector<8xi32> to vector<8x1xi32>
    %702 = arith.cmpi sge, %701, %151 : vector<8x1xi32>
    %703 = arith.extui %702 : vector<8x1xi1> to vector<8x1xi32>
    %704 = arith.addi %694, %703 : vector<8x1xi32>
    %c512_i32 = arith.constant 512 : i32
    %705 = vector.broadcast %c512_i32 : i32 to vector<8x1xi32>
    %706 = arith.ori %673, %705 : vector<8x1xi32>
    %707 = vector.broadcast %706 : vector<8x1xi32> to vector<8x256xi32>
    %708 = arith.cmpi sge, %154, %707 : vector<8x256xi32>
    %709 = arith.extui %708 : vector<8x256xi1> to vector<8x256xi32>
    %cst_157 = arith.constant dense<0> : vector<8xi32>
    %710 = vector.multi_reduction <add>, %709, %cst_157 [1] : vector<8x256xi32> to vector<8xi32>
    %711 = vector.shape_cast %710 : vector<8xi32> to vector<8x1xi32>
    %712 = arith.cmpi sge, %711, %151 : vector<8x1xi32>
    %713 = arith.extui %712 : vector<8x1xi1> to vector<8x1xi32>
    %714 = arith.addi %704, %713 : vector<8x1xi32>
    %c640_i32 = arith.constant 640 : i32
    %715 = vector.broadcast %c640_i32 : i32 to vector<8x1xi32>
    %716 = arith.ori %673, %715 : vector<8x1xi32>
    %717 = vector.broadcast %716 : vector<8x1xi32> to vector<8x256xi32>
    %718 = arith.cmpi sge, %154, %717 : vector<8x256xi32>
    %719 = arith.extui %718 : vector<8x256xi1> to vector<8x256xi32>
    %cst_158 = arith.constant dense<0> : vector<8xi32>
    %720 = vector.multi_reduction <add>, %719, %cst_158 [1] : vector<8x256xi32> to vector<8xi32>
    %721 = vector.shape_cast %720 : vector<8xi32> to vector<8x1xi32>
    %722 = arith.cmpi sge, %721, %151 : vector<8x1xi32>
    %723 = arith.extui %722 : vector<8x1xi1> to vector<8x1xi32>
    %724 = arith.addi %714, %723 : vector<8x1xi32>
    %c768_i32 = arith.constant 768 : i32
    %725 = vector.broadcast %c768_i32 : i32 to vector<8x1xi32>
    %726 = arith.ori %673, %725 : vector<8x1xi32>
    %727 = vector.broadcast %726 : vector<8x1xi32> to vector<8x256xi32>
    %728 = arith.cmpi sge, %154, %727 : vector<8x256xi32>
    %729 = arith.extui %728 : vector<8x256xi1> to vector<8x256xi32>
    %cst_159 = arith.constant dense<0> : vector<8xi32>
    %730 = vector.multi_reduction <add>, %729, %cst_159 [1] : vector<8x256xi32> to vector<8xi32>
    %731 = vector.shape_cast %730 : vector<8xi32> to vector<8x1xi32>
    %732 = arith.cmpi sge, %731, %151 : vector<8x1xi32>
    %733 = arith.extui %732 : vector<8x1xi1> to vector<8x1xi32>
    %734 = arith.addi %724, %733 : vector<8x1xi32>
    %c896_i32 = arith.constant 896 : i32
    %735 = vector.broadcast %c896_i32 : i32 to vector<8x1xi32>
    %736 = arith.ori %673, %735 : vector<8x1xi32>
    %737 = vector.broadcast %736 : vector<8x1xi32> to vector<8x256xi32>
    %738 = arith.cmpi sge, %154, %737 : vector<8x256xi32>
    %739 = arith.extui %738 : vector<8x256xi1> to vector<8x256xi32>
    %cst_160 = arith.constant dense<0> : vector<8xi32>
    %740 = vector.multi_reduction <add>, %739, %cst_160 [1] : vector<8x256xi32> to vector<8xi32>
    %741 = vector.shape_cast %740 : vector<8xi32> to vector<8x1xi32>
    %742 = arith.cmpi sge, %741, %151 : vector<8x1xi32>
    %743 = arith.extui %742 : vector<8x1xi1> to vector<8x1xi32>
    %744 = arith.addi %734, %743 : vector<8x1xi32>
    %c128_i32_161 = arith.constant 128 : i32
    %745 = vector.broadcast %c128_i32_161 : i32 to vector<8x1xi32>
    %746 = arith.muli %744, %745 : vector<8x1xi32>
    %747 = arith.ori %673, %746 : vector<8x1xi32>
    %c0_i32_162 = arith.constant 0 : i32
    %748 = vector.broadcast %c0_i32_162 : i32 to vector<8x1xi32>
    %c16_i32 = arith.constant 16 : i32
    %749 = vector.broadcast %c16_i32 : i32 to vector<8x1xi32>
    %750 = arith.ori %747, %749 : vector<8x1xi32>
    %751 = vector.broadcast %750 : vector<8x1xi32> to vector<8x256xi32>
    %752 = arith.cmpi sge, %154, %751 : vector<8x256xi32>
    %753 = arith.extui %752 : vector<8x256xi1> to vector<8x256xi32>
    %cst_163 = arith.constant dense<0> : vector<8xi32>
    %754 = vector.multi_reduction <add>, %753, %cst_163 [1] : vector<8x256xi32> to vector<8xi32>
    %755 = vector.shape_cast %754 : vector<8xi32> to vector<8x1xi32>
    %756 = arith.cmpi sge, %755, %151 : vector<8x1xi32>
    %757 = arith.extui %756 : vector<8x1xi1> to vector<8x1xi32>
    %758 = arith.addi %748, %757 : vector<8x1xi32>
    %c32_i32 = arith.constant 32 : i32
    %759 = vector.broadcast %c32_i32 : i32 to vector<8x1xi32>
    %760 = arith.ori %747, %759 : vector<8x1xi32>
    %761 = vector.broadcast %760 : vector<8x1xi32> to vector<8x256xi32>
    %762 = arith.cmpi sge, %154, %761 : vector<8x256xi32>
    %763 = arith.extui %762 : vector<8x256xi1> to vector<8x256xi32>
    %cst_164 = arith.constant dense<0> : vector<8xi32>
    %764 = vector.multi_reduction <add>, %763, %cst_164 [1] : vector<8x256xi32> to vector<8xi32>
    %765 = vector.shape_cast %764 : vector<8xi32> to vector<8x1xi32>
    %766 = arith.cmpi sge, %765, %151 : vector<8x1xi32>
    %767 = arith.extui %766 : vector<8x1xi1> to vector<8x1xi32>
    %768 = arith.addi %758, %767 : vector<8x1xi32>
    %c48_i32 = arith.constant 48 : i32
    %769 = vector.broadcast %c48_i32 : i32 to vector<8x1xi32>
    %770 = arith.ori %747, %769 : vector<8x1xi32>
    %771 = vector.broadcast %770 : vector<8x1xi32> to vector<8x256xi32>
    %772 = arith.cmpi sge, %154, %771 : vector<8x256xi32>
    %773 = arith.extui %772 : vector<8x256xi1> to vector<8x256xi32>
    %cst_165 = arith.constant dense<0> : vector<8xi32>
    %774 = vector.multi_reduction <add>, %773, %cst_165 [1] : vector<8x256xi32> to vector<8xi32>
    %775 = vector.shape_cast %774 : vector<8xi32> to vector<8x1xi32>
    %776 = arith.cmpi sge, %775, %151 : vector<8x1xi32>
    %777 = arith.extui %776 : vector<8x1xi1> to vector<8x1xi32>
    %778 = arith.addi %768, %777 : vector<8x1xi32>
    %c64_i32 = arith.constant 64 : i32
    %779 = vector.broadcast %c64_i32 : i32 to vector<8x1xi32>
    %780 = arith.ori %747, %779 : vector<8x1xi32>
    %781 = vector.broadcast %780 : vector<8x1xi32> to vector<8x256xi32>
    %782 = arith.cmpi sge, %154, %781 : vector<8x256xi32>
    %783 = arith.extui %782 : vector<8x256xi1> to vector<8x256xi32>
    %cst_166 = arith.constant dense<0> : vector<8xi32>
    %784 = vector.multi_reduction <add>, %783, %cst_166 [1] : vector<8x256xi32> to vector<8xi32>
    %785 = vector.shape_cast %784 : vector<8xi32> to vector<8x1xi32>
    %786 = arith.cmpi sge, %785, %151 : vector<8x1xi32>
    %787 = arith.extui %786 : vector<8x1xi1> to vector<8x1xi32>
    %788 = arith.addi %778, %787 : vector<8x1xi32>
    %c80_i32 = arith.constant 80 : i32
    %789 = vector.broadcast %c80_i32 : i32 to vector<8x1xi32>
    %790 = arith.ori %747, %789 : vector<8x1xi32>
    %791 = vector.broadcast %790 : vector<8x1xi32> to vector<8x256xi32>
    %792 = arith.cmpi sge, %154, %791 : vector<8x256xi32>
    %793 = arith.extui %792 : vector<8x256xi1> to vector<8x256xi32>
    %cst_167 = arith.constant dense<0> : vector<8xi32>
    %794 = vector.multi_reduction <add>, %793, %cst_167 [1] : vector<8x256xi32> to vector<8xi32>
    %795 = vector.shape_cast %794 : vector<8xi32> to vector<8x1xi32>
    %796 = arith.cmpi sge, %795, %151 : vector<8x1xi32>
    %797 = arith.extui %796 : vector<8x1xi1> to vector<8x1xi32>
    %798 = arith.addi %788, %797 : vector<8x1xi32>
    %c96_i32 = arith.constant 96 : i32
    %799 = vector.broadcast %c96_i32 : i32 to vector<8x1xi32>
    %800 = arith.ori %747, %799 : vector<8x1xi32>
    %801 = vector.broadcast %800 : vector<8x1xi32> to vector<8x256xi32>
    %802 = arith.cmpi sge, %154, %801 : vector<8x256xi32>
    %803 = arith.extui %802 : vector<8x256xi1> to vector<8x256xi32>
    %cst_168 = arith.constant dense<0> : vector<8xi32>
    %804 = vector.multi_reduction <add>, %803, %cst_168 [1] : vector<8x256xi32> to vector<8xi32>
    %805 = vector.shape_cast %804 : vector<8xi32> to vector<8x1xi32>
    %806 = arith.cmpi sge, %805, %151 : vector<8x1xi32>
    %807 = arith.extui %806 : vector<8x1xi1> to vector<8x1xi32>
    %808 = arith.addi %798, %807 : vector<8x1xi32>
    %c112_i32 = arith.constant 112 : i32
    %809 = vector.broadcast %c112_i32 : i32 to vector<8x1xi32>
    %810 = arith.ori %747, %809 : vector<8x1xi32>
    %811 = vector.broadcast %810 : vector<8x1xi32> to vector<8x256xi32>
    %812 = arith.cmpi sge, %154, %811 : vector<8x256xi32>
    %813 = arith.extui %812 : vector<8x256xi1> to vector<8x256xi32>
    %cst_169 = arith.constant dense<0> : vector<8xi32>
    %814 = vector.multi_reduction <add>, %813, %cst_169 [1] : vector<8x256xi32> to vector<8xi32>
    %815 = vector.shape_cast %814 : vector<8xi32> to vector<8x1xi32>
    %816 = arith.cmpi sge, %815, %151 : vector<8x1xi32>
    %817 = arith.extui %816 : vector<8x1xi1> to vector<8x1xi32>
    %818 = arith.addi %808, %817 : vector<8x1xi32>
    %c16_i32_170 = arith.constant 16 : i32
    %819 = vector.broadcast %c16_i32_170 : i32 to vector<8x1xi32>
    %820 = arith.muli %818, %819 : vector<8x1xi32>
    %821 = arith.ori %747, %820 : vector<8x1xi32>
    %c0_i32_171 = arith.constant 0 : i32
    %822 = vector.broadcast %c0_i32_171 : i32 to vector<8x1xi32>
    %c2_i32_172 = arith.constant 2 : i32
    %823 = vector.broadcast %c2_i32_172 : i32 to vector<8x1xi32>
    %824 = arith.ori %821, %823 : vector<8x1xi32>
    %825 = vector.broadcast %824 : vector<8x1xi32> to vector<8x256xi32>
    %826 = arith.cmpi sge, %154, %825 : vector<8x256xi32>
    %827 = arith.extui %826 : vector<8x256xi1> to vector<8x256xi32>
    %cst_173 = arith.constant dense<0> : vector<8xi32>
    %828 = vector.multi_reduction <add>, %827, %cst_173 [1] : vector<8x256xi32> to vector<8xi32>
    %829 = vector.shape_cast %828 : vector<8xi32> to vector<8x1xi32>
    %830 = arith.cmpi sge, %829, %151 : vector<8x1xi32>
    %831 = arith.extui %830 : vector<8x1xi1> to vector<8x1xi32>
    %832 = arith.addi %822, %831 : vector<8x1xi32>
    %c4_i32_174 = arith.constant 4 : i32
    %833 = vector.broadcast %c4_i32_174 : i32 to vector<8x1xi32>
    %834 = arith.ori %821, %833 : vector<8x1xi32>
    %835 = vector.broadcast %834 : vector<8x1xi32> to vector<8x256xi32>
    %836 = arith.cmpi sge, %154, %835 : vector<8x256xi32>
    %837 = arith.extui %836 : vector<8x256xi1> to vector<8x256xi32>
    %cst_175 = arith.constant dense<0> : vector<8xi32>
    %838 = vector.multi_reduction <add>, %837, %cst_175 [1] : vector<8x256xi32> to vector<8xi32>
    %839 = vector.shape_cast %838 : vector<8xi32> to vector<8x1xi32>
    %840 = arith.cmpi sge, %839, %151 : vector<8x1xi32>
    %841 = arith.extui %840 : vector<8x1xi1> to vector<8x1xi32>
    %842 = arith.addi %832, %841 : vector<8x1xi32>
    %c6_i32_176 = arith.constant 6 : i32
    %843 = vector.broadcast %c6_i32_176 : i32 to vector<8x1xi32>
    %844 = arith.ori %821, %843 : vector<8x1xi32>
    %845 = vector.broadcast %844 : vector<8x1xi32> to vector<8x256xi32>
    %846 = arith.cmpi sge, %154, %845 : vector<8x256xi32>
    %847 = arith.extui %846 : vector<8x256xi1> to vector<8x256xi32>
    %cst_177 = arith.constant dense<0> : vector<8xi32>
    %848 = vector.multi_reduction <add>, %847, %cst_177 [1] : vector<8x256xi32> to vector<8xi32>
    %849 = vector.shape_cast %848 : vector<8xi32> to vector<8x1xi32>
    %850 = arith.cmpi sge, %849, %151 : vector<8x1xi32>
    %851 = arith.extui %850 : vector<8x1xi1> to vector<8x1xi32>
    %852 = arith.addi %842, %851 : vector<8x1xi32>
    %c8_i32 = arith.constant 8 : i32
    %853 = vector.broadcast %c8_i32 : i32 to vector<8x1xi32>
    %854 = arith.ori %821, %853 : vector<8x1xi32>
    %855 = vector.broadcast %854 : vector<8x1xi32> to vector<8x256xi32>
    %856 = arith.cmpi sge, %154, %855 : vector<8x256xi32>
    %857 = arith.extui %856 : vector<8x256xi1> to vector<8x256xi32>
    %cst_178 = arith.constant dense<0> : vector<8xi32>
    %858 = vector.multi_reduction <add>, %857, %cst_178 [1] : vector<8x256xi32> to vector<8xi32>
    %859 = vector.shape_cast %858 : vector<8xi32> to vector<8x1xi32>
    %860 = arith.cmpi sge, %859, %151 : vector<8x1xi32>
    %861 = arith.extui %860 : vector<8x1xi1> to vector<8x1xi32>
    %862 = arith.addi %852, %861 : vector<8x1xi32>
    %c10_i32 = arith.constant 10 : i32
    %863 = vector.broadcast %c10_i32 : i32 to vector<8x1xi32>
    %864 = arith.ori %821, %863 : vector<8x1xi32>
    %865 = vector.broadcast %864 : vector<8x1xi32> to vector<8x256xi32>
    %866 = arith.cmpi sge, %154, %865 : vector<8x256xi32>
    %867 = arith.extui %866 : vector<8x256xi1> to vector<8x256xi32>
    %cst_179 = arith.constant dense<0> : vector<8xi32>
    %868 = vector.multi_reduction <add>, %867, %cst_179 [1] : vector<8x256xi32> to vector<8xi32>
    %869 = vector.shape_cast %868 : vector<8xi32> to vector<8x1xi32>
    %870 = arith.cmpi sge, %869, %151 : vector<8x1xi32>
    %871 = arith.extui %870 : vector<8x1xi1> to vector<8x1xi32>
    %872 = arith.addi %862, %871 : vector<8x1xi32>
    %c12_i32 = arith.constant 12 : i32
    %873 = vector.broadcast %c12_i32 : i32 to vector<8x1xi32>
    %874 = arith.ori %821, %873 : vector<8x1xi32>
    %875 = vector.broadcast %874 : vector<8x1xi32> to vector<8x256xi32>
    %876 = arith.cmpi sge, %154, %875 : vector<8x256xi32>
    %877 = arith.extui %876 : vector<8x256xi1> to vector<8x256xi32>
    %cst_180 = arith.constant dense<0> : vector<8xi32>
    %878 = vector.multi_reduction <add>, %877, %cst_180 [1] : vector<8x256xi32> to vector<8xi32>
    %879 = vector.shape_cast %878 : vector<8xi32> to vector<8x1xi32>
    %880 = arith.cmpi sge, %879, %151 : vector<8x1xi32>
    %881 = arith.extui %880 : vector<8x1xi1> to vector<8x1xi32>
    %882 = arith.addi %872, %881 : vector<8x1xi32>
    %c14_i32 = arith.constant 14 : i32
    %883 = vector.broadcast %c14_i32 : i32 to vector<8x1xi32>
    %884 = arith.ori %821, %883 : vector<8x1xi32>
    %885 = vector.broadcast %884 : vector<8x1xi32> to vector<8x256xi32>
    %886 = arith.cmpi sge, %154, %885 : vector<8x256xi32>
    %887 = arith.extui %886 : vector<8x256xi1> to vector<8x256xi32>
    %cst_181 = arith.constant dense<0> : vector<8xi32>
    %888 = vector.multi_reduction <add>, %887, %cst_181 [1] : vector<8x256xi32> to vector<8xi32>
    %889 = vector.shape_cast %888 : vector<8xi32> to vector<8x1xi32>
    %890 = arith.cmpi sge, %889, %151 : vector<8x1xi32>
    %891 = arith.extui %890 : vector<8x1xi1> to vector<8x1xi32>
    %892 = arith.addi %882, %891 : vector<8x1xi32>
    %c2_i32_182 = arith.constant 2 : i32
    %893 = vector.broadcast %c2_i32_182 : i32 to vector<8x1xi32>
    %894 = arith.muli %892, %893 : vector<8x1xi32>
    %895 = arith.ori %821, %894 : vector<8x1xi32>
    %c0_i32_183 = arith.constant 0 : i32
    %896 = vector.broadcast %c0_i32_183 : i32 to vector<8x1xi32>
    %c1_i32_184 = arith.constant 1 : i32
    %897 = vector.broadcast %c1_i32_184 : i32 to vector<8x1xi32>
    %898 = arith.ori %895, %897 : vector<8x1xi32>
    %899 = vector.broadcast %898 : vector<8x1xi32> to vector<8x256xi32>
    %900 = arith.cmpi sge, %154, %899 : vector<8x256xi32>
    %901 = arith.extui %900 : vector<8x256xi1> to vector<8x256xi32>
    %cst_185 = arith.constant dense<0> : vector<8xi32>
    %902 = vector.multi_reduction <add>, %901, %cst_185 [1] : vector<8x256xi32> to vector<8xi32>
    %903 = vector.shape_cast %902 : vector<8xi32> to vector<8x1xi32>
    %904 = arith.cmpi sge, %903, %151 : vector<8x1xi32>
    %905 = arith.extui %904 : vector<8x1xi1> to vector<8x1xi32>
    %906 = arith.addi %896, %905 : vector<8x1xi32>
    %c1_i32_186 = arith.constant 1 : i32
    %907 = vector.broadcast %c1_i32_186 : i32 to vector<8x1xi32>
    %908 = arith.muli %906, %907 : vector<8x1xi32>
    %909 = arith.ori %895, %908 : vector<8x1xi32>
    %910 = vector.broadcast %909 : vector<8x1xi32> to vector<8x256xi32>
    %911 = arith.cmpi sgt, %154, %910 : vector<8x256xi32>
    %912 = arith.extui %911 : vector<8x256xi1> to vector<8x256xi32>
    %cst_187 = arith.constant dense<0> : vector<8xi32>
    %913 = vector.multi_reduction <add>, %912, %cst_187 [1] : vector<8x256xi32> to vector<8xi32>
    %914 = vector.shape_cast %913 : vector<8xi32> to vector<8x1xi32>
    %915 = arith.subi %151, %914 : vector<8x1xi32>
    %916 = vector.broadcast %909 : vector<8x1xi32> to vector<8x256xi32>
    %917 = arith.cmpi eq, %154, %916 : vector<8x256xi32>
    %918 = tpu.iota {dimensions = array<i32: 1>} : vector<8x256xi32>
    %c0_i32_188 = arith.constant 0 : i32
    %919 = vector.broadcast %c0_i32_188 : i32 to vector<8x1xi32>
    %c0_i32_189 = arith.constant 0 : i32
    %920 = vector.broadcast %c0_i32_189 : i32 to vector<8x1xi32>
    %c31_i32 = arith.constant 31 : i32
    %921 = vector.broadcast %c31_i32 : i32 to vector<8x1xi32>
    %922 = arith.ori %919, %921 : vector<8x1xi32>
    %923 = vector.broadcast %922 : vector<8x1xi32> to vector<8x256xi32>
    %924 = arith.cmpi sle, %918, %923 : vector<8x256xi32>
    %925 = arith.andi %917, %924 : vector<8x256xi1>
    %926 = arith.extui %925 : vector<8x256xi1> to vector<8x256xi32>
    %cst_190 = arith.constant dense<0> : vector<8xi32>
    %927 = vector.multi_reduction <add>, %926, %cst_190 [1] : vector<8x256xi32> to vector<8xi32>
    %928 = vector.shape_cast %927 : vector<8xi32> to vector<8x1xi32>
    %929 = arith.cmpi slt, %928, %915 : vector<8x1xi32>
    %930 = arith.extui %929 : vector<8x1xi1> to vector<8x1xi32>
    %931 = arith.addi %920, %930 : vector<8x1xi32>
    %c63_i32 = arith.constant 63 : i32
    %932 = vector.broadcast %c63_i32 : i32 to vector<8x1xi32>
    %933 = arith.ori %919, %932 : vector<8x1xi32>
    %934 = vector.broadcast %933 : vector<8x1xi32> to vector<8x256xi32>
    %935 = arith.cmpi sle, %918, %934 : vector<8x256xi32>
    %936 = arith.andi %917, %935 : vector<8x256xi1>
    %937 = arith.extui %936 : vector<8x256xi1> to vector<8x256xi32>
    %cst_191 = arith.constant dense<0> : vector<8xi32>
    %938 = vector.multi_reduction <add>, %937, %cst_191 [1] : vector<8x256xi32> to vector<8xi32>
    %939 = vector.shape_cast %938 : vector<8xi32> to vector<8x1xi32>
    %940 = arith.cmpi slt, %939, %915 : vector<8x1xi32>
    %941 = arith.extui %940 : vector<8x1xi1> to vector<8x1xi32>
    %942 = arith.addi %931, %941 : vector<8x1xi32>
    %c95_i32 = arith.constant 95 : i32
    %943 = vector.broadcast %c95_i32 : i32 to vector<8x1xi32>
    %944 = arith.ori %919, %943 : vector<8x1xi32>
    %945 = vector.broadcast %944 : vector<8x1xi32> to vector<8x256xi32>
    %946 = arith.cmpi sle, %918, %945 : vector<8x256xi32>
    %947 = arith.andi %917, %946 : vector<8x256xi1>
    %948 = arith.extui %947 : vector<8x256xi1> to vector<8x256xi32>
    %cst_192 = arith.constant dense<0> : vector<8xi32>
    %949 = vector.multi_reduction <add>, %948, %cst_192 [1] : vector<8x256xi32> to vector<8xi32>
    %950 = vector.shape_cast %949 : vector<8xi32> to vector<8x1xi32>
    %951 = arith.cmpi slt, %950, %915 : vector<8x1xi32>
    %952 = arith.extui %951 : vector<8x1xi1> to vector<8x1xi32>
    %953 = arith.addi %942, %952 : vector<8x1xi32>
    %c127_i32 = arith.constant 127 : i32
    %954 = vector.broadcast %c127_i32 : i32 to vector<8x1xi32>
    %955 = arith.ori %919, %954 : vector<8x1xi32>
    %956 = vector.broadcast %955 : vector<8x1xi32> to vector<8x256xi32>
    %957 = arith.cmpi sle, %918, %956 : vector<8x256xi32>
    %958 = arith.andi %917, %957 : vector<8x256xi1>
    %959 = arith.extui %958 : vector<8x256xi1> to vector<8x256xi32>
    %cst_193 = arith.constant dense<0> : vector<8xi32>
    %960 = vector.multi_reduction <add>, %959, %cst_193 [1] : vector<8x256xi32> to vector<8xi32>
    %961 = vector.shape_cast %960 : vector<8xi32> to vector<8x1xi32>
    %962 = arith.cmpi slt, %961, %915 : vector<8x1xi32>
    %963 = arith.extui %962 : vector<8x1xi1> to vector<8x1xi32>
    %964 = arith.addi %953, %963 : vector<8x1xi32>
    %c159_i32 = arith.constant 159 : i32
    %965 = vector.broadcast %c159_i32 : i32 to vector<8x1xi32>
    %966 = arith.ori %919, %965 : vector<8x1xi32>
    %967 = vector.broadcast %966 : vector<8x1xi32> to vector<8x256xi32>
    %968 = arith.cmpi sle, %918, %967 : vector<8x256xi32>
    %969 = arith.andi %917, %968 : vector<8x256xi1>
    %970 = arith.extui %969 : vector<8x256xi1> to vector<8x256xi32>
    %cst_194 = arith.constant dense<0> : vector<8xi32>
    %971 = vector.multi_reduction <add>, %970, %cst_194 [1] : vector<8x256xi32> to vector<8xi32>
    %972 = vector.shape_cast %971 : vector<8xi32> to vector<8x1xi32>
    %973 = arith.cmpi slt, %972, %915 : vector<8x1xi32>
    %974 = arith.extui %973 : vector<8x1xi1> to vector<8x1xi32>
    %975 = arith.addi %964, %974 : vector<8x1xi32>
    %c191_i32 = arith.constant 191 : i32
    %976 = vector.broadcast %c191_i32 : i32 to vector<8x1xi32>
    %977 = arith.ori %919, %976 : vector<8x1xi32>
    %978 = vector.broadcast %977 : vector<8x1xi32> to vector<8x256xi32>
    %979 = arith.cmpi sle, %918, %978 : vector<8x256xi32>
    %980 = arith.andi %917, %979 : vector<8x256xi1>
    %981 = arith.extui %980 : vector<8x256xi1> to vector<8x256xi32>
    %cst_195 = arith.constant dense<0> : vector<8xi32>
    %982 = vector.multi_reduction <add>, %981, %cst_195 [1] : vector<8x256xi32> to vector<8xi32>
    %983 = vector.shape_cast %982 : vector<8xi32> to vector<8x1xi32>
    %984 = arith.cmpi slt, %983, %915 : vector<8x1xi32>
    %985 = arith.extui %984 : vector<8x1xi1> to vector<8x1xi32>
    %986 = arith.addi %975, %985 : vector<8x1xi32>
    %c223_i32 = arith.constant 223 : i32
    %987 = vector.broadcast %c223_i32 : i32 to vector<8x1xi32>
    %988 = arith.ori %919, %987 : vector<8x1xi32>
    %989 = vector.broadcast %988 : vector<8x1xi32> to vector<8x256xi32>
    %990 = arith.cmpi sle, %918, %989 : vector<8x256xi32>
    %991 = arith.andi %917, %990 : vector<8x256xi1>
    %992 = arith.extui %991 : vector<8x256xi1> to vector<8x256xi32>
    %cst_196 = arith.constant dense<0> : vector<8xi32>
    %993 = vector.multi_reduction <add>, %992, %cst_196 [1] : vector<8x256xi32> to vector<8xi32>
    %994 = vector.shape_cast %993 : vector<8xi32> to vector<8x1xi32>
    %995 = arith.cmpi slt, %994, %915 : vector<8x1xi32>
    %996 = arith.extui %995 : vector<8x1xi1> to vector<8x1xi32>
    %997 = arith.addi %986, %996 : vector<8x1xi32>
    %c32_i32_197 = arith.constant 32 : i32
    %998 = vector.broadcast %c32_i32_197 : i32 to vector<8x1xi32>
    %999 = arith.muli %997, %998 : vector<8x1xi32>
    %1000 = arith.ori %919, %999 : vector<8x1xi32>
    %c0_i32_198 = arith.constant 0 : i32
    %1001 = vector.broadcast %c0_i32_198 : i32 to vector<8x1xi32>
    %c3_i32_199 = arith.constant 3 : i32
    %1002 = vector.broadcast %c3_i32_199 : i32 to vector<8x1xi32>
    %1003 = arith.ori %1000, %1002 : vector<8x1xi32>
    %1004 = vector.broadcast %1003 : vector<8x1xi32> to vector<8x256xi32>
    %1005 = arith.cmpi sle, %918, %1004 : vector<8x256xi32>
    %1006 = arith.andi %917, %1005 : vector<8x256xi1>
    %1007 = arith.extui %1006 : vector<8x256xi1> to vector<8x256xi32>
    %cst_200 = arith.constant dense<0> : vector<8xi32>
    %1008 = vector.multi_reduction <add>, %1007, %cst_200 [1] : vector<8x256xi32> to vector<8xi32>
    %1009 = vector.shape_cast %1008 : vector<8xi32> to vector<8x1xi32>
    %1010 = arith.cmpi slt, %1009, %915 : vector<8x1xi32>
    %1011 = arith.extui %1010 : vector<8x1xi1> to vector<8x1xi32>
    %1012 = arith.addi %1001, %1011 : vector<8x1xi32>
    %c7_i32_201 = arith.constant 7 : i32
    %1013 = vector.broadcast %c7_i32_201 : i32 to vector<8x1xi32>
    %1014 = arith.ori %1000, %1013 : vector<8x1xi32>
    %1015 = vector.broadcast %1014 : vector<8x1xi32> to vector<8x256xi32>
    %1016 = arith.cmpi sle, %918, %1015 : vector<8x256xi32>
    %1017 = arith.andi %917, %1016 : vector<8x256xi1>
    %1018 = arith.extui %1017 : vector<8x256xi1> to vector<8x256xi32>
    %cst_202 = arith.constant dense<0> : vector<8xi32>
    %1019 = vector.multi_reduction <add>, %1018, %cst_202 [1] : vector<8x256xi32> to vector<8xi32>
    %1020 = vector.shape_cast %1019 : vector<8xi32> to vector<8x1xi32>
    %1021 = arith.cmpi slt, %1020, %915 : vector<8x1xi32>
    %1022 = arith.extui %1021 : vector<8x1xi1> to vector<8x1xi32>
    %1023 = arith.addi %1012, %1022 : vector<8x1xi32>
    %c11_i32 = arith.constant 11 : i32
    %1024 = vector.broadcast %c11_i32 : i32 to vector<8x1xi32>
    %1025 = arith.ori %1000, %1024 : vector<8x1xi32>
    %1026 = vector.broadcast %1025 : vector<8x1xi32> to vector<8x256xi32>
    %1027 = arith.cmpi sle, %918, %1026 : vector<8x256xi32>
    %1028 = arith.andi %917, %1027 : vector<8x256xi1>
    %1029 = arith.extui %1028 : vector<8x256xi1> to vector<8x256xi32>
    %cst_203 = arith.constant dense<0> : vector<8xi32>
    %1030 = vector.multi_reduction <add>, %1029, %cst_203 [1] : vector<8x256xi32> to vector<8xi32>
    %1031 = vector.shape_cast %1030 : vector<8xi32> to vector<8x1xi32>
    %1032 = arith.cmpi slt, %1031, %915 : vector<8x1xi32>
    %1033 = arith.extui %1032 : vector<8x1xi1> to vector<8x1xi32>
    %1034 = arith.addi %1023, %1033 : vector<8x1xi32>
    %c15_i32 = arith.constant 15 : i32
    %1035 = vector.broadcast %c15_i32 : i32 to vector<8x1xi32>
    %1036 = arith.ori %1000, %1035 : vector<8x1xi32>
    %1037 = vector.broadcast %1036 : vector<8x1xi32> to vector<8x256xi32>
    %1038 = arith.cmpi sle, %918, %1037 : vector<8x256xi32>
    %1039 = arith.andi %917, %1038 : vector<8x256xi1>
    %1040 = arith.extui %1039 : vector<8x256xi1> to vector<8x256xi32>
    %cst_204 = arith.constant dense<0> : vector<8xi32>
    %1041 = vector.multi_reduction <add>, %1040, %cst_204 [1] : vector<8x256xi32> to vector<8xi32>
    %1042 = vector.shape_cast %1041 : vector<8xi32> to vector<8x1xi32>
    %1043 = arith.cmpi slt, %1042, %915 : vector<8x1xi32>
    %1044 = arith.extui %1043 : vector<8x1xi1> to vector<8x1xi32>
    %1045 = arith.addi %1034, %1044 : vector<8x1xi32>
    %c19_i32 = arith.constant 19 : i32
    %1046 = vector.broadcast %c19_i32 : i32 to vector<8x1xi32>
    %1047 = arith.ori %1000, %1046 : vector<8x1xi32>
    %1048 = vector.broadcast %1047 : vector<8x1xi32> to vector<8x256xi32>
    %1049 = arith.cmpi sle, %918, %1048 : vector<8x256xi32>
    %1050 = arith.andi %917, %1049 : vector<8x256xi1>
    %1051 = arith.extui %1050 : vector<8x256xi1> to vector<8x256xi32>
    %cst_205 = arith.constant dense<0> : vector<8xi32>
    %1052 = vector.multi_reduction <add>, %1051, %cst_205 [1] : vector<8x256xi32> to vector<8xi32>
    %1053 = vector.shape_cast %1052 : vector<8xi32> to vector<8x1xi32>
    %1054 = arith.cmpi slt, %1053, %915 : vector<8x1xi32>
    %1055 = arith.extui %1054 : vector<8x1xi1> to vector<8x1xi32>
    %1056 = arith.addi %1045, %1055 : vector<8x1xi32>
    %c23_i32 = arith.constant 23 : i32
    %1057 = vector.broadcast %c23_i32 : i32 to vector<8x1xi32>
    %1058 = arith.ori %1000, %1057 : vector<8x1xi32>
    %1059 = vector.broadcast %1058 : vector<8x1xi32> to vector<8x256xi32>
    %1060 = arith.cmpi sle, %918, %1059 : vector<8x256xi32>
    %1061 = arith.andi %917, %1060 : vector<8x256xi1>
    %1062 = arith.extui %1061 : vector<8x256xi1> to vector<8x256xi32>
    %cst_206 = arith.constant dense<0> : vector<8xi32>
    %1063 = vector.multi_reduction <add>, %1062, %cst_206 [1] : vector<8x256xi32> to vector<8xi32>
    %1064 = vector.shape_cast %1063 : vector<8xi32> to vector<8x1xi32>
    %1065 = arith.cmpi slt, %1064, %915 : vector<8x1xi32>
    %1066 = arith.extui %1065 : vector<8x1xi1> to vector<8x1xi32>
    %1067 = arith.addi %1056, %1066 : vector<8x1xi32>
    %c27_i32 = arith.constant 27 : i32
    %1068 = vector.broadcast %c27_i32 : i32 to vector<8x1xi32>
    %1069 = arith.ori %1000, %1068 : vector<8x1xi32>
    %1070 = vector.broadcast %1069 : vector<8x1xi32> to vector<8x256xi32>
    %1071 = arith.cmpi sle, %918, %1070 : vector<8x256xi32>
    %1072 = arith.andi %917, %1071 : vector<8x256xi1>
    %1073 = arith.extui %1072 : vector<8x256xi1> to vector<8x256xi32>
    %cst_207 = arith.constant dense<0> : vector<8xi32>
    %1074 = vector.multi_reduction <add>, %1073, %cst_207 [1] : vector<8x256xi32> to vector<8xi32>
    %1075 = vector.shape_cast %1074 : vector<8xi32> to vector<8x1xi32>
    %1076 = arith.cmpi slt, %1075, %915 : vector<8x1xi32>
    %1077 = arith.extui %1076 : vector<8x1xi1> to vector<8x1xi32>
    %1078 = arith.addi %1067, %1077 : vector<8x1xi32>
    %c4_i32_208 = arith.constant 4 : i32
    %1079 = vector.broadcast %c4_i32_208 : i32 to vector<8x1xi32>
    %1080 = arith.muli %1078, %1079 : vector<8x1xi32>
    %1081 = arith.ori %1000, %1080 : vector<8x1xi32>
    %c0_i32_209 = arith.constant 0 : i32
    %1082 = vector.broadcast %c0_i32_209 : i32 to vector<8x1xi32>
    %c0_i32_210 = arith.constant 0 : i32
    %1083 = vector.broadcast %c0_i32_210 : i32 to vector<8x1xi32>
    %1084 = arith.ori %1081, %1083 : vector<8x1xi32>
    %1085 = vector.broadcast %1084 : vector<8x1xi32> to vector<8x256xi32>
    %1086 = arith.cmpi sle, %918, %1085 : vector<8x256xi32>
    %1087 = arith.andi %917, %1086 : vector<8x256xi1>
    %1088 = arith.extui %1087 : vector<8x256xi1> to vector<8x256xi32>
    %cst_211 = arith.constant dense<0> : vector<8xi32>
    %1089 = vector.multi_reduction <add>, %1088, %cst_211 [1] : vector<8x256xi32> to vector<8xi32>
    %1090 = vector.shape_cast %1089 : vector<8xi32> to vector<8x1xi32>
    %1091 = arith.cmpi slt, %1090, %915 : vector<8x1xi32>
    %1092 = arith.extui %1091 : vector<8x1xi1> to vector<8x1xi32>
    %1093 = arith.addi %1082, %1092 : vector<8x1xi32>
    %c1_i32_212 = arith.constant 1 : i32
    %1094 = vector.broadcast %c1_i32_212 : i32 to vector<8x1xi32>
    %1095 = arith.ori %1081, %1094 : vector<8x1xi32>
    %1096 = vector.broadcast %1095 : vector<8x1xi32> to vector<8x256xi32>
    %1097 = arith.cmpi sle, %918, %1096 : vector<8x256xi32>
    %1098 = arith.andi %917, %1097 : vector<8x256xi1>
    %1099 = arith.extui %1098 : vector<8x256xi1> to vector<8x256xi32>
    %cst_213 = arith.constant dense<0> : vector<8xi32>
    %1100 = vector.multi_reduction <add>, %1099, %cst_213 [1] : vector<8x256xi32> to vector<8xi32>
    %1101 = vector.shape_cast %1100 : vector<8xi32> to vector<8x1xi32>
    %1102 = arith.cmpi slt, %1101, %915 : vector<8x1xi32>
    %1103 = arith.extui %1102 : vector<8x1xi1> to vector<8x1xi32>
    %1104 = arith.addi %1093, %1103 : vector<8x1xi32>
    %c2_i32_214 = arith.constant 2 : i32
    %1105 = vector.broadcast %c2_i32_214 : i32 to vector<8x1xi32>
    %1106 = arith.ori %1081, %1105 : vector<8x1xi32>
    %1107 = vector.broadcast %1106 : vector<8x1xi32> to vector<8x256xi32>
    %1108 = arith.cmpi sle, %918, %1107 : vector<8x256xi32>
    %1109 = arith.andi %917, %1108 : vector<8x256xi1>
    %1110 = arith.extui %1109 : vector<8x256xi1> to vector<8x256xi32>
    %cst_215 = arith.constant dense<0> : vector<8xi32>
    %1111 = vector.multi_reduction <add>, %1110, %cst_215 [1] : vector<8x256xi32> to vector<8xi32>
    %1112 = vector.shape_cast %1111 : vector<8xi32> to vector<8x1xi32>
    %1113 = arith.cmpi slt, %1112, %915 : vector<8x1xi32>
    %1114 = arith.extui %1113 : vector<8x1xi1> to vector<8x1xi32>
    %1115 = arith.addi %1104, %1114 : vector<8x1xi32>
    %c1_i32_216 = arith.constant 1 : i32
    %1116 = vector.broadcast %c1_i32_216 : i32 to vector<8x1xi32>
    %1117 = arith.muli %1115, %1116 : vector<8x1xi32>
    %1118 = arith.ori %1081, %1117 : vector<8x1xi32>
    %1119 = vector.broadcast %909 : vector<8x1xi32> to vector<8x256xi32>
    %1120 = arith.cmpi sgt, %154, %1119 : vector<8x256xi32>
    %1121 = vector.broadcast %1118 : vector<8x1xi32> to vector<8x256xi32>
    %1122 = arith.cmpi sle, %918, %1121 : vector<8x256xi32>
    %1123 = arith.andi %917, %1122 : vector<8x256xi1>
    %c0_i32_217 = arith.constant 0 : i32
    %1124 = vector.broadcast %c0_i32_217 : i32 to vector<8x1xi32>
    %1125 = arith.cmpi sgt, %915, %1124 : vector<8x1xi32>
    %1126 = vector.broadcast %1125 : vector<8x1xi1> to vector<8x256xi1>
    %1127 = arith.andi %1123, %1126 : vector<8x256xi1>
    %1128 = arith.ori %1120, %1127 : vector<8x256xi1>
    %1129 = arith.ori %6, %1128 : vector<8x256xi1>
    %cst_218 = arith.constant 0.000000e+00 : f32
    %1130 = vector.broadcast %cst_218 : f32 to vector<8x256xf32>
    %1131 = arith.select %1129, %141, %1130 : vector<8x256xi1>, vector<8x256xf32>
    %1132 = vector.shape_cast %1131 : vector<8x256xf32> to vector<1x8x256xf32>
    %cst_219 = arith.constant dense<0.000000e+00> : vector<1xf32>
    %1133 = vector.multi_reduction <add>, %1132, %cst_219 [1, 2] : vector<1x8x256xf32> to vector<1xf32>
    %1134 = vector.shape_cast %1133 : vector<1xf32> to vector<1x1x1xf32>
    %1135 = vector.extract %1134[0, 0, 0] : f32 from vector<1x1x1xf32>
    %1136 = vector.shape_cast %147 : vector<8x1xi32> to vector<1x8x1xi32>
    %cst_220 = arith.constant dense<0> : vector<1xi32>
    %1137 = vector.multi_reduction <add>, %1136, %cst_220 [1, 2] : vector<1x8x1xi32> to vector<1xi32>
    %1138 = vector.shape_cast %1137 : vector<1xi32> to vector<1x1x1xi32>
    %1139 = vector.extract %1138[0, 0, 0] : i32 from vector<1x1x1xi32>
    %1140 = arith.sitofp %1139 : i32 to f32
    %1141 = tpu.iota {dimensions = array<i32: 2>} : vector<1x1x128xi32>
    %c0_i32_221 = arith.constant 0 : i32
    %1142 = vector.broadcast %c0_i32_221 : i32 to vector<1x1x128xi32>
    %1143 = arith.cmpi eq, %1141, %1142 : vector<1x1x128xi32>
    %cst_222 = arith.constant 0.000000e+00 : f32
    %1144 = vector.broadcast %33 : f32 to vector<1x1x128xf32>
    %1145 = vector.broadcast %cst_222 : f32 to vector<1x1x128xf32>
    %1146 = arith.select %1143, %1144, %1145 : vector<1x1x128xi1>, vector<1x1x128xf32>
    %c1_i32_223 = arith.constant 1 : i32
    %1147 = vector.broadcast %c1_i32_223 : i32 to vector<1x1x128xi32>
    %1148 = arith.cmpi eq, %1141, %1147 : vector<1x1x128xi32>
    %cst_224 = arith.constant 0.000000e+00 : f32
    %1149 = vector.broadcast %1135 : f32 to vector<1x1x128xf32>
    %1150 = vector.broadcast %cst_224 : f32 to vector<1x1x128xf32>
    %1151 = arith.select %1148, %1149, %1150 : vector<1x1x128xi1>, vector<1x1x128xf32>
    %1152 = arith.addf %1146, %1151 : vector<1x1x128xf32>
    %c2_i32_225 = arith.constant 2 : i32
    %1153 = vector.broadcast %c2_i32_225 : i32 to vector<1x1x128xi32>
    %1154 = arith.cmpi eq, %1141, %1153 : vector<1x1x128xi32>
    %cst_226 = arith.constant 0.000000e+00 : f32
    %1155 = vector.broadcast %1140 : f32 to vector<1x1x128xf32>
    %1156 = vector.broadcast %cst_226 : f32 to vector<1x1x128xf32>
    %1157 = arith.select %1154, %1155, %1156 : vector<1x1x128xi1>, vector<1x1x128xf32>
    %1158 = arith.addf %1152, %1157 : vector<1x1x128xf32>
    %c0_227 = arith.constant 0 : index
    %c0_228 = arith.constant 0 : index
    %c0_229 = arith.constant 0 : index
    %1159 = vector.load %arg6[%c0_227, %c0_228, %c0_229] : memref<1x1x128xf32, #tpu.memory_space<vmem>>, vector<1x1x128xf32>
    %1160 = arith.addf %1159, %1158 : vector<1x1x128xf32>
    %c0_230 = arith.constant 0 : index
    %c0_231 = arith.constant 0 : index
    %c0_232 = arith.constant 0 : index
    %1161 = vector.load %arg6[%c0_230, %c0_231, %c0_232] : memref<1x1x128xf32, #tpu.memory_space<vmem>>, vector<1x1x128xf32>
    tpu.vector_store %arg6[%c0_230, %c0_231, %c0_232], %1160 {strides = array<i32>} : memref<1x1x128xf32, #tpu.memory_space<vmem>>, vector<1x1x128xf32>,
    return
  }
  func.func @transform_0(%arg0: i32, %arg1: i32) -> (i32, i32, i32) {
    %c1_i32 = arith.constant 1 : i32
    %0 = arith.muli %arg0, %c1_i32 : i32
    %1 = arith.addi %0, %arg1 : i32
    %c0_i32 = arith.constant 0 : i32
    %c0_i32_0 = arith.constant 0 : i32
    %c0_i32_1 = arith.constant 0 : i32
    return %1, %c0_i32, %c0_i32_0 : i32, i32, i32
  }
  func.func @transform_1(%arg0: i32, %arg1: i32) -> (i32, i32, i32, i32) {
    %c1_i32 = arith.constant 1 : i32
    %0 = arith.muli %arg0, %c1_i32 : i32
    %1 = arith.addi %0, %arg1 : i32
    %c0_i32 = arith.constant 0 : i32
    %c0_i32_0 = arith.constant 0 : i32
    %c0_i32_1 = arith.constant 0 : i32
    %c0_i32_2 = arith.constant 0 : i32
    return %1, %c0_i32, %c0_i32_0, %c0_i32_1 : i32, i32, i32, i32
  }
  func.func @transform_2(%arg0: i32, %arg1: i32) -> (i32, i32, i32, i32) {
    %c1_i32 = arith.constant 1 : i32
    %0 = arith.muli %arg0, %c1_i32 : i32
    %1 = arith.addi %0, %arg1 : i32
    %c0_i32 = arith.constant 0 : i32
    %c0_i32_0 = arith.constant 0 : i32
    %c0_i32_1 = arith.constant 0 : i32
    %c0_i32_2 = arith.constant 0 : i32
    return %1, %c0_i32, %c0_i32_0, %c0_i32_1 : i32, i32, i32, i32
  }
  func.func @transform_3(%arg0: i32, %arg1: i32) -> (i32, i32, i32, i32) {
    %c1_i32 = arith.constant 1 : i32
    %0 = arith.muli %arg0, %c1_i32 : i32
    %1 = arith.addi %0, %arg1 : i32
    %c0_i32 = arith.constant 0 : i32
    %c0_i32_0 = arith.constant 0 : i32
    %c0_i32_1 = arith.constant 0 : i32
    %c0_i32_2 = arith.constant 0 : i32
    return %1, %c0_i32, %c0_i32_0, %c0_i32_1 : i32, i32, i32, i32
  }
  func.func @transform_4(%arg0: i32, %arg1: i32) -> (i32, i32, i32) {
    %c0_i32 = arith.constant 0 : i32
    %c0_i32_0 = arith.constant 0 : i32
    %c0_i32_1 = arith.constant 0 : i32
    return %arg0, %c0_i32, %c0_i32_0 : i32, i32, i32
  }
}

</mosaic_0001>

<bundles_post_ra>
// kernel: tpu_custom_call.1
= control target key start
LH: loop header
LB: loop body
LE: loop exit
PB: predicated region body
PF: predicated region fallthrough
CT: control target
= control target key end

     0   :  { %9 = vsyncpa [#allocation3], 0  ;;  %s3640_s0 = inlined_call_operand.hbm [shape: s32[1,8,256], index: 0, kind: input, shape index: {}]   ;;  %s3641_s1 = inlined_call_operand.hbm [shape: f32[1,4,8,256], index: 1, kind: input, shape index: {}]   ;;  %s3642_s2 = inlined_call_operand.hbm [shape: f32[1,4,8,256], index: 2, kind: input, shape index: {}]   ;;  %s3643_s3 = inlined_call_operand.hbm [shape: f32[1,8,8,256], index: 3, kind: input, shape index: {}]   ;;  %s3644_s4 = inlined_call_operand.hbm [shape: f32[1,1,128], index: 4, kind: output, shape index: {}]  }
   0x1   :  { %10 = vsyncpa [#allocation6], 0 }
   0x2   :  { %11 = vsyncpa [#allocation9], 0 }
   0x3   :  { %12 = vsyncpa [#allocation4], 0  ;;  %s2528_s15 = smov [#allocation5]   ;;  %s2410_s19 = scalar_lea.hbm %s3641_s1, 1024 }
   0x4   :  { %s36_s16 = sshll.u32 %s2528_s15, 4  ;;  %p2411_p0 = scmp.ne.s32.totalorder %s3641_s1, %s2410_s19  ;;  %s37_s16 = int_to_ptr.vmem [resolvable:$true] %s36_s16 }
   0x5   :  { %p2414_p1 = scmp.lt.u32.totalorder %s2410_s19, %s3641_s1 }
   0x7   :  { %p2416_p2 = pnand %p2414_p1, %p2411_p0 }
   0x9   :  { %2419 = shalt.err (!%p2416_p2)
}
   0xa   :  { %s2420_s24 = scalar_lea.vmem %s37_s16, 1024  ;;  %p2425_p4 = scmp.lt.s32.totalorder %s37_s16, %s37_s16 }
   0xb   :  { %p2421_p3 = scmp.ne.s32.totalorder %s37_s16, %s2420_s24  ;;  %p2426_p5 = scmp.lt.s32.totalorder %s2420_s24, %s2420_s24 }
   0xd   :  { %p2427_p6 = por %p2426_p5, %p2425_p4 }
   0xf   :  { %p2428_p7 = pnand %p2427_p6, %p2421_p3 }
  0x11   :  { %2431 = shalt.err (!%p2428_p7)
}
  0x12   :  { %s2529_s25 = smov 256   ;;  %s2530_s26 = smov 16  }
  0x13   :  { %42 = dma.hbm_to_vmem [thread:$0]  %s3641_s1, 1024, %s37_s16, [#allocation6], %s2529_s25, %s2529_s25, %s2530_s26  }
  0x14   :  { %s2531_s29 = smov [#allocation2]   ;;  %s2532_s5 = smov [#allocation7]  }
  0x15   :  { %s23_s30 = sshll.u32 %s2531_s29, 4  ;;  %s52_s6 = sshll.u32 %s2532_s5, 4  ;;  %s24_s30 = int_to_ptr.vmem [resolvable:$true] %s23_s30  ;;  %s53_s6 = int_to_ptr.vmem [resolvable:$true] %s52_s6 }
  0x16   :  { %s2432_s9 = scalar_lea.hbm %s3640_s0, 256 }
  0x17   :  { %p2433_p8 = scmp.ne.s32.totalorder %s3640_s0, %s2432_s9  ;;  %p2436_p9 = scmp.lt.u32.totalorder %s2432_s9, %s3640_s0 }
  0x19   :  { %p2438_p10 = pnand %p2436_p9, %p2433_p8 }
  0x1b   :  { %2441 = shalt.err (!%p2438_p10)
}
  0x1c   :  { %s2442_s1 = scalar_lea.vmem %s24_s30, 256  ;;  %p2447_p12 = scmp.lt.s32.totalorder %s24_s30, %s24_s30 }
  0x1d   :  { %p2443_p11 = scmp.ne.s32.totalorder %s24_s30, %s2442_s1  ;;  %p2448_p13 = scmp.lt.s32.totalorder %s2442_s1, %s2442_s1 }
  0x1f   :  { %p2449_p0 = por %p2448_p13, %p2447_p12 }
  0x21   :  { %p2450_p1 = pnand %p2449_p0, %p2443_p11 }
  0x23   :  { %2453 = shalt.err (!%p2450_p1)
}
  0x24   :  { %26 = dma.hbm_to_vmem [thread:$0]  %s3640_s0, 256, %s24_s30, [#allocation3]  }
  0x25   :  { %s2454_s18 = scalar_lea.hbm %s3642_s2, 1024 }
  0x26   :  { %p2455_p2 = scmp.ne.s32.totalorder %s3642_s2, %s2454_s18  ;;  %p2458_p3 = scmp.lt.u32.totalorder %s2454_s18, %s3642_s2 }
  0x28   :  { %p2460_p4 = pnand %p2458_p3, %p2455_p2 }
  0x2a   :  { %2463 = shalt.err (!%p2460_p4)
}
  0x2b   :  { %s2464_s23 = scalar_lea.vmem %s53_s6, 1024  ;;  %p2469_p6 = scmp.lt.s32.totalorder %s53_s6, %s53_s6 }
  0x2c   :  { %p2465_p5 = scmp.ne.s32.totalorder %s53_s6, %s2464_s23  ;;  %p2470_p7 = scmp.lt.s32.totalorder %s2464_s23, %s2464_s23 }
  0x2e   :  { %p2471_p8 = por %p2470_p7, %p2469_p6 }
  0x30   :  { %p2472_p9 = pnand %p2471_p8, %p2465_p5 }
  0x32   :  { %2475 = shalt.err (!%p2472_p9)
}
  0x33   :  { %58 = dma.hbm_to_vmem [thread:$0]  %s3642_s2, 1024, %s53_s6, [#allocation6], %s2529_s25, %s2529_s25, %s2530_s26  }
  0x34   :  { %s2533_s27 = smov [#allocation8]   ;;  %s2476_s5 = scalar_lea.hbm %s3643_s3, 2048 }
  0x35   :  { %s68_s28 = sshll.u32 %s2533_s27, 4  ;;  %p2477_p10 = scmp.ne.s32.totalorder %s3643_s3, %s2476_s5  ;;  %s69_s28 = int_to_ptr.vmem [resolvable:$true] %s68_s28 }
  0x36   :  { %p2480_p11 = scmp.lt.u32.totalorder %s2476_s5, %s3643_s3 }
  0x38   :  { %p2482_p12 = pnand %p2480_p11, %p2477_p10 }
  0x3a   :  { %2485 = shalt.err (!%p2482_p12)
}
  0x3b   :  { %s2486_s11 = scalar_lea.vmem %s69_s28, 2048  ;;  %p2491_p0 = scmp.lt.s32.totalorder %s69_s28, %s69_s28 }
  0x3c   :  { %p2487_p13 = scmp.ne.s32.totalorder %s69_s28, %s2486_s11  ;;  %p2492_p1 = scmp.lt.s32.totalorder %s2486_s11, %s2486_s11 }
  0x3e   :  { %p2493_p2 = por %p2492_p1, %p2491_p0 }
  0x40   :  { %p2494_p3 = pnand %p2493_p2, %p2487_p13 }
  0x42   :  { %2497 = shalt.err (!%p2494_p3)
}
  0x43   :  { %74 = dma.hbm_to_vmem [thread:$0]  %s3643_s3, 2048, %s69_s28, [#allocation9], %s2529_s25, %s2529_s25, %s2530_s26  }
  0x44   :  { %2520 = dma.done.wait [#allocation3], 256  }
  0x45   :  { %2521 = vsyncadd [#allocation3], 4294967040 }
  0x46   :  { %2522 = dma.done.wait [#allocation6], 2048  }
  0x47   :  { %2523 = vsyncadd [#allocation6], 4294965248 }
  0x48   :  { %2524 = dma.done.wait [#allocation9], 2048  }
  0x49   :  { %2525 = vsyncadd [#allocation9], 4294965248  ;;  %v2619_v0 = vld [vmem:[#allocation8] sm:$0xff]  ;;  %v2621_v1 = vld [vmem:[#allocation8 + $0x8] sm:$0xff]  ;;  %v2534_v42 = vmov 0   ;;  %s2536_s13 = smov [#allocation10]  }
  0x4a   :  { %v2623_v2 = vld [vmem:[#allocation8 + $0x10] sm:$0xff]  ;;  %v2625_v3 = vld [vmem:[#allocation8 + $0x18] sm:$0xff]  ;;  %v2627_v4 = vld [vmem:[#allocation8 + $0x20] sm:$0xff]  ;;  %s2340_s1 = sshll.u32 %s2536_s13, 4  ;;  %s2341_s1 = int_to_ptr.vmem [resolvable:$true] %s2340_s1 }
  0x4b   :  { %v209_v5 = vmax.f32 %v2619_v0, %v2623_v2  ;;  %v210_v6 = vmax.f32 %v2621_v1, %v2625_v3  ;;  %v2633_v7 = vld [vmem:[#allocation8 + $0x28] sm:$0xff]  ;;  %v2635_v8 = vld [vmem:[#allocation8 + $0x30] sm:$0xff]  ;;  %v2637_v9 = vld [vmem:[#allocation8 + $0x38] sm:$0xff]  ;;  %s2498_s14 = scalar_lea.vmem %s2341_s1, 16  ;;  %s2502_s15 = scalar_lea.vmem %s2341_s1, 32 }
  0x4c   :  { %v2641_v12 = vld [vmem:[#allocation8 + $0x40] sm:$0xff]  ;;  %v2643_v13 = vld [vmem:[#allocation8 + $0x48] sm:$0xff]  ;;  %v2647_v16 = vld [vmem:[#allocation8 + $0x50] sm:$0xff]  ;;  %p2499_p4 = scmp.ne.s32.totalorder %s2341_s1, %s2498_s14  ;;  %p2503_p5 = scmp.lt.s32.totalorder %s2341_s1, %s2341_s1 }
  0x4d   :  { %v214_v10 = vmax.f32 %v209_v5, %v2627_v4  ;;  %v215_v11 = vmax.f32 %v210_v6, %v2633_v7  ;;  %v2649_v17 = vld [vmem:[#allocation8 + $0x58] sm:$0xff]  ;;  %v2653_v20 = vld [vmem:[#allocation8 + $0x60] sm:$0xff]  ;;  %v2655_v21 = vld [vmem:[#allocation8 + $0x68] sm:$0xff]  ;;  %p2504_p6 = scmp.lt.s32.totalorder %s2502_s15, %s2498_s14 }
  0x4e   :  { %v2659_v24 = vld [vmem:[#allocation8 + $0x70] sm:$0xff]  ;;  %v2661_v25 = vld [vmem:[#allocation8 + $0x78] sm:$0xff] }
  0x4f   :  { %v219_v14 = vmax.f32 %v214_v10, %v2635_v8  ;;  %v220_v15 = vmax.f32 %v215_v11, %v2637_v9  ;;  %v2665_v28 = vld [vmem:[#allocation2] sm:$0xff]  ;;  %v2674_v31 = vld [vmem:[#allocation2 + $0x8] sm:$0xff]  ;;  %p2505_p7 = por %p2504_p6, %p2503_p5 }
  0x50   :  { %vm98_vm0 = vcmp.gt.s32.totalorder %v2665_v28, 0  ;;  %vm99_vm1 = vcmp.gt.s32.totalorder %v2674_v31, 0  ;;  %vm100_vm2 = vcmp.eq.s32.totalorder %v2665_v28, 4294967295  ;;  %vm101_vm3 = vcmp.eq.s32.totalorder %v2674_v31, 4294967295 }
  0x51   :  { %v224_v18 = vmax.f32 %v219_v14, %v2641_v12  ;;  %v225_v19 = vmax.f32 %v220_v15, %v2643_v13  ;;  %v176_v43 = vsel %vm98_vm0, 1, %v2534_v42  ;;  %v177_v46 = vsel %vm99_vm1, 1, %v2534_v42  ;;  %p2506_p8 = pnand %p2505_p7, %p2499_p4 }
  0x52   :  { %v2706_v49 = vsel %vm100_vm2, 0, %v2665_v28  ;;  %v365_v56 = vadd.s32 %v177_v46, %v176_v43  ;;  %v2717_v57 = vsel %vm101_vm3, 0, %v2674_v31 }
  0x53   :  { %v229_v22 = vmax.f32 %v224_v18, %v2647_v16  ;;  %v230_v23 = vmax.f32 %v225_v19, %v2649_v17  ;;  %vm249_vm4 = vcmp.eq.s32.totalorder %v2706_v49, 0  ;;  %vm250_vm5 = vcmp.eq.s32.totalorder %v2717_v57, 0 }
  0x54   :  { %v367_v10 = vshrl.u32 %v365_v56, 16  ;;  %v366_v11 = vand.u32 65535, %v365_v56  ;;  %vm263_vm6 = vcmp.eq.s32.totalorder %v2706_v49, 1  ;;  %vm264_vm7 = vcmp.eq.s32.totalorder %v2717_v57, 1 }
  0x55   :  { %v234_v26 = vmax.f32 %v229_v22, %v2653_v20  ;;  %v235_v27 = vmax.f32 %v230_v23, %v2655_v21  ;;  %v251_v22 = vsel %vm249_vm4, %v2619_v0, 0.0  ;;  %vm277_vm8 = vcmp.eq.s32.totalorder %v2706_v49, 2 }
  0x56   :  { %v369_v18 = vcvt.s32.f32 %v367_v10  ;;  %vm278_vm9 = vcmp.eq.s32.totalorder %v2717_v57, 2  ;;  %vm291_vm10 = vcmp.eq.s32.totalorder %v2706_v49, 3  ;;  %vm292_vm11 = vcmp.eq.s32.totalorder %v2717_v57, 3 }
  0x57   :  { %v2668_v29 = vmax.f32 %v234_v26, %v2659_v24  ;;  %v2671_v30 = vmax.f32 %v235_v27, %v2661_v25  ;;  %v265_v27 = vsel %vm263_vm6, %v2623_v2, 0.0  ;;  %v294_v56 = vsel %vm292_vm11, %v2637_v9, 0.0 }
  0x58   :  { %372 = vadd.xlane.f32.xlu0 %v369_v18  ;;  %vm305_vm12 = vcmp.eq.s32.totalorder %v2706_v49, 4  ;;  %vm306_vm13 = vcmp.eq.s32.totalorder %v2717_v57, 4  ;;  %vm319_vm14 = vcmp.eq.s32.totalorder %v2706_v49, 5  ;;  %vm320_vm15 = vcmp.eq.s32.totalorder %v2717_v57, 5 }
  0x59   :  { %v241_v32 = vsub.f32 %v2619_v0, %v2668_v29  ;;  %v242_v33 = vsub.f32 %v2621_v1, %v2671_v30  ;;  %v255_v34 = vsub.f32 %v2623_v2, %v2668_v29  ;;  %v256_v35 = vsub.f32 %v2625_v3, %v2671_v30 }
  0x5a   :  { %v269_v36 = vsub.f32 %v2627_v4, %v2668_v29  ;;  %v270_v37 = vsub.f32 %v2633_v7, %v2671_v30  ;;  %v283_v41 = vsub.f32 %v2635_v8, %v2668_v29  ;;  %v284_v45 = vsub.f32 %v2637_v9, %v2671_v30 }
  0x5b   :  { %v243_v38 = vmul.f32 1.442695, %v241_v32  ;;  %v245_v39 = vmul.f32 1.442695, %v242_v33  ;;  %v257_v40 = vmul.f32 1.442695, %v255_v34  ;;  %v297_v48 = vsub.f32 %v2641_v12, %v2668_v29 }
  0x5c   :  { %v259_v44 = vmul.f32 1.442695, %v256_v35  ;;  %v271_v47 = vmul.f32 1.442695, %v269_v36  ;;  %v273_v50 = vmul.f32 1.442695, %v270_v37  ;;  %v298_v51 = vsub.f32 %v2643_v13, %v2671_v30 }
  0x5d   :  { %2374 = vpow2.f32 %v243_v38  ;;  %v285_v52 = vmul.f32 1.442695, %v283_v41  ;;  %v311_v53 = vsub.f32 %v2647_v16, %v2668_v29  ;;  %v312_v54 = vsub.f32 %v2649_v17, %v2671_v30 }
  0x5e   :  { %2376 = vpow2.f32 %v245_v39  ;;  %v287_v55 = vmul.f32 1.442695, %v284_v45  ;;  %v299_v58 = vmul.f32 1.442695, %v297_v48  ;;  %v325_v59 = vsub.f32 %v2653_v20, %v2668_v29 }
  0x5f   :  { %2378 = vpow2.f32 %v257_v40  ;;  %v301_v60 = vmul.f32 1.442695, %v298_v51  ;;  %v326_v61 = vsub.f32 %v2655_v21, %v2671_v30  ;;  %v313_v62 = vmul.f32 1.442695, %v311_v53 }
  0x60   :  { %2380 = vpow2.f32 %v259_v44  ;;  %v315_v63 = vmul.f32 1.442695, %v312_v54  ;;  %v339_v5 = vsub.f32 %v2659_v24, %v2668_v29  ;;  %v340_v6 = vsub.f32 %v2661_v25, %v2671_v30 }
  0x61   :  { %2382 = vpow2.f32 %v271_v47  ;;  %v327_v14 = vmul.f32 1.442695, %v325_v59  ;;  %v329_v15 = vmul.f32 1.442695, %v326_v61  ;;  %v368_v33 = vcvt.s32.f32 %v366_v11 }
  0x62   :  { %2384 = vpow2.f32 %v273_v50  ;;  %v341_v23 = vmul.f32 1.442695, %v339_v5  ;;  %v343_v32 = vmul.f32 1.442695, %v340_v6  ;;  %v252_v35 = vsel %vm250_vm5, %v2621_v1, 0.0 }
  0x63   :  { %2386 = vpow2.f32 %v285_v52  ;;  %v266_v36 = vsel %vm264_vm7, %v2625_v3, 0.0  ;;  %v267_v39 = vadd.f32 %v265_v27, %v251_v22  ;;  %v279_v1 = vsel %vm277_vm8, %v2627_v4, 0.0  ;;  %370 = vadd.xlane.f32.xlu0 %v368_v33  ;;  %vm361_vm8 = vmor %vm98_vm0, %vm100_vm2 }
  0x64   :  { %2388 = vpow2.f32 %v287_v55  ;;  %v268_v41 = vadd.f32 %v266_v36, %v252_v35  ;;  %v280_v45 = vsel %vm278_vm9, %v2633_v7, 0.0  ;;  %v293_v54 = vsel %vm291_vm10, %v2635_v8, 0.0  ;;  %vm362_vm9 = vmor %vm99_vm1, %vm101_vm3 }
  0x65   :  { %2390 = vpow2.f32 %v299_v58  ;;  %v281_v50 = vadd.f32 %v279_v1, %v267_v39  ;;  %v307_v6 = vsel %vm305_vm12, %v2641_v12, 0.0  ;;  %v308_v11 = vsel %vm306_vm13, %v2643_v13, 0.0 }
  0x66   :  { %2392 = vpow2.f32 %v301_v60  ;;  %v282_v53 = vadd.f32 %v280_v45, %v268_v41  ;;  %vm333_vm4 = vcmp.eq.s32.totalorder %v2706_v49, 6  ;;  %vm334_vm5 = vcmp.eq.s32.totalorder %v2717_v57, 6 }
  0x67   :  { %v2375_v19 = vpop.eup %2374  ;;  %2394 = vpow2.f32 %v313_v62  ;;  %v295_v61 = vadd.f32 %v293_v54, %v281_v50  ;;  %v335_v27 = vsel %vm333_vm4, %v2653_v20, 0.0  ;;  %vm347_vm6 = vcmp.eq.s32.totalorder %v2706_v49, 7 }
  0x68   :  { %v2377_v26 = vpop.eup %2376  ;;  %2396 = vpow2.f32 %v315_v63  ;;  %v296_v5 = vadd.f32 %v294_v56, %v282_v53  ;;  %vm348_vm7 = vcmp.eq.s32.totalorder %v2717_v57, 7 }
  0x69   :  { %v2379_v34 = vpop.eup %2378  ;;  %2398 = vpow2.f32 %v327_v14  ;;  %v309_v18 = vadd.f32 %v307_v6, %v295_v61 }
  0x6a   :  { %v2381_v0 = vpop.eup %2380  ;;  %v261_v37 = vadd.f32 %v2379_v34, %v2375_v19  ;;  %2400 = vpow2.f32 %v329_v15  ;;  %v310_v22 = vadd.f32 %v308_v11, %v296_v5  ;;  %v349_v34 = vsel %vm347_vm6, %v2659_v24, 0.0 }
  0x6b   :  { %v2383_v2 = vpop.eup %2382  ;;  %v262_v38 = vadd.f32 %v2381_v0, %v2377_v26  ;;  %2402 = vpow2.f32 %v341_v23  ;;  %v321_v23 = vsel %vm319_vm14, %v2647_v16, 0.0  ;;  %v322_v26 = vsel %vm320_vm15, %v2649_v17, 0.0 }
  0x6c   :  { %v2385_v40 = vpop.eup %2384  ;;  %v275_v43 = vadd.f32 %v2383_v2, %v261_v37  ;;  %2404 = vpow2.f32 %v343_v32  ;;  %v323_v12 = vadd.f32 %v321_v23, %v309_v18  ;;  %v324_v13 = vadd.f32 %v322_v26, %v310_v22 }
  0x6d   :  { %v2387_v3 = vpop.eup %2386  ;;  %v276_v44 = vadd.f32 %v2385_v40, %v262_v38  ;;  %v336_v32 = vsel %vm334_vm5, %v2655_v21, 0.0  ;;  %v350_v17 = vsel %vm348_vm7, %v2661_v25, 0.0 }
  0x6e   :  { %v2389_v46 = vpop.eup %2388  ;;  %v289_v47 = vadd.f32 %v2387_v3, %v275_v43  ;;  %v337_v33 = vadd.f32 %v335_v27, %v323_v12  ;;  %v338_v16 = vadd.f32 %v336_v32, %v324_v13 }
  0x6f   :  { %v2391_v48 = vpop.eup %2390  ;;  %v290_v51 = vadd.f32 %v2389_v46, %v276_v44 }
  0x70   :  { %v2393_v52 = vpop.eup %2392  ;;  %v303_v4 = vadd.f32 %v2391_v48, %v289_v47  ;;  %v351_v0 = vadd.f32 %v349_v34, %v337_v33  ;;  %v352_v2 = vadd.f32 %v350_v17, %v338_v16 }
  0x71   :  { %v2395_v55 = vpop.eup %2394  ;;  %v304_v58 = vadd.f32 %v2393_v52, %v290_v51 }
  0x72   :  { %v2397_v7 = vpop.eup %2396  ;;  %v317_v59 = vadd.f32 %v2395_v55, %v303_v4 }
  0x73   :  { %v2399_v60 = vpop.eup %2398  ;;  %v318_v62 = vadd.f32 %v2397_v7, %v304_v58 }
  0x74   :  { %v2401_v63 = vpop.eup %2400  ;;  %v331_v10 = vadd.f32 %v2399_v60, %v317_v59 }
  0x75   :  { %v2403_v8 = vpop.eup %2402  ;;  %v332_v9 = vadd.f32 %v2401_v63, %v318_v62 }
  0x76   :  { %v2405_v14 = vpop.eup %2404  ;;  %v345_v15 = vadd.f32 %v2403_v8, %v331_v10 }
  0x77   :  { %v346_v19 = vadd.f32 %v2405_v14, %v332_v9 }
  0x78   :  { %2406 = vlog2.f32 %v345_v15 }
  0x79   :  { %2408 = vlog2.f32 %v346_v19 }
  0x82   :  { %v2407_v35 = vpop.eup %2406 }
  0x83   :  { %v2409_v36 = vpop.eup %2408  ;;  %v354_v37 = vmul.f32 0.6931472, %v2407_v35 }
  0x84   :  { %v356_v38 = vmul.f32 0.6931472, %v2409_v36 }
  0x85   :  { %v357_v20 = vadd.f32 %v354_v37, %v2668_v29 }
  0x86   :  { %v358_v21 = vadd.f32 %v356_v38, %v2671_v30 }
  0x87   :  { %v2771_v49 = vsub.f32 %v357_v20, %v351_v0 }
  0x88   :  { %v2777_v24 = vsub.f32 %v358_v21, %v352_v2 }
  0x89   :  { %v363_v25 = vsel %vm361_vm8, 0.0, %v2771_v49 }
  0x8a   :  { %v364_v29 = vsel %vm362_vm9, 0.0, %v2777_v24  ;;  %vm383_vm10 = vcmp.gt.s32.totalorder %v363_v25, 0 }
  0x8b   :  { %v2781_v30 = vsel %vm383_vm10, %v363_v25, 0  ;;  %vm385_vm11 = vcmp.gt.s32.totalorder %v364_v29, 0 }
  0x8c   :  { %v2783_v57 = vsel %vm385_vm11, %v364_v29, 0  ;;  %vm387_vm2 = vcmp.ge.s32.totalorder %v2781_v30, 268435456  ;;  %vm406_vm12 = vcmp.ge.s32.totalorder %v2781_v30, 536870912  ;;  %vm426_vm13 = vcmp.ge.s32.totalorder %v2781_v30, 805306368 }
  0x8d   :  { %vm388_vm3 = vcmp.ge.s32.totalorder %v2783_v57, 268435456  ;;  %v389_v39 = vsel %vm387_vm2, 1, %v2534_v42  ;;  %vm407_vm14 = vcmp.ge.s32.totalorder %v2783_v57, 536870912  ;;  %v408_v40 = vsel %vm406_vm12, 1, %v2534_v42 }
  0x8e   :  { %v390_v41 = vsel %vm388_vm3, 1, %v2534_v42  ;;  %v409_v43 = vsel %vm407_vm14, 1, %v2534_v42  ;;  %vm427_vm15 = vcmp.ge.s32.totalorder %v2783_v57, 805306368  ;;  %v428_v1 = vsel %vm426_vm13, 1, %v2534_v42 }
  0x8f   :  { %v391_v3 = vadd.s32 %v390_v41, %v389_v39  ;;  %v410_v44 = vadd.s32 %v409_v43, %v408_v40  ;;  %v429_v45 = vsel %vm427_vm15, 1, %v2534_v42  ;;  %vm446_vm4 = vcmp.ge.s32.totalorder %v2781_v30, 1073741824 }
  0x90   :  { %v430_v46 = vadd.s32 %v429_v45, %v428_v1  ;;  %vm447_vm5 = vcmp.ge.s32.totalorder %v2783_v57, 1073741824  ;;  %v448_v47 = vsel %vm446_vm4, 1, %v2534_v42  ;;  %vm466_vm6 = vcmp.ge.s32.totalorder %v2781_v30, 1342177280 }
  0x91   :  { %v393_v48 = vshrl.u32 %v391_v3, 16  ;;  %v392_v50 = vand.u32 65535, %v391_v3  ;;  %v412_v51 = vshrl.u32 %v410_v44, 16  ;;  %v449_v53 = vsel %vm447_vm5, 1, %v2534_v42 }
  0x92   :  { %v432_v52 = vshrl.u32 %v430_v46, 16  ;;  %vm467_vm7 = vcmp.ge.s32.totalorder %v2783_v57, 1342177280  ;;  %v411_v56 = vand.u32 65535, %v410_v44  ;;  %v450_v58 = vadd.s32 %v449_v53, %v448_v47 }
  0x93   :  { %v395_v54 = vcvt.s32.f32 %v393_v48  ;;  %v394_v4 = vcvt.s32.f32 %v392_v50  ;;  %v414_v55 = vcvt.s32.f32 %v412_v51  ;;  %v468_v7 = vsel %vm466_vm6, 1, %v2534_v42 }
  0x94   :  { %v434_v59 = vcvt.s32.f32 %v432_v52  ;;  %v469_v60 = vsel %vm467_vm7, 1, %v2534_v42  ;;  %vm486_vm8 = vcmp.ge.s32.totalorder %v2781_v30, 1610612736  ;;  %vm487_vm9 = vcmp.ge.s32.totalorder %v2783_v57, 1610612736 }
  0x95   :  { %398 = vadd.xlane.f32.xlu1 %v395_v54  ;;  %396 = vadd.xlane.f32.xlu0 %v394_v4  ;;  %v452_v61 = vshrl.u32 %v450_v58, 16  ;;  %v470_v62 = vadd.s32 %v469_v60, %v468_v7  ;;  %v488_v63 = vsel %vm486_vm8, 1, %v2534_v42  ;;  %v489_v5 = vsel %vm487_vm9, 1, %v2534_v42 }
  0x96   :  { %vm506_vm10 = vcmp.ge.s32.totalorder %v2781_v30, 1879048192  ;;  %vm507_vm11 = vcmp.ge.s32.totalorder %v2783_v57, 1879048192  ;;  %v431_v6 = vand.u32 65535, %v430_v46  ;;  %v413_v10 = vcvt.s32.f32 %v411_v56 }
  0x97   :  { %v454_v8 = vcvt.s32.f32 %v452_v61  ;;  %v472_v11 = vshrl.u32 %v470_v62, 16  ;;  %v490_v9 = vadd.s32 %v489_v5, %v488_v63  ;;  %v508_v14 = vsel %vm506_vm10, 1, %v2534_v42 }
  0x98   :  { %v509_v15 = vsel %vm507_vm11, 1, %v2534_v42  ;;  %v433_v18 = vcvt.s32.f32 %v431_v6  ;;  %v451_v19 = vand.u32 65535, %v450_v58  ;;  %v471_v13 = vand.u32 65535, %v470_v62 }
  0x99   :  { %417 = vadd.xlane.f32.xlu1 %v414_v55  ;;  %437 = vadd.xlane.f32.xlu0 %v434_v59  ;;  %v474_v22 = vcvt.s32.f32 %v472_v11  ;;  %v492_v23 = vshrl.u32 %v490_v9, 16  ;;  %v510_v26 = vadd.s32 %v509_v15, %v508_v14  ;;  %v491_v16 = vand.u32 65535, %v490_v9 }
  0x9a   :  { %v453_v12 = vcvt.s32.f32 %v451_v19  ;;  %v473_v33 = vcvt.s32.f32 %v471_v13 }
  0x9b   :  { %v494_v27 = vcvt.s32.f32 %v492_v23  ;;  %v512_v32 = vshrl.u32 %v510_v26, 16  ;;  %v493_v17 = vcvt.s32.f32 %v491_v16  ;;  %v511_v35 = vand.u32 65535, %v510_v26 }
  0x9d   :  { %415 = vadd.xlane.f32.xlu1 %v413_v10  ;;  %457 = vadd.xlane.f32.xlu0 %v454_v8  ;;  %v514_v34 = vcvt.s32.f32 %v512_v32  ;;  %v513_v36 = vcvt.s32.f32 %v511_v35 }
  0xa1   :  { %435 = vadd.xlane.f32.xlu1 %v433_v18  ;;  %477 = vadd.xlane.f32.xlu0 %v474_v22 }
  0xa5   :  { %455 = vadd.xlane.f32.xlu1 %v453_v12  ;;  %497 = vadd.xlane.f32.xlu0 %v494_v27 }
  0xa9   :  { %475 = vadd.xlane.f32.xlu1 %v473_v33  ;;  %517 = vadd.xlane.f32.xlu0 %v514_v34 }
  0xad   :  { %495 = vadd.xlane.f32.xlu1 %v493_v17 }
  0xb1   :  { %515 = vadd.xlane.f32.xlu1 %v513_v36 }
  0xe5   :  { %v373_v0 = vpop.xlane.xlu0 %372 }
  0xe6   :  { %v375_v20 = vcvt.f32.s32 %v373_v0 }
  0xe8   :  { %v376_v29 = vshll.u32 %v375_v20, 16 }
  0xf0   :  { %v371_v37 = vpop.xlane.xlu0 %370 }
  0xf1   :  { %v374_v39 = vcvt.f32.s32 %v371_v37 }
  0xf3   :  { %v2813_v43 = vadd.s32 %v376_v29, %v374_v39 }
  0xf5   :  { %v378_v45 = vmul.u32 3, %v2813_v43  ;;  %v2312_v28 = vrot.slane %v2813_v43, 4 }
  0xf7   :  { %vm379_vm2 = vcmp.lt.s32.totalorder %v378_v45, 255  ;;  %v2313_v31 = vadd.s32 %v2312_v28, %v2813_v43 }
  0xf8   :  { %v2816_v63 = vsel %vm379_vm2, %v378_v45, 255 }
 0x122   :  { %v399_v2 = vpop.xlane.xlu1 %398  ;;  %v397_v38 = vpop.xlane.xlu0 %396 }
 0x123   :  { %v401_v1 = vcvt.f32.s32 %v399_v2  ;;  %v400_v48 = vcvt.f32.s32 %v397_v38 }
 0x125   :  { %v402_v52 = vshll.u32 %v401_v1, 16 }
 0x126   :  { %v418_v21 = vpop.xlane.xlu1 %417  ;;  %v438_v25 = vpop.xlane.xlu0 %437 }
 0x127   :  { %v420_v3 = vcvt.f32.s32 %v418_v21  ;;  %v440_v44 = vcvt.f32.s32 %v438_v25  ;;  %v403_v60 = vadd.s32 %v402_v52, %v400_v48 }
 0x129   :  { %v421_v53 = vshll.u32 %v420_v3, 16  ;;  %v441_v54 = vshll.u32 %v440_v44, 16  ;;  %vm404_vm13 = vcmp.ge.s32.totalorder %v403_v60, %v2816_v63 }
 0x12a   :  { %v416_v40 = vpop.xlane.xlu1 %415  ;;  %v458_v41 = vpop.xlane.xlu0 %457  ;;  %v405_v22 = vsel %vm404_vm13, 1, %v2534_v42 }
 0x12b   :  { %v419_v46 = vcvt.f32.s32 %v416_v40  ;;  %v460_v47 = vcvt.f32.s32 %v458_v41 }
 0x12d   :  { %v422_v55 = vadd.s32 %v421_v53, %v419_v46  ;;  %v461_v56 = vshll.u32 %v460_v47, 16 }
 0x12e   :  { %v436_v50 = vpop.xlane.xlu1 %435  ;;  %v478_v51 = vpop.xlane.xlu0 %477 }
 0x12f   :  { %v439_v4 = vcvt.f32.s32 %v436_v50  ;;  %v480_v58 = vcvt.f32.s32 %v478_v51  ;;  %vm423_vm12 = vcmp.ge.s32.totalorder %v422_v55, %v2816_v63 }
 0x130   :  { %v424_v14 = vsel %vm423_vm12, 1, %v2534_v42 }
 0x131   :  { %v442_v61 = vadd.s32 %v441_v54, %v439_v4  ;;  %v481_v6 = vshll.u32 %v480_v58, 16  ;;  %v425_v12 = vadd.s32 %v424_v14, %v405_v22 }
 0x132   :  { %v456_v7 = vpop.xlane.xlu1 %455  ;;  %v498_v59 = vpop.xlane.xlu0 %497 }
 0x133   :  { %v459_v62 = vcvt.f32.s32 %v456_v7  ;;  %v500_v10 = vcvt.f32.s32 %v498_v59  ;;  %vm443_vm3 = vcmp.ge.s32.totalorder %v442_v61, %v2816_v63 }
 0x134   :  { %v444_v23 = vsel %vm443_vm3, 1, %v2534_v42 }
 0x135   :  { %v462_v5 = vadd.s32 %v461_v56, %v459_v62  ;;  %v501_v18 = vshll.u32 %v500_v10, 16  ;;  %v445_v32 = vadd.s32 %v444_v23, %v425_v12 }
 0x136   :  { %v476_v8 = vpop.xlane.xlu1 %475  ;;  %v518_v11 = vpop.xlane.xlu0 %517 }
 0x137   :  { %v479_v9 = vcvt.f32.s32 %v476_v8  ;;  %vm463_vm14 = vcmp.ge.s32.totalorder %v462_v5, %v2816_v63  ;;  %v520_v19 = vcvt.f32.s32 %v518_v11 }
 0x138   :  { %v464_v27 = vsel %vm463_vm14, 1, %v2534_v42 }
 0x139   :  { %v482_v15 = vadd.s32 %v481_v6, %v479_v9  ;;  %v521_v16 = vshll.u32 %v520_v19, 16  ;;  %v465_v35 = vadd.s32 %v464_v27, %v445_v32 }
 0x13a   :  { %v496_v26 = vpop.xlane.xlu1 %495 }
 0x13b   :  { %vm483_vm15 = vcmp.ge.s32.totalorder %v482_v15, %v2816_v63  ;;  %v499_v13 = vcvt.f32.s32 %v496_v26 }
 0x13c   :  { %v484_v34 = vsel %vm483_vm15, 1, %v2534_v42 }
 0x13d   :  { %v502_v33 = vadd.s32 %v501_v18, %v499_v13  ;;  %v485_v37 = vadd.s32 %v484_v34, %v465_v35 }
 0x13e   :  { %v516_v17 = vpop.xlane.xlu1 %515 }
 0x13f   :  { %vm503_vm4 = vcmp.ge.s32.totalorder %v502_v33, %v2816_v63  ;;  %v519_v36 = vcvt.f32.s32 %v516_v17 }
 0x140   :  { %v504_v0 = vsel %vm503_vm4, 1, %v2534_v42 }
 0x141   :  { %v522_v2 = vadd.s32 %v521_v16, %v519_v36  ;;  %v505_v38 = vadd.s32 %v504_v0, %v485_v37 }
 0x143   :  { %vm523_vm5 = vcmp.ge.s32.totalorder %v522_v2, %v2816_v63 }
 0x144   :  { %v524_v20 = vsel %vm523_vm5, 1, %v2534_v42 }
 0x145   :  { %v525_v21 = vadd.s32 %v524_v20, %v505_v38 }
 0x147   :  { %v2832_v25 = vmul.u32 268435456, %v525_v21 }
 0x149   :  { %v547_v29 = vor.u32 67108864, %v2832_v25  ;;  %v527_v39 = vor.u32 33554432, %v2832_v25  ;;  %v568_v40 = vor.u32 100663296, %v2832_v25  ;;  %v589_v41 = vor.u32 134217728, %v2832_v25 }
 0x14a   :  { %v610_v53 = vor.u32 167772160, %v2832_v25  ;;  %v631_v60 = vor.u32 201326592, %v2832_v25  ;;  %v652_v9 = vor.u32 234881024, %v2832_v25 }
 0x14b   :  { %vm548_vm6 = vcmp.ge.s32.totalorder %v2781_v30, %v547_v29  ;;  %vm549_vm7 = vcmp.ge.s32.totalorder %v2783_v57, %v547_v29  ;;  %vm528_vm8 = vcmp.ge.s32.totalorder %v2781_v30, %v527_v39  ;;  %vm529_vm9 = vcmp.ge.s32.totalorder %v2783_v57, %v527_v39 }
 0x14c   :  { %v550_v1 = vsel %vm548_vm6, 1, %v2534_v42  ;;  %v551_v3 = vsel %vm549_vm7, 1, %v2534_v42  ;;  %v530_v44 = vsel %vm528_vm8, 1, %v2534_v42  ;;  %v531_v45 = vsel %vm529_vm9, 1, %v2534_v42 }
 0x14d   :  { %v552_v46 = vadd.s32 %v551_v3, %v550_v1  ;;  %v532_v47 = vadd.s32 %v531_v45, %v530_v44  ;;  %vm569_vm10 = vcmp.ge.s32.totalorder %v2781_v30, %v568_v40  ;;  %vm570_vm11 = vcmp.ge.s32.totalorder %v2783_v57, %v568_v40 }
 0x14e   :  { %v571_v48 = vsel %vm569_vm10, 1, %v2534_v42  ;;  %v572_v50 = vsel %vm570_vm11, 1, %v2534_v42  ;;  %vm590_vm2 = vcmp.ge.s32.totalorder %v2781_v30, %v589_v41  ;;  %vm591_vm12 = vcmp.ge.s32.totalorder %v2783_v57, %v589_v41 }
 0x14f   :  { %v554_v51 = vshrl.u32 %v552_v46, 16  ;;  %v534_v52 = vshrl.u32 %v532_v47, 16  ;;  %v553_v54 = vand.u32 65535, %v552_v46  ;;  %v533_v4 = vand.u32 65535, %v532_v47 }
 0x150   :  { %v573_v55 = vadd.s32 %v572_v50, %v571_v48  ;;  %v592_v7 = vsel %vm590_vm2, 1, %v2534_v42  ;;  %v593_v59 = vsel %vm591_vm12, 1, %v2534_v42  ;;  %vm611_vm13 = vcmp.ge.s32.totalorder %v2781_v30, %v610_v53 }
 0x151   :  { %v556_v56 = vcvt.s32.f32 %v554_v51  ;;  %v536_v58 = vcvt.s32.f32 %v534_v52  ;;  %vm612_vm3 = vcmp.ge.s32.totalorder %v2783_v57, %v610_v53  ;;  %v594_v5 = vadd.s32 %v593_v59, %v592_v7 }
 0x152   :  { %v574_v61 = vand.u32 65535, %v573_v55  ;;  %v575_v62 = vshrl.u32 %v573_v55, 16  ;;  %v555_v6 = vcvt.s32.f32 %v553_v54  ;;  %v535_v10 = vcvt.s32.f32 %v533_v4 }
 0x153   :  { %559 = vadd.xlane.f32.xlu1 %v556_v56  ;;  %539 = vadd.xlane.f32.xlu0 %v536_v58  ;;  %v613_v8 = vsel %vm611_vm13, 1, %v2534_v42  ;;  %v614_v11 = vsel %vm612_vm3, 1, %v2534_v42  ;;  %vm632_vm14 = vcmp.ge.s32.totalorder %v2781_v30, %v631_v60  ;;  %vm633_vm15 = vcmp.ge.s32.totalorder %v2783_v57, %v631_v60 }
 0x154   :  { %v576_v14 = vcvt.s32.f32 %v574_v61  ;;  %v577_v15 = vcvt.s32.f32 %v575_v62  ;;  %v595_v18 = vand.u32 65535, %v594_v5  ;;  %v596_v19 = vshrl.u32 %v594_v5, 16 }
 0x155   :  { %v615_v22 = vadd.s32 %v614_v11, %v613_v8  ;;  %v634_v23 = vsel %vm632_vm14, 1, %v2534_v42  ;;  %v635_v26 = vsel %vm633_vm15, 1, %v2534_v42  ;;  %vm653_vm4 = vcmp.ge.s32.totalorder %v2781_v30, %v652_v9 }
 0x156   :  { %vm654_vm5 = vcmp.ge.s32.totalorder %v2783_v57, %v652_v9  ;;  %v636_v12 = vadd.s32 %v635_v26, %v634_v23  ;;  %v597_v13 = vcvt.s32.f32 %v595_v18  ;;  %v598_v27 = vcvt.s32.f32 %v596_v19 }
 0x157   :  { %557 = vadd.xlane.f32.xlu1 %v555_v6  ;;  %537 = vadd.xlane.f32.xlu0 %v535_v10  ;;  %v616_v32 = vand.u32 65535, %v615_v22  ;;  %v617_v33 = vshrl.u32 %v615_v22, 16  ;;  %v655_v16 = vsel %vm653_vm4, 1, %v2534_v42  ;;  %v656_v34 = vsel %vm654_vm5, 1, %v2534_v42 }
 0x158   :  { %v637_v17 = vand.u32 65535, %v636_v12  ;;  %v638_v0 = vshrl.u32 %v636_v12, 16  ;;  %v657_v37 = vadd.s32 %v656_v34, %v655_v16 }
 0x159   :  { %v618_v35 = vcvt.s32.f32 %v616_v32  ;;  %v619_v36 = vcvt.s32.f32 %v617_v33 }
 0x15a   :  { %v639_v2 = vcvt.s32.f32 %v637_v17  ;;  %v640_v38 = vcvt.s32.f32 %v638_v0  ;;  %v658_v20 = vand.u32 65535, %v657_v37  ;;  %v659_v21 = vshrl.u32 %v657_v37, 16 }
 0x15b   :  { %578 = vadd.xlane.f32.xlu1 %v576_v14  ;;  %580 = vadd.xlane.f32.xlu0 %v577_v15 }
 0x15c   :  { %v660_v29 = vcvt.s32.f32 %v658_v20  ;;  %v661_v39 = vcvt.s32.f32 %v659_v21 }
 0x15f   :  { %599 = vadd.xlane.f32.xlu1 %v597_v13  ;;  %601 = vadd.xlane.f32.xlu0 %v598_v27 }
 0x163   :  { %620 = vadd.xlane.f32.xlu1 %v618_v35  ;;  %622 = vadd.xlane.f32.xlu0 %v619_v36 }
 0x167   :  { %641 = vadd.xlane.f32.xlu1 %v639_v2  ;;  %643 = vadd.xlane.f32.xlu0 %v640_v38 }
 0x16b   :  { %662 = vadd.xlane.f32.xlu1 %v660_v29  ;;  %664 = vadd.xlane.f32.xlu0 %v661_v39 }
 0x1e0   :  { %v560_v40 = vpop.xlane.xlu1 %559  ;;  %v540_v41 = vpop.xlane.xlu0 %539 }
 0x1e1   :  { %v562_v44 = vcvt.f32.s32 %v560_v40  ;;  %v542_v45 = vcvt.f32.s32 %v540_v41 }
 0x1e3   :  { %v563_v52 = vshll.u32 %v562_v44, 16  ;;  %v543_v53 = vshll.u32 %v542_v45, 16 }
 0x1e4   :  { %v558_v1 = vpop.xlane.xlu1 %557  ;;  %v538_v3 = vpop.xlane.xlu0 %537 }
 0x1e5   :  { %v561_v48 = vcvt.f32.s32 %v558_v1  ;;  %v541_v50 = vcvt.f32.s32 %v538_v3 }
 0x1e7   :  { %v564_v56 = vadd.s32 %v563_v52, %v561_v48  ;;  %v544_v58 = vadd.s32 %v543_v53, %v541_v50 }
 0x1e8   :  { %v579_v46 = vpop.xlane.xlu1 %578  ;;  %v581_v47 = vpop.xlane.xlu0 %580 }
 0x1e9   :  { %v583_v51 = vcvt.f32.s32 %v581_v47  ;;  %v582_v7 = vcvt.f32.s32 %v579_v46  ;;  %vm565_vm6 = vcmp.ge.s32.totalorder %v564_v56, %v2816_v63  ;;  %vm545_vm7 = vcmp.ge.s32.totalorder %v544_v58, %v2816_v63 }
 0x1ea   :  { %v566_v14 = vsel %vm565_vm6, 1, %v2534_v42  ;;  %v546_v15 = vsel %vm545_vm7, 1, %v2534_v42 }
 0x1eb   :  { %v584_v54 = vshll.u32 %v583_v51, 16  ;;  %v567_v12 = vadd.s32 %v566_v14, %v546_v15 }
 0x1ec   :  { %v600_v4 = vpop.xlane.xlu1 %599  ;;  %v602_v55 = vpop.xlane.xlu0 %601 }
 0x1ed   :  { %v604_v59 = vcvt.f32.s32 %v602_v55  ;;  %v585_v60 = vadd.s32 %v584_v54, %v582_v7  ;;  %v603_v61 = vcvt.f32.s32 %v600_v4 }
 0x1ef   :  { %v605_v62 = vshll.u32 %v604_v59, 16  ;;  %vm586_vm8 = vcmp.ge.s32.totalorder %v585_v60, %v2816_v63 }
 0x1f0   :  { %v621_v5 = vpop.xlane.xlu1 %620  ;;  %v623_v6 = vpop.xlane.xlu0 %622  ;;  %v587_v26 = vsel %vm586_vm8, 1, %v2534_v42 }
 0x1f1   :  { %v606_v10 = vadd.s32 %v605_v62, %v603_v61  ;;  %v625_v8 = vcvt.f32.s32 %v623_v6  ;;  %v624_v11 = vcvt.f32.s32 %v621_v5  ;;  %v588_v34 = vadd.s32 %v587_v26, %v567_v12 }
 0x1f3   :  { %v626_v9 = vshll.u32 %v625_v8, 16  ;;  %vm607_vm9 = vcmp.ge.s32.totalorder %v606_v10, %v2816_v63 }
 0x1f4   :  { %v642_v18 = vpop.xlane.xlu1 %641  ;;  %v644_v19 = vpop.xlane.xlu0 %643  ;;  %v608_v32 = vsel %vm607_vm9, 1, %v2534_v42 }
 0x1f5   :  { %v627_v22 = vadd.s32 %v626_v9, %v624_v11  ;;  %v646_v23 = vcvt.f32.s32 %v644_v19  ;;  %v645_v13 = vcvt.f32.s32 %v642_v18  ;;  %v609_v0 = vadd.s32 %v608_v32, %v588_v34 }
 0x1f7   :  { %vm628_vm10 = vcmp.ge.s32.totalorder %v627_v22, %v2816_v63  ;;  %v647_v27 = vshll.u32 %v646_v23, 16 }
 0x1f8   :  { %v663_v33 = vpop.xlane.xlu1 %662  ;;  %v665_v16 = vpop.xlane.xlu0 %664  ;;  %v629_v36 = vsel %vm628_vm10, 1, %v2534_v42 }
 0x1f9   :  { %v648_v17 = vadd.s32 %v647_v27, %v645_v13  ;;  %v667_v35 = vcvt.f32.s32 %v665_v16  ;;  %v666_v37 = vcvt.f32.s32 %v663_v33  ;;  %v630_v20 = vadd.s32 %v629_v36, %v609_v0 }
 0x1fb   :  { %vm649_vm11 = vcmp.ge.s32.totalorder %v648_v17, %v2816_v63  ;;  %v668_v2 = vshll.u32 %v667_v35, 16 }
 0x1fc   :  { %v650_v38 = vsel %vm649_vm11, 1, %v2534_v42 }
 0x1fd   :  { %v669_v21 = vadd.s32 %v668_v2, %v666_v37  ;;  %v651_v29 = vadd.s32 %v650_v38, %v630_v20 }
 0x1ff   :  { %vm670_vm2 = vcmp.ge.s32.totalorder %v669_v21, %v2816_v63 }
 0x200   :  { %v671_v39 = vsel %vm670_vm2, 1, %v2534_v42 }
 0x201   :  { %v672_v40 = vadd.s32 %v671_v39, %v651_v29 }
 0x203   :  { %v673_v41 = vmul.u32 33554432, %v672_v40 }
 0x205   :  { %v2884_v1 = vor.u32 %v673_v41, %v2832_v25 }
 0x207   :  { %v695_v3 = vor.u32 8388608, %v2884_v1  ;;  %v675_v44 = vor.u32 4194304, %v2884_v1  ;;  %v716_v45 = vor.u32 12582912, %v2884_v1  ;;  %v737_v46 = vor.u32 16777216, %v2884_v1 }
 0x208   :  { %v758_v56 = vor.u32 20971520, %v2884_v1  ;;  %v779_v6 = vor.u32 25165824, %v2884_v1  ;;  %v800_v19 = vor.u32 29360128, %v2884_v1 }
 0x209   :  { %vm696_vm12 = vcmp.ge.s32.totalorder %v2781_v30, %v695_v3  ;;  %vm697_vm13 = vcmp.ge.s32.totalorder %v2783_v57, %v695_v3  ;;  %vm676_vm3 = vcmp.ge.s32.totalorder %v2781_v30, %v675_v44  ;;  %vm677_vm14 = vcmp.ge.s32.totalorder %v2783_v57, %v675_v44 }
 0x20a   :  { %v698_v47 = vsel %vm696_vm12, 1, %v2534_v42  ;;  %v699_v25 = vsel %vm697_vm13, 1, %v2534_v42  ;;  %v678_v48 = vsel %vm676_vm3, 1, %v2534_v42  ;;  %v679_v50 = vsel %vm677_vm14, 1, %v2534_v42 }
 0x20b   :  { %v700_v51 = vadd.s32 %v699_v25, %v698_v47  ;;  %v680_v52 = vadd.s32 %v679_v50, %v678_v48  ;;  %vm717_vm15 = vcmp.ge.s32.totalorder %v2781_v30, %v716_v45  ;;  %vm718_vm4 = vcmp.ge.s32.totalorder %v2783_v57, %v716_v45 }
 0x20c   :  { %v719_v53 = vsel %vm717_vm15, 1, %v2534_v42  ;;  %v720_v54 = vsel %vm718_vm4, 1, %v2534_v42  ;;  %vm738_vm5 = vcmp.ge.s32.totalorder %v2781_v30, %v737_v46  ;;  %vm739_vm6 = vcmp.ge.s32.totalorder %v2783_v57, %v737_v46 }
 0x20d   :  { %v702_v4 = vshrl.u32 %v700_v51, 16  ;;  %v682_v55 = vshrl.u32 %v680_v52, 16  ;;  %v701_v58 = vand.u32 65535, %v700_v51  ;;  %v681_v7 = vand.u32 65535, %v680_v52 }
 0x20e   :  { %v721_v59 = vadd.s32 %v720_v54, %v719_v53  ;;  %v740_v62 = vsel %vm738_vm5, 1, %v2534_v42  ;;  %v741_v5 = vsel %vm739_vm6, 1, %v2534_v42  ;;  %vm759_vm7 = vcmp.ge.s32.totalorder %v2781_v30, %v758_v56 }
 0x20f   :  { %v704_v60 = vcvt.s32.f32 %v702_v4  ;;  %v684_v61 = vcvt.s32.f32 %v682_v55  ;;  %vm760_vm8 = vcmp.ge.s32.totalorder %v2783_v57, %v758_v56  ;;  %v742_v11 = vadd.s32 %v741_v5, %v740_v62 }
 0x210   :  { %v722_v10 = vand.u32 65535, %v721_v59  ;;  %v723_v8 = vshrl.u32 %v721_v59, 16  ;;  %v703_v9 = vcvt.s32.f32 %v701_v58  ;;  %v683_v14 = vcvt.s32.f32 %v681_v7 }
 0x211   :  { %707 = vadd.xlane.f32.xlu1 %v704_v60  ;;  %687 = vadd.xlane.f32.xlu0 %v684_v61  ;;  %v761_v15 = vsel %vm759_vm7, 1, %v2534_v42  ;;  %v762_v18 = vsel %vm760_vm8, 1, %v2534_v42  ;;  %vm780_vm9 = vcmp.ge.s32.totalorder %v2781_v30, %v779_v6  ;;  %vm781_vm10 = vcmp.ge.s32.totalorder %v2783_v57, %v779_v6 }
 0x212   :  { %v724_v22 = vcvt.s32.f32 %v722_v10  ;;  %v725_v23 = vcvt.s32.f32 %v723_v8  ;;  %v743_v26 = vand.u32 65535, %v742_v11  ;;  %v744_v12 = vshrl.u32 %v742_v11, 16 }
 0x213   :  { %v763_v13 = vadd.s32 %v762_v18, %v761_v15  ;;  %v782_v27 = vsel %vm780_vm9, 1, %v2534_v42  ;;  %v783_v32 = vsel %vm781_vm10, 1, %v2534_v42  ;;  %vm801_vm11 = vcmp.ge.s32.totalorder %v2781_v30, %v800_v19 }
 0x214   :  { %vm802_vm2 = vcmp.ge.s32.totalorder %v2783_v57, %v800_v19  ;;  %v784_v33 = vadd.s32 %v783_v32, %v782_v27  ;;  %v745_v16 = vcvt.s32.f32 %v743_v26  ;;  %v746_v34 = vcvt.s32.f32 %v744_v12 }
 0x215   :  { %705 = vadd.xlane.f32.xlu1 %v703_v9  ;;  %685 = vadd.xlane.f32.xlu0 %v683_v14  ;;  %v764_v17 = vand.u32 65535, %v763_v13  ;;  %v765_v35 = vshrl.u32 %v763_v13, 16  ;;  %v803_v36 = vsel %vm801_vm11, 1, %v2534_v42  ;;  %v804_v0 = vsel %vm802_vm2, 1, %v2534_v42 }
 0x216   :  { %v785_v37 = vand.u32 65535, %v784_v33  ;;  %v786_v20 = vshrl.u32 %v784_v33, 16  ;;  %v805_v21 = vadd.s32 %v804_v0, %v803_v36 }
 0x217   :  { %v766_v2 = vcvt.s32.f32 %v764_v17  ;;  %v767_v38 = vcvt.s32.f32 %v765_v35 }
 0x218   :  { %v787_v29 = vcvt.s32.f32 %v785_v37  ;;  %v788_v39 = vcvt.s32.f32 %v786_v20  ;;  %v806_v40 = vand.u32 65535, %v805_v21  ;;  %v807_v41 = vshrl.u32 %v805_v21, 16 }
 0x219   :  { %726 = vadd.xlane.f32.xlu1 %v724_v22  ;;  %728 = vadd.xlane.f32.xlu0 %v725_v23 }
 0x21a   :  { %v808_v3 = vcvt.s32.f32 %v806_v40  ;;  %v809_v44 = vcvt.s32.f32 %v807_v41 }
 0x21d   :  { %747 = vadd.xlane.f32.xlu1 %v745_v16  ;;  %749 = vadd.xlane.f32.xlu0 %v746_v34 }
 0x221   :  { %768 = vadd.xlane.f32.xlu1 %v766_v2  ;;  %770 = vadd.xlane.f32.xlu0 %v767_v38 }
 0x225   :  { %789 = vadd.xlane.f32.xlu1 %v787_v29  ;;  %791 = vadd.xlane.f32.xlu0 %v788_v39 }
 0x229   :  { %810 = vadd.xlane.f32.xlu1 %v808_v3  ;;  %812 = vadd.xlane.f32.xlu0 %v809_v44 }
 0x29e   :  { %v708_v45 = vpop.xlane.xlu1 %707  ;;  %v688_v46 = vpop.xlane.xlu0 %687 }
 0x29f   :  { %v710_v48 = vcvt.f32.s32 %v708_v45  ;;  %v690_v50 = vcvt.f32.s32 %v688_v46 }
 0x2a1   :  { %v711_v55 = vshll.u32 %v710_v48, 16  ;;  %v691_v56 = vshll.u32 %v690_v50, 16 }
 0x2a2   :  { %v706_v47 = vpop.xlane.xlu1 %705  ;;  %v686_v25 = vpop.xlane.xlu0 %685 }
 0x2a3   :  { %v709_v53 = vcvt.f32.s32 %v706_v47  ;;  %v689_v54 = vcvt.f32.s32 %v686_v25 }
 0x2a5   :  { %v712_v60 = vadd.s32 %v711_v55, %v709_v53  ;;  %v692_v61 = vadd.s32 %v691_v56, %v689_v54 }
 0x2a6   :  { %v727_v51 = vpop.xlane.xlu1 %726  ;;  %v729_v52 = vpop.xlane.xlu0 %728 }
 0x2a7   :  { %v731_v4 = vcvt.f32.s32 %v729_v52  ;;  %v730_v62 = vcvt.f32.s32 %v727_v51  ;;  %vm713_vm12 = vcmp.ge.s32.totalorder %v712_v60, %v2816_v63  ;;  %vm693_vm13 = vcmp.ge.s32.totalorder %v692_v61, %v2816_v63 }
 0x2a8   :  { %v714_v22 = vsel %vm713_vm12, 1, %v2534_v42  ;;  %v694_v23 = vsel %vm693_vm13, 1, %v2534_v42 }
 0x2a9   :  { %v732_v58 = vshll.u32 %v731_v4, 16  ;;  %v715_v33 = vadd.s32 %v714_v22, %v694_v23 }
 0x2aa   :  { %v748_v7 = vpop.xlane.xlu1 %747  ;;  %v750_v59 = vpop.xlane.xlu0 %749 }
 0x2ab   :  { %v752_v5 = vcvt.f32.s32 %v750_v59  ;;  %v733_v6 = vadd.s32 %v732_v58, %v730_v62  ;;  %v751_v10 = vcvt.f32.s32 %v748_v7 }
 0x2ad   :  { %v753_v8 = vshll.u32 %v752_v5, 16  ;;  %vm734_vm3 = vcmp.ge.s32.totalorder %v733_v6, %v2816_v63 }
 0x2ae   :  { %v769_v11 = vpop.xlane.xlu1 %768  ;;  %v771_v9 = vpop.xlane.xlu0 %770  ;;  %v735_v32 = vsel %vm734_vm3, 1, %v2534_v42 }
 0x2af   :  { %v754_v14 = vadd.s32 %v753_v8, %v751_v10  ;;  %v773_v15 = vcvt.f32.s32 %v771_v9  ;;  %v772_v18 = vcvt.f32.s32 %v769_v11  ;;  %v736_v0 = vadd.s32 %v735_v32, %v715_v33 }
 0x2b1   :  { %v774_v19 = vshll.u32 %v773_v15, 16  ;;  %vm755_vm14 = vcmp.ge.s32.totalorder %v754_v14, %v2816_v63 }
 0x2b2   :  { %v790_v26 = vpop.xlane.xlu1 %789  ;;  %v792_v12 = vpop.xlane.xlu0 %791  ;;  %v756_v17 = vsel %vm755_vm14, 1, %v2534_v42 }
 0x2b3   :  { %v775_v13 = vadd.s32 %v774_v19, %v772_v18  ;;  %v794_v27 = vcvt.f32.s32 %v792_v12  ;;  %v793_v16 = vcvt.f32.s32 %v790_v26  ;;  %v757_v20 = vadd.s32 %v756_v17, %v736_v0 }
 0x2b5   :  { %vm776_vm15 = vcmp.ge.s32.totalorder %v775_v13, %v2816_v63  ;;  %v795_v34 = vshll.u32 %v794_v27, 16 }
 0x2b6   :  { %v811_v35 = vpop.xlane.xlu1 %810  ;;  %v813_v36 = vpop.xlane.xlu0 %812  ;;  %v777_v38 = vsel %vm776_vm15, 1, %v2534_v42 }
 0x2b7   :  { %v796_v37 = vadd.s32 %v795_v34, %v793_v16  ;;  %v815_v2 = vcvt.f32.s32 %v813_v36  ;;  %v814_v21 = vcvt.f32.s32 %v811_v35  ;;  %v778_v40 = vadd.s32 %v777_v38, %v757_v20 }
 0x2b9   :  { %vm797_vm4 = vcmp.ge.s32.totalorder %v796_v37, %v2816_v63  ;;  %v816_v29 = vshll.u32 %v815_v2, 16 }
 0x2ba   :  { %v798_v39 = vsel %vm797_vm4, 1, %v2534_v42 }
 0x2bb   :  { %v817_v41 = vadd.s32 %v816_v29, %v814_v21  ;;  %v799_v3 = vadd.s32 %v798_v39, %v778_v40 }
 0x2bd   :  { %vm818_vm5 = vcmp.ge.s32.totalorder %v817_v41, %v2816_v63 }
 0x2be   :  { %v819_v44 = vsel %vm818_vm5, 1, %v2534_v42 }
 0x2bf   :  { %v820_v45 = vadd.s32 %v819_v44, %v799_v3 }
 0x2c1   :  { %v821_v46 = vmul.u32 4194304, %v820_v45 }
 0x2c3   :  { %v2936_v47 = vor.u32 %v821_v46, %v2884_v1 }
 0x2c5   :  { %v843_v25 = vor.u32 1048576, %v2936_v47  ;;  %v823_v48 = vor.u32 524288, %v2936_v47  ;;  %v864_v50 = vor.u32 1572864, %v2936_v47  ;;  %v885_v51 = vor.u32 2097152, %v2936_v47 }
 0x2c6   :  { %v906_v60 = vor.u32 2621440, %v2936_v47  ;;  %v927_v9 = vor.u32 3145728, %v2936_v47  ;;  %v948_v12 = vor.u32 3670016, %v2936_v47 }
 0x2c7   :  { %vm844_vm6 = vcmp.ge.s32.totalorder %v2781_v30, %v843_v25  ;;  %vm845_vm7 = vcmp.ge.s32.totalorder %v2783_v57, %v843_v25  ;;  %vm824_vm8 = vcmp.ge.s32.totalorder %v2781_v30, %v823_v48  ;;  %vm825_vm9 = vcmp.ge.s32.totalorder %v2783_v57, %v823_v48 }
 0x2c8   :  { %v846_v52 = vsel %vm844_vm6, 1, %v2534_v42  ;;  %v847_v1 = vsel %vm845_vm7, 1, %v2534_v42  ;;  %v826_v53 = vsel %vm824_vm8, 1, %v2534_v42  ;;  %v827_v54 = vsel %vm825_vm9, 1, %v2534_v42 }
 0x2c9   :  { %v848_v4 = vadd.s32 %v847_v1, %v846_v52  ;;  %v828_v55 = vadd.s32 %v827_v54, %v826_v53  ;;  %vm865_vm10 = vcmp.ge.s32.totalorder %v2781_v30, %v864_v50  ;;  %vm866_vm11 = vcmp.ge.s32.totalorder %v2783_v57, %v864_v50 }
 0x2ca   :  { %v867_v56 = vsel %vm865_vm10, 1, %v2534_v42  ;;  %v868_v58 = vsel %vm866_vm11, 1, %v2534_v42  ;;  %vm886_vm2 = vcmp.ge.s32.totalorder %v2781_v30, %v885_v51  ;;  %vm887_vm12 = vcmp.ge.s32.totalorder %v2783_v57, %v885_v51 }
 0x2cb   :  { %v850_v7 = vshrl.u32 %v848_v4, 16  ;;  %v830_v59 = vshrl.u32 %v828_v55, 16  ;;  %v849_v61 = vand.u32 65535, %v848_v4  ;;  %v829_v62 = vand.u32 65535, %v828_v55 }
 0x2cc   :  { %v869_v5 = vadd.s32 %v868_v58, %v867_v56  ;;  %v888_v8 = vsel %vm886_vm2, 1, %v2534_v42  ;;  %v889_v11 = vsel %vm887_vm12, 1, %v2534_v42  ;;  %vm907_vm13 = vcmp.ge.s32.totalorder %v2781_v30, %v906_v60 }
 0x2cd   :  { %v852_v6 = vcvt.s32.f32 %v850_v7  ;;  %v832_v10 = vcvt.s32.f32 %v830_v59  ;;  %vm908_vm3 = vcmp.ge.s32.totalorder %v2783_v57, %v906_v60  ;;  %v890_v18 = vadd.s32 %v889_v11, %v888_v8 }
 0x2ce   :  { %v870_v14 = vand.u32 65535, %v869_v5  ;;  %v871_v15 = vshrl.u32 %v869_v5, 16  ;;  %v851_v19 = vcvt.s32.f32 %v849_v61  ;;  %v831_v22 = vcvt.s32.f32 %v829_v62 }
 0x2cf   :  { %855 = vadd.xlane.f32.xlu1 %v852_v6  ;;  %835 = vadd.xlane.f32.xlu0 %v832_v10  ;;  %v909_v23 = vsel %vm907_vm13, 1, %v2534_v42  ;;  %v910_v26 = vsel %vm908_vm3, 1, %v2534_v42  ;;  %vm928_vm14 = vcmp.ge.s32.totalorder %v2781_v30, %v927_v9  ;;  %vm929_vm15 = vcmp.ge.s32.totalorder %v2783_v57, %v927_v9 }
 0x2d0   :  { %v872_v13 = vcvt.s32.f32 %v870_v14  ;;  %v873_v27 = vcvt.s32.f32 %v871_v15  ;;  %v891_v32 = vand.u32 65535, %v890_v18  ;;  %v892_v33 = vshrl.u32 %v890_v18, 16 }
 0x2d1   :  { %v911_v16 = vadd.s32 %v910_v26, %v909_v23  ;;  %v930_v34 = vsel %vm928_vm14, 1, %v2534_v42  ;;  %v931_v17 = vsel %vm929_vm15, 1, %v2534_v42  ;;  %vm949_vm4 = vcmp.ge.s32.totalorder %v2781_v30, %v948_v12 }
 0x2d2   :  { %vm950_vm5 = vcmp.ge.s32.totalorder %v2783_v57, %v948_v12  ;;  %v932_v35 = vadd.s32 %v931_v17, %v930_v34  ;;  %v893_v36 = vcvt.s32.f32 %v891_v32  ;;  %v894_v0 = vcvt.s32.f32 %v892_v33 }
 0x2d3   :  { %853 = vadd.xlane.f32.xlu1 %v851_v19  ;;  %833 = vadd.xlane.f32.xlu0 %v831_v22  ;;  %v912_v37 = vand.u32 65535, %v911_v16  ;;  %v913_v2 = vshrl.u32 %v911_v16, 16  ;;  %v951_v38 = vsel %vm949_vm4, 1, %v2534_v42  ;;  %v952_v20 = vsel %vm950_vm5, 1, %v2534_v42 }
 0x2d4   :  { %v933_v21 = vand.u32 65535, %v932_v35  ;;  %v934_v40 = vshrl.u32 %v932_v35, 16  ;;  %v953_v41 = vadd.s32 %v952_v20, %v951_v38 }
 0x2d5   :  { %v914_v29 = vcvt.s32.f32 %v912_v37  ;;  %v915_v39 = vcvt.s32.f32 %v913_v2 }
 0x2d6   :  { %v935_v3 = vcvt.s32.f32 %v933_v21  ;;  %v936_v44 = vcvt.s32.f32 %v934_v40  ;;  %v954_v45 = vand.u32 65535, %v953_v41  ;;  %v955_v46 = vshrl.u32 %v953_v41, 16 }
 0x2d7   :  { %874 = vadd.xlane.f32.xlu1 %v872_v13  ;;  %876 = vadd.xlane.f32.xlu0 %v873_v27 }
 0x2d8   :  { %v956_v25 = vcvt.s32.f32 %v954_v45  ;;  %v957_v48 = vcvt.s32.f32 %v955_v46 }
 0x2db   :  { %895 = vadd.xlane.f32.xlu1 %v893_v36  ;;  %897 = vadd.xlane.f32.xlu0 %v894_v0 }
 0x2df   :  { %916 = vadd.xlane.f32.xlu1 %v914_v29  ;;  %918 = vadd.xlane.f32.xlu0 %v915_v39 }
 0x2e3   :  { %937 = vadd.xlane.f32.xlu1 %v935_v3  ;;  %939 = vadd.xlane.f32.xlu0 %v936_v44 }
 0x2e7   :  { %958 = vadd.xlane.f32.xlu1 %v956_v25  ;;  %960 = vadd.xlane.f32.xlu0 %v957_v48 }
 0x35c   :  { %v856_v50 = vpop.xlane.xlu1 %855  ;;  %v836_v51 = vpop.xlane.xlu0 %835 }
 0x35d   :  { %v858_v53 = vcvt.f32.s32 %v856_v50  ;;  %v838_v54 = vcvt.f32.s32 %v836_v51 }
 0x35f   :  { %v859_v59 = vshll.u32 %v858_v53, 16  ;;  %v839_v60 = vshll.u32 %v838_v54, 16 }
 0x360   :  { %v854_v52 = vpop.xlane.xlu1 %853  ;;  %v834_v1 = vpop.xlane.xlu0 %833 }
 0x361   :  { %v857_v56 = vcvt.f32.s32 %v854_v52  ;;  %v837_v58 = vcvt.f32.s32 %v834_v1 }
 0x363   :  { %v860_v6 = vadd.s32 %v859_v59, %v857_v56  ;;  %v840_v10 = vadd.s32 %v839_v60, %v837_v58 }
 0x364   :  { %v875_v4 = vpop.xlane.xlu1 %874  ;;  %v877_v55 = vpop.xlane.xlu0 %876 }
 0x365   :  { %v879_v7 = vcvt.f32.s32 %v877_v55  ;;  %v878_v8 = vcvt.f32.s32 %v875_v4  ;;  %vm861_vm6 = vcmp.ge.s32.totalorder %v860_v6, %v2816_v63  ;;  %vm841_vm7 = vcmp.ge.s32.totalorder %v840_v10, %v2816_v63 }
 0x366   :  { %v862_v13 = vsel %vm861_vm6, 1, %v2534_v42  ;;  %v842_v27 = vsel %vm841_vm7, 1, %v2534_v42 }
 0x367   :  { %v880_v61 = vshll.u32 %v879_v7, 16  ;;  %v863_v35 = vadd.s32 %v862_v13, %v842_v27 }
 0x368   :  { %v896_v62 = vpop.xlane.xlu1 %895  ;;  %v898_v5 = vpop.xlane.xlu0 %897 }
 0x369   :  { %v900_v11 = vcvt.f32.s32 %v898_v5  ;;  %v881_v9 = vadd.s32 %v880_v61, %v878_v8  ;;  %v899_v14 = vcvt.f32.s32 %v896_v62 }
 0x36b   :  { %v901_v15 = vshll.u32 %v900_v11, 16  ;;  %vm882_vm8 = vcmp.ge.s32.totalorder %v881_v9, %v2816_v63 }
 0x36c   :  { %v917_v18 = vpop.xlane.xlu1 %916  ;;  %v919_v19 = vpop.xlane.xlu0 %918  ;;  %v883_v17 = vsel %vm882_vm8, 1, %v2534_v42 }
 0x36d   :  { %v902_v22 = vadd.s32 %v901_v15, %v899_v14  ;;  %v921_v23 = vcvt.f32.s32 %v919_v19  ;;  %v920_v26 = vcvt.f32.s32 %v917_v18  ;;  %v884_v20 = vadd.s32 %v883_v17, %v863_v35 }
 0x36f   :  { %v922_v12 = vshll.u32 %v921_v23, 16  ;;  %vm903_vm9 = vcmp.ge.s32.totalorder %v902_v22, %v2816_v63 }
 0x370   :  { %v938_v32 = vpop.xlane.xlu1 %937  ;;  %v940_v33 = vpop.xlane.xlu0 %939  ;;  %v904_v37 = vsel %vm903_vm9, 1, %v2534_v42 }
 0x371   :  { %v923_v16 = vadd.s32 %v922_v12, %v920_v26  ;;  %v942_v34 = vcvt.f32.s32 %v940_v33  ;;  %v941_v36 = vcvt.f32.s32 %v938_v32  ;;  %v905_v40 = vadd.s32 %v904_v37, %v884_v20 }
 0x373   :  { %vm924_vm10 = vcmp.ge.s32.totalorder %v923_v16, %v2816_v63  ;;  %v943_v0 = vshll.u32 %v942_v34, 16 }
 0x374   :  { %v959_v2 = vpop.xlane.xlu1 %958  ;;  %v961_v38 = vpop.xlane.xlu0 %960  ;;  %v925_v39 = vsel %vm924_vm10, 1, %v2534_v42 }
 0x375   :  { %v944_v21 = vadd.s32 %v943_v0, %v941_v36  ;;  %v963_v29 = vcvt.f32.s32 %v961_v38  ;;  %v962_v41 = vcvt.f32.s32 %v959_v2  ;;  %v926_v45 = vadd.s32 %v925_v39, %v905_v40 }
 0x377   :  { %vm945_vm11 = vcmp.ge.s32.totalorder %v944_v21, %v2816_v63  ;;  %v964_v3 = vshll.u32 %v963_v29, 16 }
 0x378   :  { %v946_v44 = vsel %vm945_vm11, 1, %v2534_v42 }
 0x379   :  { %v965_v46 = vadd.s32 %v964_v3, %v962_v41  ;;  %v947_v25 = vadd.s32 %v946_v44, %v926_v45 }
 0x37b   :  { %vm966_vm2 = vcmp.ge.s32.totalorder %v965_v46, %v2816_v63 }
 0x37c   :  { %v967_v48 = vsel %vm966_vm2, 1, %v2534_v42 }
 0x37d   :  { %v968_v50 = vadd.s32 %v967_v48, %v947_v25 }
 0x37f   :  { %v969_v51 = vmul.u32 524288, %v968_v50 }
 0x381   :  { %v2988_v52 = vor.u32 %v969_v51, %v2936_v47 }
 0x383   :  { %v991_v1 = vor.u32 131072, %v2988_v52  ;;  %v971_v53 = vor.u32 65536, %v2988_v52  ;;  %v1012_v54 = vor.u32 196608, %v2988_v52  ;;  %v1033_v4 = vor.u32 262144, %v2988_v52 }
 0x384   :  { %v1054_v6 = vor.u32 327680, %v2988_v52  ;;  %v1075_v19 = vor.u32 393216, %v2988_v52  ;;  %v1096_v33 = vor.u32 458752, %v2988_v52 }
 0x385   :  { %vm992_vm12 = vcmp.ge.s32.totalorder %v2781_v30, %v991_v1  ;;  %vm993_vm13 = vcmp.ge.s32.totalorder %v2783_v57, %v991_v1  ;;  %vm972_vm3 = vcmp.ge.s32.totalorder %v2781_v30, %v971_v53  ;;  %vm973_vm14 = vcmp.ge.s32.totalorder %v2783_v57, %v971_v53 }
 0x386   :  { %v994_v55 = vsel %vm992_vm12, 1, %v2534_v42  ;;  %v995_v47 = vsel %vm993_vm13, 1, %v2534_v42  ;;  %v974_v56 = vsel %vm972_vm3, 1, %v2534_v42  ;;  %v975_v58 = vsel %vm973_vm14, 1, %v2534_v42 }
 0x387   :  { %v996_v7 = vadd.s32 %v995_v47, %v994_v55  ;;  %v976_v59 = vadd.s32 %v975_v58, %v974_v56  ;;  %vm1013_vm15 = vcmp.ge.s32.totalorder %v2781_v30, %v1012_v54  ;;  %vm1014_vm4 = vcmp.ge.s32.totalorder %v2783_v57, %v1012_v54 }
 0x388   :  { %v1015_v60 = vsel %vm1013_vm15, 1, %v2534_v42  ;;  %v1016_v61 = vsel %vm1014_vm4, 1, %v2534_v42  ;;  %vm1034_vm5 = vcmp.ge.s32.totalorder %v2781_v30, %v1033_v4  ;;  %vm1035_vm6 = vcmp.ge.s32.totalorder %v2783_v57, %v1033_v4 }
 0x389   :  { %v998_v62 = vshrl.u32 %v996_v7, 16  ;;  %v978_v5 = vshrl.u32 %v976_v59, 16  ;;  %v997_v10 = vand.u32 65535, %v996_v7  ;;  %v977_v8 = vand.u32 65535, %v976_v59 }
 0x38a   :  { %v1017_v11 = vadd.s32 %v1016_v61, %v1015_v60  ;;  %v1036_v15 = vsel %vm1034_vm5, 1, %v2534_v42  ;;  %v1037_v18 = vsel %vm1035_vm6, 1, %v2534_v42  ;;  %vm1055_vm7 = vcmp.ge.s32.totalorder %v2781_v30, %v1054_v6 }
 0x38b   :  { %v1000_v9 = vcvt.s32.f32 %v998_v62  ;;  %v980_v14 = vcvt.s32.f32 %v978_v5  ;;  %vm1056_vm8 = vcmp.ge.s32.totalorder %v2783_v57, %v1054_v6  ;;  %v1038_v26 = vadd.s32 %v1037_v18, %v1036_v15 }
 0x38c   :  { %v1018_v22 = vand.u32 65535, %v1017_v11  ;;  %v1019_v23 = vshrl.u32 %v1017_v11, 16  ;;  %v999_v12 = vcvt.s32.f32 %v997_v10  ;;  %v979_v13 = vcvt.s32.f32 %v977_v8 }
 0x38d   :  { %1003 = vadd.xlane.f32.xlu1 %v1000_v9  ;;  %983 = vadd.xlane.f32.xlu0 %v980_v14  ;;  %v1057_v27 = vsel %vm1055_vm7, 1, %v2534_v42  ;;  %v1058_v32 = vsel %vm1056_vm8, 1, %v2534_v42  ;;  %vm1076_vm9 = vcmp.ge.s32.totalorder %v2781_v30, %v1075_v19  ;;  %vm1077_vm10 = vcmp.ge.s32.totalorder %v2783_v57, %v1075_v19 }
 0x38e   :  { %v1020_v16 = vcvt.s32.f32 %v1018_v22  ;;  %v1021_v34 = vcvt.s32.f32 %v1019_v23  ;;  %v1039_v17 = vand.u32 65535, %v1038_v26  ;;  %v1040_v35 = vshrl.u32 %v1038_v26, 16 }
 0x38f   :  { %v1059_v36 = vadd.s32 %v1058_v32, %v1057_v27  ;;  %v1078_v0 = vsel %vm1076_vm9, 1, %v2534_v42  ;;  %v1079_v37 = vsel %vm1077_vm10, 1, %v2534_v42  ;;  %vm1097_vm11 = vcmp.ge.s32.totalorder %v2781_v30, %v1096_v33 }
 0x390   :  { %vm1098_vm2 = vcmp.ge.s32.totalorder %v2783_v57, %v1096_v33  ;;  %v1080_v2 = vadd.s32 %v1079_v37, %v1078_v0  ;;  %v1041_v38 = vcvt.s32.f32 %v1039_v17  ;;  %v1042_v20 = vcvt.s32.f32 %v1040_v35 }
 0x391   :  { %1001 = vadd.xlane.f32.xlu1 %v999_v12  ;;  %981 = vadd.xlane.f32.xlu0 %v979_v13  ;;  %v1060_v21 = vand.u32 65535, %v1059_v36  ;;  %v1061_v29 = vshrl.u32 %v1059_v36, 16  ;;  %v1099_v39 = vsel %vm1097_vm11, 1, %v2534_v42  ;;  %v1100_v40 = vsel %vm1098_vm2, 1, %v2534_v42 }
 0x392   :  { %v1081_v41 = vand.u32 65535, %v1080_v2  ;;  %v1082_v45 = vshrl.u32 %v1080_v2, 16  ;;  %v1101_v46 = vadd.s32 %v1100_v40, %v1099_v39 }
 0x393   :  { %v1062_v3 = vcvt.s32.f32 %v1060_v21  ;;  %v1063_v44 = vcvt.s32.f32 %v1061_v29 }
 0x394   :  { %v1083_v25 = vcvt.s32.f32 %v1081_v41  ;;  %v1084_v48 = vcvt.s32.f32 %v1082_v45  ;;  %v1102_v50 = vand.u32 65535, %v1101_v46  ;;  %v1103_v51 = vshrl.u32 %v1101_v46, 16 }
 0x395   :  { %1022 = vadd.xlane.f32.xlu1 %v1020_v16  ;;  %1024 = vadd.xlane.f32.xlu0 %v1021_v34 }
 0x396   :  { %v1104_v1 = vcvt.s32.f32 %v1102_v50  ;;  %v1105_v53 = vcvt.s32.f32 %v1103_v51 }
 0x399   :  { %1043 = vadd.xlane.f32.xlu1 %v1041_v38  ;;  %1045 = vadd.xlane.f32.xlu0 %v1042_v20 }
 0x39d   :  { %1064 = vadd.xlane.f32.xlu1 %v1062_v3  ;;  %1066 = vadd.xlane.f32.xlu0 %v1063_v44 }
 0x3a1   :  { %1085 = vadd.xlane.f32.xlu1 %v1083_v25  ;;  %1087 = vadd.xlane.f32.xlu0 %v1084_v48 }
 0x3a5   :  { %1106 = vadd.xlane.f32.xlu1 %v1104_v1  ;;  %1108 = vadd.xlane.f32.xlu0 %v1105_v53 }
 0x41a   :  { %v1004_v54 = vpop.xlane.xlu1 %1003  ;;  %v984_v4 = vpop.xlane.xlu0 %983 }
 0x41b   :  { %v1006_v56 = vcvt.f32.s32 %v1004_v54  ;;  %v986_v58 = vcvt.f32.s32 %v984_v4 }
 0x41d   :  { %v1007_v5 = vshll.u32 %v1006_v56, 16  ;;  %v987_v6 = vshll.u32 %v986_v58, 16 }
 0x41e   :  { %v1002_v55 = vpop.xlane.xlu1 %1001  ;;  %v982_v47 = vpop.xlane.xlu0 %981 }
 0x41f   :  { %v1005_v60 = vcvt.f32.s32 %v1002_v55  ;;  %v985_v61 = vcvt.f32.s32 %v982_v47 }
 0x421   :  { %v1008_v9 = vadd.s32 %v1007_v5, %v1005_v60  ;;  %v988_v14 = vadd.s32 %v987_v6, %v985_v61 }
 0x422   :  { %v1023_v7 = vpop.xlane.xlu1 %1022  ;;  %v1025_v59 = vpop.xlane.xlu0 %1024 }
 0x423   :  { %v1027_v62 = vcvt.f32.s32 %v1025_v59  ;;  %v1026_v15 = vcvt.f32.s32 %v1023_v7  ;;  %vm1009_vm12 = vcmp.ge.s32.totalorder %v1008_v9, %v2816_v63  ;;  %vm989_vm13 = vcmp.ge.s32.totalorder %v988_v14, %v2816_v63 }
 0x424   :  { %v1010_v16 = vsel %vm1009_vm12, 1, %v2534_v42  ;;  %v990_v34 = vsel %vm989_vm13, 1, %v2534_v42 }
 0x425   :  { %v1028_v10 = vshll.u32 %v1027_v62, 16  ;;  %v1011_v2 = vadd.s32 %v1010_v16, %v990_v34 }
 0x426   :  { %v1044_v8 = vpop.xlane.xlu1 %1043  ;;  %v1046_v11 = vpop.xlane.xlu0 %1045 }
 0x427   :  { %v1048_v18 = vcvt.f32.s32 %v1046_v11  ;;  %v1029_v19 = vadd.s32 %v1028_v10, %v1026_v15  ;;  %v1047_v22 = vcvt.f32.s32 %v1044_v8 }
 0x429   :  { %v1049_v23 = vshll.u32 %v1048_v18, 16  ;;  %vm1030_vm3 = vcmp.ge.s32.totalorder %v1029_v19, %v2816_v63 }
 0x42a   :  { %v1065_v26 = vpop.xlane.xlu1 %1064  ;;  %v1067_v12 = vpop.xlane.xlu0 %1066  ;;  %v1031_v37 = vsel %vm1030_vm3, 1, %v2534_v42 }
 0x42b   :  { %v1050_v13 = vadd.s32 %v1049_v23, %v1047_v22  ;;  %v1069_v27 = vcvt.f32.s32 %v1067_v12  ;;  %v1068_v32 = vcvt.f32.s32 %v1065_v26  ;;  %v1032_v40 = vadd.s32 %v1031_v37, %v1011_v2 }
 0x42d   :  { %v1070_v33 = vshll.u32 %v1069_v27, 16  ;;  %vm1051_vm14 = vcmp.ge.s32.totalorder %v1050_v13, %v2816_v63 }
 0x42e   :  { %v1086_v17 = vpop.xlane.xlu1 %1085  ;;  %v1088_v35 = vpop.xlane.xlu0 %1087  ;;  %v1052_v21 = vsel %vm1051_vm14, 1, %v2534_v42 }
 0x42f   :  { %v1071_v36 = vadd.s32 %v1070_v33, %v1068_v32  ;;  %v1090_v0 = vcvt.f32.s32 %v1088_v35  ;;  %v1089_v38 = vcvt.f32.s32 %v1086_v17  ;;  %v1053_v45 = vadd.s32 %v1052_v21, %v1032_v40 }
 0x431   :  { %vm1072_vm15 = vcmp.ge.s32.totalorder %v1071_v36, %v2816_v63  ;;  %v1091_v20 = vshll.u32 %v1090_v0, 16 }
 0x432   :  { %v1107_v29 = vpop.xlane.xlu1 %1106  ;;  %v1109_v39 = vpop.xlane.xlu0 %1108  ;;  %v1073_v44 = vsel %vm1072_vm15, 1, %v2534_v42 }
 0x433   :  { %v1092_v41 = vadd.s32 %v1091_v20, %v1089_v38  ;;  %v1111_v3 = vcvt.f32.s32 %v1109_v39  ;;  %v1110_v46 = vcvt.f32.s32 %v1107_v29  ;;  %v1074_v50 = vadd.s32 %v1073_v44, %v1053_v45 }
 0x435   :  { %vm1093_vm4 = vcmp.ge.s32.totalorder %v1092_v41, %v2816_v63  ;;  %v1112_v25 = vshll.u32 %v1111_v3, 16 }
 0x436   :  { %v1094_v48 = vsel %vm1093_vm4, 1, %v2534_v42 }
 0x437   :  { %v1113_v51 = vadd.s32 %v1112_v25, %v1110_v46  ;;  %v1095_v1 = vadd.s32 %v1094_v48, %v1074_v50 }
 0x439   :  { %vm1114_vm5 = vcmp.ge.s32.totalorder %v1113_v51, %v2816_v63 }
 0x43a   :  { %v1115_v53 = vsel %vm1114_vm5, 1, %v2534_v42 }
 0x43b   :  { %v1116_v54 = vadd.s32 %v1115_v53, %v1095_v1 }
 0x43d   :  { %v1117_v4 = vmul.u32 65536, %v1116_v54 }
 0x43f   :  { %v3040_v55 = vor.u32 %v1117_v4, %v2988_v52 }
 0x441   :  { %v1139_v47 = vor.u32 16384, %v3040_v55  ;;  %v1119_v56 = vor.u32 8192, %v3040_v55  ;;  %v1160_v58 = vor.u32 24576, %v3040_v55  ;;  %v1181_v7 = vor.u32 32768, %v3040_v55 }
 0x442   :  { %v1202_v9 = vor.u32 40960, %v3040_v55  ;;  %v1223_v12 = vor.u32 49152, %v3040_v55  ;;  %v1244_v35 = vor.u32 57344, %v3040_v55 }
 0x443   :  { %vm1140_vm6 = vcmp.ge.s32.totalorder %v2781_v30, %v1139_v47  ;;  %vm1141_vm7 = vcmp.ge.s32.totalorder %v2783_v57, %v1139_v47  ;;  %vm1120_vm8 = vcmp.ge.s32.totalorder %v2781_v30, %v1119_v56  ;;  %vm1121_vm9 = vcmp.ge.s32.totalorder %v2783_v57, %v1119_v56 }
 0x444   :  { %v1142_v59 = vsel %vm1140_vm6, 1, %v2534_v42  ;;  %v1143_v52 = vsel %vm1141_vm7, 1, %v2534_v42  ;;  %v1122_v60 = vsel %vm1120_vm8, 1, %v2534_v42  ;;  %v1123_v61 = vsel %vm1121_vm9, 1, %v2534_v42 }
 0x445   :  { %v1144_v62 = vadd.s32 %v1143_v52, %v1142_v59  ;;  %v1124_v5 = vadd.s32 %v1123_v61, %v1122_v60  ;;  %vm1161_vm10 = vcmp.ge.s32.totalorder %v2781_v30, %v1160_v58  ;;  %vm1162_vm11 = vcmp.ge.s32.totalorder %v2783_v57, %v1160_v58 }
 0x446   :  { %v1163_v6 = vsel %vm1161_vm10, 1, %v2534_v42  ;;  %v1164_v10 = vsel %vm1162_vm11, 1, %v2534_v42  ;;  %vm1182_vm2 = vcmp.ge.s32.totalorder %v2781_v30, %v1181_v7  ;;  %vm1183_vm12 = vcmp.ge.s32.totalorder %v2783_v57, %v1181_v7 }
 0x447   :  { %v1146_v8 = vshrl.u32 %v1144_v62, 16  ;;  %v1126_v11 = vshrl.u32 %v1124_v5, 16  ;;  %v1145_v14 = vand.u32 65535, %v1144_v62  ;;  %v1125_v15 = vand.u32 65535, %v1124_v5 }
 0x448   :  { %v1165_v18 = vadd.s32 %v1164_v10, %v1163_v6  ;;  %v1184_v23 = vsel %vm1182_vm2, 1, %v2534_v42  ;;  %v1185_v26 = vsel %vm1183_vm12, 1, %v2534_v42  ;;  %vm1203_vm13 = vcmp.ge.s32.totalorder %v2781_v30, %v1202_v9 }
 0x449   :  { %v1148_v19 = vcvt.s32.f32 %v1146_v8  ;;  %v1128_v22 = vcvt.s32.f32 %v1126_v11  ;;  %vm1204_vm3 = vcmp.ge.s32.totalorder %v2783_v57, %v1202_v9  ;;  %v1186_v32 = vadd.s32 %v1185_v26, %v1184_v23 }
 0x44a   :  { %v1166_v13 = vand.u32 65535, %v1165_v18  ;;  %v1167_v27 = vshrl.u32 %v1165_v18, 16  ;;  %v1147_v33 = vcvt.s32.f32 %v1145_v14  ;;  %v1127_v16 = vcvt.s32.f32 %v1125_v15 }
 0x44b   :  { %1151 = vadd.xlane.f32.xlu1 %v1148_v19  ;;  %1131 = vadd.xlane.f32.xlu0 %v1128_v22  ;;  %v1205_v34 = vsel %vm1203_vm13, 1, %v2534_v42  ;;  %v1206_v17 = vsel %vm1204_vm3, 1, %v2534_v42  ;;  %vm1224_vm14 = vcmp.ge.s32.totalorder %v2781_v30, %v1223_v12  ;;  %vm1225_vm15 = vcmp.ge.s32.totalorder %v2783_v57, %v1223_v12 }
 0x44c   :  { %v1168_v36 = vcvt.s32.f32 %v1166_v13  ;;  %v1169_v0 = vcvt.s32.f32 %v1167_v27  ;;  %v1187_v37 = vand.u32 65535, %v1186_v32  ;;  %v1188_v2 = vshrl.u32 %v1186_v32, 16 }
 0x44d   :  { %v1207_v38 = vadd.s32 %v1206_v17, %v1205_v34  ;;  %v1226_v20 = vsel %vm1224_vm14, 1, %v2534_v42  ;;  %v1227_v21 = vsel %vm1225_vm15, 1, %v2534_v42  ;;  %vm1245_vm4 = vcmp.ge.s32.totalorder %v2781_v30, %v1244_v35 }
 0x44e   :  { %vm1246_vm5 = vcmp.ge.s32.totalorder %v2783_v57, %v1244_v35  ;;  %v1228_v29 = vadd.s32 %v1227_v21, %v1226_v20  ;;  %v1189_v39 = vcvt.s32.f32 %v1187_v37  ;;  %v1190_v40 = vcvt.s32.f32 %v1188_v2 }
 0x44f   :  { %1149 = vadd.xlane.f32.xlu1 %v1147_v33  ;;  %1129 = vadd.xlane.f32.xlu0 %v1127_v16  ;;  %v1208_v41 = vand.u32 65535, %v1207_v38  ;;  %v1209_v3 = vshrl.u32 %v1207_v38, 16  ;;  %v1247_v44 = vsel %vm1245_vm4, 1, %v2534_v42  ;;  %v1248_v45 = vsel %vm1246_vm5, 1, %v2534_v42 }
 0x450   :  { %v1229_v46 = vand.u32 65535, %v1228_v29  ;;  %v1230_v50 = vshrl.u32 %v1228_v29, 16  ;;  %v1249_v51 = vadd.s32 %v1248_v45, %v1247_v44 }
 0x451   :  { %v1210_v25 = vcvt.s32.f32 %v1208_v41  ;;  %v1211_v48 = vcvt.s32.f32 %v1209_v3 }
 0x452   :  { %v1231_v1 = vcvt.s32.f32 %v1229_v46  ;;  %v1232_v53 = vcvt.s32.f32 %v1230_v50  ;;  %v1250_v54 = vand.u32 65535, %v1249_v51  ;;  %v1251_v4 = vshrl.u32 %v1249_v51, 16 }
 0x453   :  { %1170 = vadd.xlane.f32.xlu1 %v1168_v36  ;;  %1172 = vadd.xlane.f32.xlu0 %v1169_v0 }
 0x454   :  { %v1252_v47 = vcvt.s32.f32 %v1250_v54  ;;  %v1253_v56 = vcvt.s32.f32 %v1251_v4 }
 0x457   :  { %1191 = vadd.xlane.f32.xlu1 %v1189_v39  ;;  %1193 = vadd.xlane.f32.xlu0 %v1190_v40 }
 0x45b   :  { %1212 = vadd.xlane.f32.xlu1 %v1210_v25  ;;  %1214 = vadd.xlane.f32.xlu0 %v1211_v48 }
 0x45f   :  { %1233 = vadd.xlane.f32.xlu1 %v1231_v1  ;;  %1235 = vadd.xlane.f32.xlu0 %v1232_v53 }
 0x463   :  { %1254 = vadd.xlane.f32.xlu1 %v1252_v47  ;;  %1256 = vadd.xlane.f32.xlu0 %v1253_v56 }
 0x4d8   :  { %v1152_v58 = vpop.xlane.xlu1 %1151  ;;  %v1132_v7 = vpop.xlane.xlu0 %1131 }
 0x4d9   :  { %v1154_v60 = vcvt.f32.s32 %v1152_v58  ;;  %v1134_v61 = vcvt.f32.s32 %v1132_v7 }
 0x4db   :  { %v1155_v11 = vshll.u32 %v1154_v60, 16  ;;  %v1135_v9 = vshll.u32 %v1134_v61, 16 }
 0x4dc   :  { %v1150_v59 = vpop.xlane.xlu1 %1149  ;;  %v1130_v52 = vpop.xlane.xlu0 %1129 }
 0x4dd   :  { %v1153_v6 = vcvt.f32.s32 %v1150_v59  ;;  %v1133_v10 = vcvt.f32.s32 %v1130_v52 }
 0x4df   :  { %v1156_v19 = vadd.s32 %v1155_v11, %v1153_v6  ;;  %v1136_v22 = vadd.s32 %v1135_v9, %v1133_v10 }
 0x4e0   :  { %v1171_v62 = vpop.xlane.xlu1 %1170  ;;  %v1173_v5 = vpop.xlane.xlu0 %1172 }
 0x4e1   :  { %v1175_v8 = vcvt.f32.s32 %v1173_v5  ;;  %v1174_v23 = vcvt.f32.s32 %v1171_v62  ;;  %vm1157_vm6 = vcmp.ge.s32.totalorder %v1156_v19, %v2816_v63  ;;  %vm1137_vm7 = vcmp.ge.s32.totalorder %v1136_v22, %v2816_v63 }
 0x4e2   :  { %v1158_v36 = vsel %vm1157_vm6, 1, %v2534_v42  ;;  %v1138_v0 = vsel %vm1137_vm7, 1, %v2534_v42 }
 0x4e3   :  { %v1176_v14 = vshll.u32 %v1175_v8, 16  ;;  %v1159_v29 = vadd.s32 %v1158_v36, %v1138_v0 }
 0x4e4   :  { %v1192_v15 = vpop.xlane.xlu1 %1191  ;;  %v1194_v18 = vpop.xlane.xlu0 %1193 }
 0x4e5   :  { %v1196_v26 = vcvt.f32.s32 %v1194_v18  ;;  %v1177_v12 = vadd.s32 %v1176_v14, %v1174_v23  ;;  %v1195_v13 = vcvt.f32.s32 %v1192_v15 }
 0x4e7   :  { %v1197_v27 = vshll.u32 %v1196_v26, 16  ;;  %vm1178_vm8 = vcmp.ge.s32.totalorder %v1177_v12, %v2816_v63 }
 0x4e8   :  { %v1213_v32 = vpop.xlane.xlu1 %1212  ;;  %v1215_v33 = vpop.xlane.xlu0 %1214  ;;  %v1179_v21 = vsel %vm1178_vm8, 1, %v2534_v42 }
 0x4e9   :  { %v1198_v16 = vadd.s32 %v1197_v27, %v1195_v13  ;;  %v1217_v34 = vcvt.f32.s32 %v1215_v33  ;;  %v1216_v17 = vcvt.f32.s32 %v1213_v32  ;;  %v1180_v45 = vadd.s32 %v1179_v21, %v1159_v29 }
 0x4eb   :  { %v1218_v35 = vshll.u32 %v1217_v34, 16  ;;  %vm1199_vm9 = vcmp.ge.s32.totalorder %v1198_v16, %v2816_v63 }
 0x4ec   :  { %v1234_v37 = vpop.xlane.xlu1 %1233  ;;  %v1236_v2 = vpop.xlane.xlu0 %1235  ;;  %v1200_v41 = vsel %vm1199_vm9, 1, %v2534_v42 }
 0x4ed   :  { %v1219_v38 = vadd.s32 %v1218_v35, %v1216_v17  ;;  %v1238_v20 = vcvt.f32.s32 %v1236_v2  ;;  %v1237_v39 = vcvt.f32.s32 %v1234_v37  ;;  %v1201_v50 = vadd.s32 %v1200_v41, %v1180_v45 }
 0x4ef   :  { %vm1220_vm10 = vcmp.ge.s32.totalorder %v1219_v38, %v2816_v63  ;;  %v1239_v40 = vshll.u32 %v1238_v20, 16 }
 0x4f0   :  { %v1255_v3 = vpop.xlane.xlu1 %1254  ;;  %v1257_v44 = vpop.xlane.xlu0 %1256  ;;  %v1221_v48 = vsel %vm1220_vm10, 1, %v2534_v42 }
 0x4f1   :  { %v1240_v46 = vadd.s32 %v1239_v40, %v1237_v39  ;;  %v1259_v25 = vcvt.f32.s32 %v1257_v44  ;;  %v1258_v51 = vcvt.f32.s32 %v1255_v3  ;;  %v1222_v54 = vadd.s32 %v1221_v48, %v1201_v50 }
 0x4f3   :  { %vm1241_vm11 = vcmp.ge.s32.totalorder %v1240_v46, %v2816_v63  ;;  %v1260_v1 = vshll.u32 %v1259_v25, 16 }
 0x4f4   :  { %v1242_v53 = vsel %vm1241_vm11, 1, %v2534_v42 }
 0x4f5   :  { %v1261_v4 = vadd.s32 %v1260_v1, %v1258_v51  ;;  %v1243_v47 = vadd.s32 %v1242_v53, %v1222_v54 }
 0x4f7   :  { %vm1262_vm2 = vcmp.ge.s32.totalorder %v1261_v4, %v2816_v63 }
 0x4f8   :  { %v1263_v56 = vsel %vm1262_vm2, 1, %v2534_v42 }
 0x4f9   :  { %v1264_v58 = vadd.s32 %v1263_v56, %v1243_v47 }
 0x4fb   :  { %v1265_v7 = vmul.u32 8192, %v1264_v58 }
 0x4fd   :  { %v3092_v59 = vor.u32 %v1265_v7, %v3040_v55 }
 0x4ff   :  { %v1287_v52 = vor.u32 2048, %v3092_v59  ;;  %v1267_v60 = vor.u32 1024, %v3092_v59  ;;  %v1308_v61 = vor.u32 3072, %v3092_v59  ;;  %v1329_v62 = vor.u32 4096, %v3092_v59 }
 0x500   :  { %v1350_v19 = vor.u32 5120, %v3092_v59  ;;  %v1371_v33 = vor.u32 6144, %v3092_v59  ;;  %v1392_v2 = vor.u32 7168, %v3092_v59 }
 0x501   :  { %vm1288_vm12 = vcmp.ge.s32.totalorder %v2781_v30, %v1287_v52  ;;  %vm1289_vm13 = vcmp.ge.s32.totalorder %v2783_v57, %v1287_v52  ;;  %vm1268_vm3 = vcmp.ge.s32.totalorder %v2781_v30, %v1267_v60  ;;  %vm1269_vm14 = vcmp.ge.s32.totalorder %v2783_v57, %v1267_v60 }
 0x502   :  { %v1290_v5 = vsel %vm1288_vm12, 1, %v2534_v42  ;;  %v1291_v55 = vsel %vm1289_vm13, 1, %v2534_v42  ;;  %v1270_v6 = vsel %vm1268_vm3, 1, %v2534_v42  ;;  %v1271_v10 = vsel %vm1269_vm14, 1, %v2534_v42 }
 0x503   :  { %v1292_v8 = vadd.s32 %v1291_v55, %v1290_v5  ;;  %v1272_v11 = vadd.s32 %v1271_v10, %v1270_v6  ;;  %vm1309_vm15 = vcmp.ge.s32.totalorder %v2781_v30, %v1308_v61  ;;  %vm1310_vm4 = vcmp.ge.s32.totalorder %v2783_v57, %v1308_v61 }
 0x504   :  { %v1311_v9 = vsel %vm1309_vm15, 1, %v2534_v42  ;;  %v1312_v14 = vsel %vm1310_vm4, 1, %v2534_v42  ;;  %vm1330_vm5 = vcmp.ge.s32.totalorder %v2781_v30, %v1329_v62  ;;  %vm1331_vm6 = vcmp.ge.s32.totalorder %v2783_v57, %v1329_v62 }
 0x505   :  { %v1294_v15 = vshrl.u32 %v1292_v8, 16  ;;  %v1274_v18 = vshrl.u32 %v1272_v11, 16  ;;  %v1293_v22 = vand.u32 65535, %v1292_v8  ;;  %v1273_v23 = vand.u32 65535, %v1272_v11 }
 0x506   :  { %v1313_v26 = vadd.s32 %v1312_v14, %v1311_v9  ;;  %v1332_v27 = vsel %vm1330_vm5, 1, %v2534_v42  ;;  %v1333_v32 = vsel %vm1331_vm6, 1, %v2534_v42  ;;  %vm1351_vm7 = vcmp.ge.s32.totalorder %v2781_v30, %v1350_v19 }
 0x507   :  { %v1296_v12 = vcvt.s32.f32 %v1294_v15  ;;  %v1276_v13 = vcvt.s32.f32 %v1274_v18  ;;  %vm1352_vm8 = vcmp.ge.s32.totalorder %v2783_v57, %v1350_v19  ;;  %v1334_v17 = vadd.s32 %v1333_v32, %v1332_v27 }
 0x508   :  { %v1314_v16 = vand.u32 65535, %v1313_v26  ;;  %v1315_v34 = vshrl.u32 %v1313_v26, 16  ;;  %v1295_v35 = vcvt.s32.f32 %v1293_v22  ;;  %v1275_v36 = vcvt.s32.f32 %v1273_v23 }
 0x509   :  { %1299 = vadd.xlane.f32.xlu1 %v1296_v12  ;;  %1279 = vadd.xlane.f32.xlu0 %v1276_v13  ;;  %v1353_v0 = vsel %vm1351_vm7, 1, %v2534_v42  ;;  %v1354_v37 = vsel %vm1352_vm8, 1, %v2534_v42  ;;  %vm1372_vm9 = vcmp.ge.s32.totalorder %v2781_v30, %v1371_v33  ;;  %vm1373_vm10 = vcmp.ge.s32.totalorder %v2783_v57, %v1371_v33 }
 0x50a   :  { %v1316_v38 = vcvt.s32.f32 %v1314_v16  ;;  %v1317_v20 = vcvt.s32.f32 %v1315_v34  ;;  %v1335_v21 = vand.u32 65535, %v1334_v17  ;;  %v1336_v29 = vshrl.u32 %v1334_v17, 16 }
 0x50b   :  { %v1355_v39 = vadd.s32 %v1354_v37, %v1353_v0  ;;  %v1374_v40 = vsel %vm1372_vm9, 1, %v2534_v42  ;;  %v1375_v41 = vsel %vm1373_vm10, 1, %v2534_v42  ;;  %vm1393_vm11 = vcmp.ge.s32.totalorder %v2781_v30, %v1392_v2 }
 0x50c   :  { %vm1394_vm2 = vcmp.ge.s32.totalorder %v2783_v57, %v1392_v2  ;;  %v1376_v3 = vadd.s32 %v1375_v41, %v1374_v40  ;;  %v1337_v44 = vcvt.s32.f32 %v1335_v21  ;;  %v1338_v45 = vcvt.s32.f32 %v1336_v29 }
 0x50d   :  { %1297 = vadd.xlane.f32.xlu1 %v1295_v35  ;;  %1277 = vadd.xlane.f32.xlu0 %v1275_v36  ;;  %v1356_v46 = vand.u32 65535, %v1355_v39  ;;  %v1357_v25 = vshrl.u32 %v1355_v39, 16  ;;  %v1395_v48 = vsel %vm1393_vm11, 1, %v2534_v42  ;;  %v1396_v50 = vsel %vm1394_vm2, 1, %v2534_v42 }
 0x50e   :  { %v1377_v51 = vand.u32 65535, %v1376_v3  ;;  %v1378_v54 = vshrl.u32 %v1376_v3, 16  ;;  %v1397_v4 = vadd.s32 %v1396_v50, %v1395_v48 }
 0x50f   :  { %v1358_v1 = vcvt.s32.f32 %v1356_v46  ;;  %v1359_v53 = vcvt.s32.f32 %v1357_v25 }
 0x510   :  { %v1379_v47 = vcvt.s32.f32 %v1377_v51  ;;  %v1380_v56 = vcvt.s32.f32 %v1378_v54  ;;  %v1398_v58 = vand.u32 65535, %v1397_v4  ;;  %v1399_v7 = vshrl.u32 %v1397_v4, 16 }
 0x511   :  { %1318 = vadd.xlane.f32.xlu1 %v1316_v38  ;;  %1320 = vadd.xlane.f32.xlu0 %v1317_v20 }
 0x512   :  { %v1400_v52 = vcvt.s32.f32 %v1398_v58  ;;  %v1401_v60 = vcvt.s32.f32 %v1399_v7 }
 0x515   :  { %1339 = vadd.xlane.f32.xlu1 %v1337_v44  ;;  %1341 = vadd.xlane.f32.xlu0 %v1338_v45 }
 0x519   :  { %1360 = vadd.xlane.f32.xlu1 %v1358_v1  ;;  %1362 = vadd.xlane.f32.xlu0 %v1359_v53 }
 0x51d   :  { %1381 = vadd.xlane.f32.xlu1 %v1379_v47  ;;  %1383 = vadd.xlane.f32.xlu0 %v1380_v56 }
 0x521   :  { %1402 = vadd.xlane.f32.xlu1 %v1400_v52  ;;  %1404 = vadd.xlane.f32.xlu0 %v1401_v60 }
 0x596   :  { %v1300_v61 = vpop.xlane.xlu1 %1299  ;;  %v1280_v62 = vpop.xlane.xlu0 %1279 }
 0x597   :  { %v1302_v6 = vcvt.f32.s32 %v1300_v61  ;;  %v1282_v10 = vcvt.f32.s32 %v1280_v62 }
 0x599   :  { %v1303_v18 = vshll.u32 %v1302_v6, 16  ;;  %v1283_v19 = vshll.u32 %v1282_v10, 16 }
 0x59a   :  { %v1298_v5 = vpop.xlane.xlu1 %1297  ;;  %v1278_v55 = vpop.xlane.xlu0 %1277 }
 0x59b   :  { %v1301_v9 = vcvt.f32.s32 %v1298_v5  ;;  %v1281_v14 = vcvt.f32.s32 %v1278_v55 }
 0x59d   :  { %v1304_v12 = vadd.s32 %v1303_v18, %v1301_v9  ;;  %v1284_v13 = vadd.s32 %v1283_v19, %v1281_v14 }
 0x59e   :  { %v1319_v8 = vpop.xlane.xlu1 %1318  ;;  %v1321_v11 = vpop.xlane.xlu0 %1320 }
 0x59f   :  { %v1323_v15 = vcvt.f32.s32 %v1321_v11  ;;  %v1322_v27 = vcvt.f32.s32 %v1319_v8  ;;  %vm1305_vm12 = vcmp.ge.s32.totalorder %v1304_v12, %v2816_v63  ;;  %vm1285_vm13 = vcmp.ge.s32.totalorder %v1284_v13, %v2816_v63 }
 0x5a0   :  { %v1306_v38 = vsel %vm1305_vm12, 1, %v2534_v42  ;;  %v1286_v20 = vsel %vm1285_vm13, 1, %v2534_v42 }
 0x5a1   :  { %v1324_v22 = vshll.u32 %v1323_v15, 16  ;;  %v1307_v3 = vadd.s32 %v1306_v38, %v1286_v20 }
 0x5a2   :  { %v1340_v23 = vpop.xlane.xlu1 %1339  ;;  %v1342_v26 = vpop.xlane.xlu0 %1341 }
 0x5a3   :  { %v1344_v32 = vcvt.f32.s32 %v1342_v26  ;;  %v1325_v33 = vadd.s32 %v1324_v22, %v1322_v27  ;;  %v1343_v16 = vcvt.f32.s32 %v1340_v23 }
 0x5a5   :  { %v1345_v34 = vshll.u32 %v1344_v32, 16  ;;  %vm1326_vm3 = vcmp.ge.s32.totalorder %v1325_v33, %v2816_v63 }
 0x5a6   :  { %v1361_v17 = vpop.xlane.xlu1 %1360  ;;  %v1363_v35 = vpop.xlane.xlu0 %1362  ;;  %v1327_v41 = vsel %vm1326_vm3, 1, %v2534_v42 }
 0x5a7   :  { %v1346_v36 = vadd.s32 %v1345_v34, %v1343_v16  ;;  %v1365_v0 = vcvt.f32.s32 %v1363_v35  ;;  %v1364_v37 = vcvt.f32.s32 %v1361_v17  ;;  %v1328_v50 = vadd.s32 %v1327_v41, %v1307_v3 }
 0x5a9   :  { %v1366_v2 = vshll.u32 %v1365_v0, 16  ;;  %vm1347_vm14 = vcmp.ge.s32.totalorder %v1346_v36, %v2816_v63 }
 0x5aa   :  { %v1382_v21 = vpop.xlane.xlu1 %1381  ;;  %v1384_v29 = vpop.xlane.xlu0 %1383  ;;  %v1348_v46 = vsel %vm1347_vm14, 1, %v2534_v42 }
 0x5ab   :  { %v1367_v39 = vadd.s32 %v1366_v2, %v1364_v37  ;;  %v1386_v40 = vcvt.f32.s32 %v1384_v29  ;;  %v1385_v44 = vcvt.f32.s32 %v1382_v21  ;;  %v1349_v54 = vadd.s32 %v1348_v46, %v1328_v50 }
 0x5ad   :  { %vm1368_vm15 = vcmp.ge.s32.totalorder %v1367_v39, %v2816_v63  ;;  %v1387_v45 = vshll.u32 %v1386_v40, 16 }
 0x5ae   :  { %v1403_v25 = vpop.xlane.xlu1 %1402  ;;  %v1405_v48 = vpop.xlane.xlu0 %1404  ;;  %v1369_v53 = vsel %vm1368_vm15, 1, %v2534_v42 }
 0x5af   :  { %v1388_v51 = vadd.s32 %v1387_v45, %v1385_v44  ;;  %v1407_v1 = vcvt.f32.s32 %v1405_v48  ;;  %v1406_v4 = vcvt.f32.s32 %v1403_v25  ;;  %v1370_v58 = vadd.s32 %v1369_v53, %v1349_v54 }
 0x5b1   :  { %vm1389_vm4 = vcmp.ge.s32.totalorder %v1388_v51, %v2816_v63  ;;  %v1408_v47 = vshll.u32 %v1407_v1, 16 }
 0x5b2   :  { %v1390_v56 = vsel %vm1389_vm4, 1, %v2534_v42 }
 0x5b3   :  { %v1409_v7 = vadd.s32 %v1408_v47, %v1406_v4  ;;  %v1391_v52 = vadd.s32 %v1390_v56, %v1370_v58 }
 0x5b5   :  { %vm1410_vm5 = vcmp.ge.s32.totalorder %v1409_v7, %v2816_v63 }
 0x5b6   :  { %v1411_v60 = vsel %vm1410_vm5, 1, %v2534_v42 }
 0x5b7   :  { %v1412_v61 = vadd.s32 %v1411_v60, %v1391_v52 }
 0x5b9   :  { %v1413_v62 = vmul.u32 1024, %v1412_v61 }
 0x5bb   :  { %v3144_v5 = vor.u32 %v1413_v62, %v3092_v59 }
 0x5bd   :  { %v1435_v55 = vor.u32 256, %v3144_v5  ;;  %v1415_v6 = vor.u32 128, %v3144_v5  ;;  %v1456_v10 = vor.u32 384, %v3144_v5  ;;  %v1477_v8 = vor.u32 512, %v3144_v5 }
 0x5be   :  { %v1498_v12 = vor.u32 640, %v3144_v5  ;;  %v1519_v35 = vor.u32 768, %v3144_v5  ;;  %v1540_v29 = vor.u32 896, %v3144_v5 }
 0x5bf   :  { %vm1436_vm6 = vcmp.ge.s32.totalorder %v2781_v30, %v1435_v55  ;;  %vm1437_vm7 = vcmp.ge.s32.totalorder %v2783_v57, %v1435_v55  ;;  %vm1416_vm8 = vcmp.ge.s32.totalorder %v2781_v30, %v1415_v6  ;;  %vm1417_vm9 = vcmp.ge.s32.totalorder %v2783_v57, %v1415_v6 }
 0x5c0   :  { %v1438_v11 = vsel %vm1436_vm6, 1, %v2534_v42  ;;  %v1439_v59 = vsel %vm1437_vm7, 1, %v2534_v42  ;;  %v1418_v9 = vsel %vm1416_vm8, 1, %v2534_v42  ;;  %v1419_v14 = vsel %vm1417_vm9, 1, %v2534_v42 }
 0x5c1   :  { %v1440_v15 = vadd.s32 %v1439_v59, %v1438_v11  ;;  %v1420_v18 = vadd.s32 %v1419_v14, %v1418_v9  ;;  %vm1457_vm10 = vcmp.ge.s32.totalorder %v2781_v30, %v1456_v10  ;;  %vm1458_vm11 = vcmp.ge.s32.totalorder %v2783_v57, %v1456_v10 }
 0x5c2   :  { %v1459_v19 = vsel %vm1457_vm10, 1, %v2534_v42  ;;  %v1460_v22 = vsel %vm1458_vm11, 1, %v2534_v42  ;;  %vm1478_vm2 = vcmp.ge.s32.totalorder %v2781_v30, %v1477_v8  ;;  %vm1479_vm12 = vcmp.ge.s32.totalorder %v2783_v57, %v1477_v8 }
 0x5c3   :  { %v1442_v23 = vshrl.u32 %v1440_v15, 16  ;;  %v1422_v26 = vshrl.u32 %v1420_v18, 16  ;;  %v1441_v13 = vand.u32 65535, %v1440_v15  ;;  %v1421_v27 = vand.u32 65535, %v1420_v18 }
 0x5c4   :  { %v1461_v32 = vadd.s32 %v1460_v22, %v1459_v19  ;;  %v1480_v34 = vsel %vm1478_vm2, 1, %v2534_v42  ;;  %v1481_v17 = vsel %vm1479_vm12, 1, %v2534_v42  ;;  %vm1499_vm13 = vcmp.ge.s32.totalorder %v2781_v30, %v1498_v12 }
 0x5c5   :  { %v1444_v33 = vcvt.s32.f32 %v1442_v23  ;;  %v1424_v16 = vcvt.s32.f32 %v1422_v26  ;;  %vm1500_vm3 = vcmp.ge.s32.totalorder %v2783_v57, %v1498_v12  ;;  %v1482_v37 = vadd.s32 %v1481_v17, %v1480_v34 }
 0x5c6   :  { %v1462_v36 = vand.u32 65535, %v1461_v32  ;;  %v1463_v0 = vshrl.u32 %v1461_v32, 16  ;;  %v1443_v2 = vcvt.s32.f32 %v1441_v13  ;;  %v1423_v38 = vcvt.s32.f32 %v1421_v27 }
 0x5c7   :  { %1447 = vadd.xlane.f32.xlu1 %v1444_v33  ;;  %1427 = vadd.xlane.f32.xlu0 %v1424_v16  ;;  %v1501_v20 = vsel %vm1499_vm13, 1, %v2534_v42  ;;  %v1502_v21 = vsel %vm1500_vm3, 1, %v2534_v42  ;;  %vm1520_vm14 = vcmp.ge.s32.totalorder %v2781_v30, %v1519_v35  ;;  %vm1521_vm15 = vcmp.ge.s32.totalorder %v2783_v57, %v1519_v35 }
 0x5c8   :  { %v1464_v39 = vcvt.s32.f32 %v1462_v36  ;;  %v1465_v40 = vcvt.s32.f32 %v1463_v0  ;;  %v1483_v41 = vand.u32 65535, %v1482_v37  ;;  %v1484_v3 = vshrl.u32 %v1482_v37, 16 }
 0x5c9   :  { %v1503_v44 = vadd.s32 %v1502_v21, %v1501_v20  ;;  %v1522_v45 = vsel %vm1520_vm14, 1, %v2534_v42  ;;  %v1523_v46 = vsel %vm1521_vm15, 1, %v2534_v42  ;;  %vm1541_vm4 = vcmp.ge.s32.totalorder %v2781_v30, %v1540_v29 }
 0x5ca   :  { %vm1542_vm5 = vcmp.ge.s32.totalorder %v2783_v57, %v1540_v29  ;;  %v1524_v25 = vadd.s32 %v1523_v46, %v1522_v45  ;;  %v1485_v48 = vcvt.s32.f32 %v1483_v41  ;;  %v1486_v50 = vcvt.s32.f32 %v1484_v3 }
 0x5cb   :  { %1445 = vadd.xlane.f32.xlu1 %v1443_v2  ;;  %1425 = vadd.xlane.f32.xlu0 %v1423_v38  ;;  %v1504_v51 = vand.u32 65535, %v1503_v44  ;;  %v1505_v1 = vshrl.u32 %v1503_v44, 16  ;;  %v1543_v53 = vsel %vm1541_vm4, 1, %v2534_v42  ;;  %v1544_v54 = vsel %vm1542_vm5, 1, %v2534_v42 }
 0x5cc   :  { %v1525_v4 = vand.u32 65535, %v1524_v25  ;;  %v1526_v58 = vshrl.u32 %v1524_v25, 16  ;;  %v1545_v7 = vadd.s32 %v1544_v54, %v1543_v53 }
 0x5cd   :  { %v1506_v47 = vcvt.s32.f32 %v1504_v51  ;;  %v1507_v56 = vcvt.s32.f32 %v1505_v1 }
 0x5ce   :  { %v1527_v52 = vcvt.s32.f32 %v1525_v4  ;;  %v1528_v60 = vcvt.s32.f32 %v1526_v58  ;;  %v1546_v61 = vand.u32 65535, %v1545_v7  ;;  %v1547_v62 = vshrl.u32 %v1545_v7, 16 }
 0x5cf   :  { %1466 = vadd.xlane.f32.xlu1 %v1464_v39  ;;  %1468 = vadd.xlane.f32.xlu0 %v1465_v40 }
 0x5d0   :  { %v1548_v55 = vcvt.s32.f32 %v1546_v61  ;;  %v1549_v6 = vcvt.s32.f32 %v1547_v62 }
 0x5d3   :  { %1487 = vadd.xlane.f32.xlu1 %v1485_v48  ;;  %1489 = vadd.xlane.f32.xlu0 %v1486_v50 }
 0x5d7   :  { %1508 = vadd.xlane.f32.xlu1 %v1506_v47  ;;  %1510 = vadd.xlane.f32.xlu0 %v1507_v56 }
 0x5db   :  { %1529 = vadd.xlane.f32.xlu1 %v1527_v52  ;;  %1531 = vadd.xlane.f32.xlu0 %v1528_v60 }
 0x5df   :  { %1550 = vadd.xlane.f32.xlu1 %v1548_v55  ;;  %1552 = vadd.xlane.f32.xlu0 %v1549_v6 }
 0x654   :  { %v1448_v10 = vpop.xlane.xlu1 %1447  ;;  %v1428_v8 = vpop.xlane.xlu0 %1427 }
 0x655   :  { %v1450_v9 = vcvt.f32.s32 %v1448_v10  ;;  %v1430_v14 = vcvt.f32.s32 %v1428_v8 }
 0x657   :  { %v1451_v26 = vshll.u32 %v1450_v9, 16  ;;  %v1431_v12 = vshll.u32 %v1430_v14, 16 }
 0x658   :  { %v1446_v11 = vpop.xlane.xlu1 %1445  ;;  %v1426_v59 = vpop.xlane.xlu0 %1425 }
 0x659   :  { %v1449_v19 = vcvt.f32.s32 %v1446_v11  ;;  %v1429_v22 = vcvt.f32.s32 %v1426_v59 }
 0x65b   :  { %v1452_v33 = vadd.s32 %v1451_v26, %v1449_v19  ;;  %v1432_v16 = vadd.s32 %v1431_v12, %v1429_v22 }
 0x65c   :  { %v1467_v15 = vpop.xlane.xlu1 %1466  ;;  %v1469_v18 = vpop.xlane.xlu0 %1468 }
 0x65d   :  { %v1471_v23 = vcvt.f32.s32 %v1469_v18  ;;  %v1470_v34 = vcvt.f32.s32 %v1467_v15  ;;  %vm1453_vm6 = vcmp.ge.s32.totalorder %v1452_v33, %v2816_v63  ;;  %vm1433_vm7 = vcmp.ge.s32.totalorder %v1432_v16, %v2816_v63 }
 0x65e   :  { %v1454_v39 = vsel %vm1453_vm6, 1, %v2534_v42  ;;  %v1434_v40 = vsel %vm1433_vm7, 1, %v2534_v42 }
 0x65f   :  { %v1472_v13 = vshll.u32 %v1471_v23, 16  ;;  %v1455_v25 = vadd.s32 %v1454_v39, %v1434_v40 }
 0x660   :  { %v1488_v27 = vpop.xlane.xlu1 %1487  ;;  %v1490_v32 = vpop.xlane.xlu0 %1489 }
 0x661   :  { %v1492_v17 = vcvt.f32.s32 %v1490_v32  ;;  %v1473_v35 = vadd.s32 %v1472_v13, %v1470_v34  ;;  %v1491_v36 = vcvt.f32.s32 %v1488_v27 }
 0x663   :  { %v1493_v0 = vshll.u32 %v1492_v17, 16  ;;  %vm1474_vm8 = vcmp.ge.s32.totalorder %v1473_v35, %v2816_v63 }
 0x664   :  { %v1509_v37 = vpop.xlane.xlu1 %1508  ;;  %v1511_v2 = vpop.xlane.xlu0 %1510  ;;  %v1475_v46 = vsel %vm1474_vm8, 1, %v2534_v42 }
 0x665   :  { %v1494_v38 = vadd.s32 %v1493_v0, %v1491_v36  ;;  %v1513_v20 = vcvt.f32.s32 %v1511_v2  ;;  %v1512_v21 = vcvt.f32.s32 %v1509_v37  ;;  %v1476_v54 = vadd.s32 %v1475_v46, %v1455_v25 }
 0x667   :  { %v1514_v29 = vshll.u32 %v1513_v20, 16  ;;  %vm1495_vm9 = vcmp.ge.s32.totalorder %v1494_v38, %v2816_v63 }
 0x668   :  { %v1530_v41 = vpop.xlane.xlu1 %1529  ;;  %v1532_v3 = vpop.xlane.xlu0 %1531  ;;  %v1496_v51 = vsel %vm1495_vm9, 1, %v2534_v42 }
 0x669   :  { %v1515_v44 = vadd.s32 %v1514_v29, %v1512_v21  ;;  %v1534_v45 = vcvt.f32.s32 %v1532_v3  ;;  %v1533_v48 = vcvt.f32.s32 %v1530_v41  ;;  %v1497_v58 = vadd.s32 %v1496_v51, %v1476_v54 }
 0x66b   :  { %vm1516_vm10 = vcmp.ge.s32.totalorder %v1515_v44, %v2816_v63  ;;  %v1535_v50 = vshll.u32 %v1534_v45, 16 }
 0x66c   :  { %v1551_v1 = vpop.xlane.xlu1 %1550  ;;  %v1553_v53 = vpop.xlane.xlu0 %1552  ;;  %v1517_v56 = vsel %vm1516_vm10, 1, %v2534_v42 }
 0x66d   :  { %v1536_v4 = vadd.s32 %v1535_v50, %v1533_v48  ;;  %v1555_v47 = vcvt.f32.s32 %v1553_v53  ;;  %v1554_v7 = vcvt.f32.s32 %v1551_v1  ;;  %v1518_v61 = vadd.s32 %v1517_v56, %v1497_v58 }
 0x66f   :  { %vm1537_vm11 = vcmp.ge.s32.totalorder %v1536_v4, %v2816_v63  ;;  %v1556_v52 = vshll.u32 %v1555_v47, 16 }
 0x670   :  { %v1538_v60 = vsel %vm1537_vm11, 1, %v2534_v42 }
 0x671   :  { %v1557_v62 = vadd.s32 %v1556_v52, %v1554_v7  ;;  %v1539_v55 = vadd.s32 %v1538_v60, %v1518_v61 }
 0x673   :  { %vm1558_vm2 = vcmp.ge.s32.totalorder %v1557_v62, %v2816_v63 }
 0x674   :  { %v1559_v6 = vsel %vm1558_vm2, 1, %v2534_v42 }
 0x675   :  { %v1560_v10 = vadd.s32 %v1559_v6, %v1539_v55 }
 0x677   :  { %v1561_v8 = vmul.u32 128, %v1560_v10 }
 0x679   :  { %v3196_v11 = vor.u32 %v1561_v8, %v3144_v5 }
 0x67b   :  { %v1583_v59 = vor.u32 32, %v3196_v11  ;;  %v1563_v9 = vor.u32 16, %v3196_v11  ;;  %v1604_v14 = vor.u32 48, %v3196_v11  ;;  %v1625_v15 = vor.u32 64, %v3196_v11 }
 0x67c   :  { %v1646_v33 = vor.u32 80, %v3196_v11  ;;  %v1667_v2 = vor.u32 96, %v3196_v11  ;;  %v1688_v3 = vor.u32 112, %v3196_v11 }
 0x67d   :  { %vm1584_vm12 = vcmp.ge.s32.totalorder %v2781_v30, %v1583_v59  ;;  %vm1585_vm13 = vcmp.ge.s32.totalorder %v2783_v57, %v1583_v59  ;;  %vm1564_vm3 = vcmp.ge.s32.totalorder %v2781_v30, %v1563_v9  ;;  %vm1565_vm14 = vcmp.ge.s32.totalorder %v2783_v57, %v1563_v9 }
 0x67e   :  { %v1586_v18 = vsel %vm1584_vm12, 1, %v2534_v42  ;;  %v1587_v5 = vsel %vm1585_vm13, 1, %v2534_v42  ;;  %v1566_v19 = vsel %vm1564_vm3, 1, %v2534_v42  ;;  %v1567_v22 = vsel %vm1565_vm14, 1, %v2534_v42 }
 0x67f   :  { %v1588_v23 = vadd.s32 %v1587_v5, %v1586_v18  ;;  %v1568_v26 = vadd.s32 %v1567_v22, %v1566_v19  ;;  %vm1605_vm15 = vcmp.ge.s32.totalorder %v2781_v30, %v1604_v14  ;;  %vm1606_vm4 = vcmp.ge.s32.totalorder %v2783_v57, %v1604_v14 }
 0x680   :  { %v1607_v12 = vsel %vm1605_vm15, 1, %v2534_v42  ;;  %v1608_v13 = vsel %vm1606_vm4, 1, %v2534_v42  ;;  %vm1626_vm5 = vcmp.ge.s32.totalorder %v2781_v30, %v1625_v15  ;;  %vm1627_vm6 = vcmp.ge.s32.totalorder %v2783_v57, %v1625_v15 }
 0x681   :  { %v1590_v27 = vshrl.u32 %v1588_v23, 16  ;;  %v1570_v32 = vshrl.u32 %v1568_v26, 16  ;;  %v1589_v16 = vand.u32 65535, %v1588_v23  ;;  %v1569_v34 = vand.u32 65535, %v1568_v26 }
 0x682   :  { %v1609_v17 = vadd.s32 %v1608_v13, %v1607_v12  ;;  %v1628_v0 = vsel %vm1626_vm5, 1, %v2534_v42  ;;  %v1629_v37 = vsel %vm1627_vm6, 1, %v2534_v42  ;;  %vm1647_vm7 = vcmp.ge.s32.totalorder %v2781_v30, %v1646_v33 }
 0x683   :  { %v1592_v35 = vcvt.s32.f32 %v1590_v27  ;;  %v1572_v36 = vcvt.s32.f32 %v1570_v32  ;;  %vm1648_vm8 = vcmp.ge.s32.totalorder %v2783_v57, %v1646_v33  ;;  %v1630_v21 = vadd.s32 %v1629_v37, %v1628_v0 }
 0x684   :  { %v1610_v38 = vand.u32 65535, %v1609_v17  ;;  %v1611_v20 = vshrl.u32 %v1609_v17, 16  ;;  %v1591_v29 = vcvt.s32.f32 %v1589_v16  ;;  %v1571_v39 = vcvt.s32.f32 %v1569_v34 }
 0x685   :  { %1595 = vadd.xlane.f32.xlu1 %v1592_v35  ;;  %1575 = vadd.xlane.f32.xlu0 %v1572_v36  ;;  %v1649_v40 = vsel %vm1647_vm7, 1, %v2534_v42  ;;  %v1650_v41 = vsel %vm1648_vm8, 1, %v2534_v42  ;;  %vm1668_vm9 = vcmp.ge.s32.totalorder %v2781_v30, %v1667_v2  ;;  %vm1669_vm10 = vcmp.ge.s32.totalorder %v2783_v57, %v1667_v2 }
 0x686   :  { %v1612_v44 = vcvt.s32.f32 %v1610_v38  ;;  %v1613_v45 = vcvt.s32.f32 %v1611_v20  ;;  %v1631_v46 = vand.u32 65535, %v1630_v21  ;;  %v1632_v25 = vshrl.u32 %v1630_v21, 16 }
 0x687   :  { %v1651_v48 = vadd.s32 %v1650_v41, %v1649_v40  ;;  %v1670_v50 = vsel %vm1668_vm9, 1, %v2534_v42  ;;  %v1671_v51 = vsel %vm1669_vm10, 1, %v2534_v42  ;;  %vm1689_vm11 = vcmp.ge.s32.totalorder %v2781_v30, %v1688_v3 }
 0x688   :  { %vm1690_vm2 = vcmp.ge.s32.totalorder %v2783_v57, %v1688_v3  ;;  %v1672_v1 = vadd.s32 %v1671_v51, %v1670_v50  ;;  %v1633_v53 = vcvt.s32.f32 %v1631_v46  ;;  %v1634_v54 = vcvt.s32.f32 %v1632_v25 }
 0x689   :  { %1593 = vadd.xlane.f32.xlu1 %v1591_v29  ;;  %1573 = vadd.xlane.f32.xlu0 %v1571_v39  ;;  %v1652_v4 = vand.u32 65535, %v1651_v48  ;;  %v1653_v47 = vshrl.u32 %v1651_v48, 16  ;;  %v1691_v56 = vsel %vm1689_vm11, 1, %v2534_v42  ;;  %v1692_v58 = vsel %vm1690_vm2, 1, %v2534_v42 }
 0x68a   :  { %v1673_v7 = vand.u32 65535, %v1672_v1  ;;  %v1674_v61 = vshrl.u32 %v1672_v1, 16  ;;  %v1693_v62 = vadd.s32 %v1692_v58, %v1691_v56 }
 0x68b   :  { %v1654_v52 = vcvt.s32.f32 %v1652_v4  ;;  %v1655_v60 = vcvt.s32.f32 %v1653_v47 }
 0x68c   :  { %v1675_v55 = vcvt.s32.f32 %v1673_v7  ;;  %v1676_v6 = vcvt.s32.f32 %v1674_v61  ;;  %v1694_v10 = vand.u32 65535, %v1693_v62  ;;  %v1695_v8 = vshrl.u32 %v1693_v62, 16 }
 0x68d   :  { %1614 = vadd.xlane.f32.xlu1 %v1612_v44  ;;  %1616 = vadd.xlane.f32.xlu0 %v1613_v45 }
 0x68e   :  { %v1696_v59 = vcvt.s32.f32 %v1694_v10  ;;  %v1697_v9 = vcvt.s32.f32 %v1695_v8 }
 0x691   :  { %1635 = vadd.xlane.f32.xlu1 %v1633_v53  ;;  %1637 = vadd.xlane.f32.xlu0 %v1634_v54 }
 0x695   :  { %1656 = vadd.xlane.f32.xlu1 %v1654_v52  ;;  %1658 = vadd.xlane.f32.xlu0 %v1655_v60 }
 0x699   :  { %1677 = vadd.xlane.f32.xlu1 %v1675_v55  ;;  %1679 = vadd.xlane.f32.xlu0 %v1676_v6 }
 0x69d   :  { %1698 = vadd.xlane.f32.xlu1 %v1696_v59  ;;  %1700 = vadd.xlane.f32.xlu0 %v1697_v9 }
 0x712   :  { %v1596_v14 = vpop.xlane.xlu1 %1595  ;;  %v1576_v15 = vpop.xlane.xlu0 %1575 }
 0x713   :  { %v1598_v19 = vcvt.f32.s32 %v1596_v14  ;;  %v1578_v22 = vcvt.f32.s32 %v1576_v15 }
 0x715   :  { %v1599_v32 = vshll.u32 %v1598_v19, 16  ;;  %v1579_v33 = vshll.u32 %v1578_v22, 16 }
 0x716   :  { %v1594_v18 = vpop.xlane.xlu1 %1593  ;;  %v1574_v5 = vpop.xlane.xlu0 %1573 }
 0x717   :  { %v1597_v12 = vcvt.f32.s32 %v1594_v18  ;;  %v1577_v13 = vcvt.f32.s32 %v1574_v5 }
 0x719   :  { %v1600_v35 = vadd.s32 %v1599_v32, %v1597_v12  ;;  %v1580_v36 = vadd.s32 %v1579_v33, %v1577_v13 }
 0x71a   :  { %v1615_v23 = vpop.xlane.xlu1 %1614  ;;  %v1617_v26 = vpop.xlane.xlu0 %1616 }
 0x71b   :  { %v1619_v27 = vcvt.f32.s32 %v1617_v26  ;;  %v1618_v0 = vcvt.f32.s32 %v1615_v23  ;;  %vm1601_vm12 = vcmp.ge.s32.totalorder %v1600_v35, %v2816_v63  ;;  %vm1581_vm13 = vcmp.ge.s32.totalorder %v1580_v36, %v2816_v63 }
 0x71c   :  { %v1602_v44 = vsel %vm1601_vm12, 1, %v2534_v42  ;;  %v1582_v45 = vsel %vm1581_vm13, 1, %v2534_v42 }
 0x71d   :  { %v1620_v16 = vshll.u32 %v1619_v27, 16  ;;  %v1603_v1 = vadd.s32 %v1602_v44, %v1582_v45 }
 0x71e   :  { %v1636_v34 = vpop.xlane.xlu1 %1635  ;;  %v1638_v17 = vpop.xlane.xlu0 %1637 }
 0x71f   :  { %v1640_v37 = vcvt.f32.s32 %v1638_v17  ;;  %v1621_v2 = vadd.s32 %v1620_v16, %v1618_v0  ;;  %v1639_v38 = vcvt.f32.s32 %v1636_v34 }
 0x721   :  { %v1641_v20 = vshll.u32 %v1640_v37, 16  ;;  %vm1622_vm3 = vcmp.ge.s32.totalorder %v1621_v2, %v2816_v63 }
 0x722   :  { %v1657_v21 = vpop.xlane.xlu1 %1656  ;;  %v1659_v29 = vpop.xlane.xlu0 %1658  ;;  %v1623_v51 = vsel %vm1622_vm3, 1, %v2534_v42 }
 0x723   :  { %v1642_v39 = vadd.s32 %v1641_v20, %v1639_v38  ;;  %v1661_v40 = vcvt.f32.s32 %v1659_v29  ;;  %v1660_v41 = vcvt.f32.s32 %v1657_v21  ;;  %v1624_v58 = vadd.s32 %v1623_v51, %v1603_v1 }
 0x725   :  { %v1662_v3 = vshll.u32 %v1661_v40, 16  ;;  %vm1643_vm14 = vcmp.ge.s32.totalorder %v1642_v39, %v2816_v63 }
 0x726   :  { %v1678_v46 = vpop.xlane.xlu1 %1677  ;;  %v1680_v25 = vpop.xlane.xlu0 %1679  ;;  %v1644_v4 = vsel %vm1643_vm14, 1, %v2534_v42 }
 0x727   :  { %v1663_v48 = vadd.s32 %v1662_v3, %v1660_v41  ;;  %v1682_v50 = vcvt.f32.s32 %v1680_v25  ;;  %v1681_v53 = vcvt.f32.s32 %v1678_v46  ;;  %v1645_v61 = vadd.s32 %v1644_v4, %v1624_v58 }
 0x729   :  { %vm1664_vm15 = vcmp.ge.s32.totalorder %v1663_v48, %v2816_v63  ;;  %v1683_v54 = vshll.u32 %v1682_v50, 16 }
 0x72a   :  { %v1699_v47 = vpop.xlane.xlu1 %1698  ;;  %v1701_v56 = vpop.xlane.xlu0 %1700  ;;  %v1665_v60 = vsel %vm1664_vm15, 1, %v2534_v42 }
 0x72b   :  { %v1684_v7 = vadd.s32 %v1683_v54, %v1681_v53  ;;  %v1703_v52 = vcvt.f32.s32 %v1701_v56  ;;  %v1702_v62 = vcvt.f32.s32 %v1699_v47  ;;  %v1666_v10 = vadd.s32 %v1665_v60, %v1645_v61 }
 0x72d   :  { %vm1685_vm4 = vcmp.ge.s32.totalorder %v1684_v7, %v2816_v63  ;;  %v1704_v55 = vshll.u32 %v1703_v52, 16 }
 0x72e   :  { %v1686_v6 = vsel %vm1685_vm4, 1, %v2534_v42 }
 0x72f   :  { %v1705_v8 = vadd.s32 %v1704_v55, %v1702_v62  ;;  %v1687_v59 = vadd.s32 %v1686_v6, %v1666_v10 }
 0x731   :  { %vm1706_vm5 = vcmp.ge.s32.totalorder %v1705_v8, %v2816_v63 }
 0x732   :  { %v1707_v9 = vsel %vm1706_vm5, 1, %v2534_v42 }
 0x733   :  { %v1708_v14 = vadd.s32 %v1707_v9, %v1687_v59 }
 0x735   :  { %v1709_v15 = vmul.u32 16, %v1708_v14 }
 0x737   :  { %v3248_v18 = vor.u32 %v1709_v15, %v3196_v11 }
 0x739   :  { %v1731_v5 = vor.u32 4, %v3248_v18  ;;  %v1711_v19 = vor.u32 2, %v3248_v18  ;;  %v1752_v22 = vor.u32 6, %v3248_v18  ;;  %v1773_v23 = vor.u32 8, %v3248_v18 }
 0x73a   :  { %v1794_v35 = vor.u32 10, %v3248_v18  ;;  %v1815_v29 = vor.u32 12, %v3248_v18  ;;  %v1836_v25 = vor.u32 14, %v3248_v18 }
 0x73b   :  { %vm1732_vm6 = vcmp.ge.s32.totalorder %v2781_v30, %v1731_v5  ;;  %vm1733_vm7 = vcmp.ge.s32.totalorder %v2783_v57, %v1731_v5  ;;  %vm1712_vm8 = vcmp.ge.s32.totalorder %v2781_v30, %v1711_v19  ;;  %vm1713_vm9 = vcmp.ge.s32.totalorder %v2783_v57, %v1711_v19 }
 0x73c   :  { %v1734_v26 = vsel %vm1732_vm6, 1, %v2534_v42  ;;  %v1735_v11 = vsel %vm1733_vm7, 1, %v2534_v42  ;;  %v1714_v12 = vsel %vm1712_vm8, 1, %v2534_v42  ;;  %v1715_v13 = vsel %vm1713_vm9, 1, %v2534_v42 }
 0x73d   :  { %v1736_v27 = vadd.s32 %v1735_v11, %v1734_v26  ;;  %v1716_v32 = vadd.s32 %v1715_v13, %v1714_v12  ;;  %vm1753_vm10 = vcmp.ge.s32.totalorder %v2781_v30, %v1752_v22  ;;  %vm1754_vm11 = vcmp.ge.s32.totalorder %v2783_v57, %v1752_v22 }
 0x73e   :  { %v1755_v33 = vsel %vm1753_vm10, 1, %v2534_v42  ;;  %v1756_v16 = vsel %vm1754_vm11, 1, %v2534_v42  ;;  %vm1774_vm2 = vcmp.ge.s32.totalorder %v2781_v30, %v1773_v23  ;;  %vm1775_vm12 = vcmp.ge.s32.totalorder %v2783_v57, %v1773_v23 }
 0x73f   :  { %v1738_v34 = vshrl.u32 %v1736_v27, 16  ;;  %v1718_v17 = vshrl.u32 %v1716_v32, 16  ;;  %v1737_v36 = vand.u32 65535, %v1736_v27  ;;  %v1717_v0 = vand.u32 65535, %v1716_v32 }
 0x740   :  { %v1757_v37 = vadd.s32 %v1756_v16, %v1755_v33  ;;  %v1776_v20 = vsel %vm1774_vm2, 1, %v2534_v42  ;;  %v1777_v21 = vsel %vm1775_vm12, 1, %v2534_v42  ;;  %vm1795_vm13 = vcmp.ge.s32.totalorder %v2781_v30, %v1794_v35 }
 0x741   :  { %v1740_v2 = vcvt.s32.f32 %v1738_v34  ;;  %v1720_v38 = vcvt.s32.f32 %v1718_v17  ;;  %vm1796_vm3 = vcmp.ge.s32.totalorder %v2783_v57, %v1794_v35  ;;  %v1778_v41 = vadd.s32 %v1777_v21, %v1776_v20 }
 0x742   :  { %v1758_v39 = vand.u32 65535, %v1757_v37  ;;  %v1759_v40 = vshrl.u32 %v1757_v37, 16  ;;  %v1739_v3 = vcvt.s32.f32 %v1737_v36  ;;  %v1719_v44 = vcvt.s32.f32 %v1717_v0 }
 0x743   :  { %1743 = vadd.xlane.f32.xlu1 %v1740_v2  ;;  %1723 = vadd.xlane.f32.xlu0 %v1720_v38  ;;  %v1797_v45 = vsel %vm1795_vm13, 1, %v2534_v42  ;;  %v1798_v46 = vsel %vm1796_vm3, 1, %v2534_v42  ;;  %vm1816_vm14 = vcmp.ge.s32.totalorder %v2781_v30, %v1815_v29  ;;  %vm1817_vm15 = vcmp.ge.s32.totalorder %v2783_v57, %v1815_v29 }
 0x744   :  { %v1760_v48 = vcvt.s32.f32 %v1758_v39  ;;  %v1761_v50 = vcvt.s32.f32 %v1759_v40  ;;  %v1779_v51 = vand.u32 65535, %v1778_v41  ;;  %v1780_v1 = vshrl.u32 %v1778_v41, 16 }
 0x745   :  { %v1799_v53 = vadd.s32 %v1798_v46, %v1797_v45  ;;  %v1818_v54 = vsel %vm1816_vm14, 1, %v2534_v42  ;;  %v1819_v4 = vsel %vm1817_vm15, 1, %v2534_v42  ;;  %vm1837_vm4 = vcmp.ge.s32.totalorder %v2781_v30, %v1836_v25 }
 0x746   :  { %vm1838_vm5 = vcmp.ge.s32.totalorder %v2783_v57, %v1836_v25  ;;  %v1820_v47 = vadd.s32 %v1819_v4, %v1818_v54  ;;  %v1781_v56 = vcvt.s32.f32 %v1779_v51  ;;  %v1782_v58 = vcvt.s32.f32 %v1780_v1 }
 0x747   :  { %1741 = vadd.xlane.f32.xlu1 %v1739_v3  ;;  %1721 = vadd.xlane.f32.xlu0 %v1719_v44  ;;  %v1800_v7 = vand.u32 65535, %v1799_v53  ;;  %v1801_v52 = vshrl.u32 %v1799_v53, 16  ;;  %v1839_v60 = vsel %vm1837_vm4, 1, %v2534_v42  ;;  %v1840_v61 = vsel %vm1838_vm5, 1, %v2534_v42 }
 0x748   :  { %v1821_v62 = vand.u32 65535, %v1820_v47  ;;  %v1822_v10 = vshrl.u32 %v1820_v47, 16  ;;  %v1841_v8 = vadd.s32 %v1840_v61, %v1839_v60 }
 0x749   :  { %v1802_v55 = vcvt.s32.f32 %v1800_v7  ;;  %v1803_v6 = vcvt.s32.f32 %v1801_v52 }
 0x74a   :  { %v1823_v59 = vcvt.s32.f32 %v1821_v62  ;;  %v1824_v9 = vcvt.s32.f32 %v1822_v10  ;;  %v1842_v14 = vand.u32 65535, %v1841_v8  ;;  %v1843_v15 = vshrl.u32 %v1841_v8, 16 }
 0x74b   :  { %1762 = vadd.xlane.f32.xlu1 %v1760_v48  ;;  %1764 = vadd.xlane.f32.xlu0 %v1761_v50 }
 0x74c   :  { %v1844_v5 = vcvt.s32.f32 %v1842_v14  ;;  %v1845_v19 = vcvt.s32.f32 %v1843_v15 }
 0x74f   :  { %1783 = vadd.xlane.f32.xlu1 %v1781_v56  ;;  %1785 = vadd.xlane.f32.xlu0 %v1782_v58 }
 0x753   :  { %1804 = vadd.xlane.f32.xlu1 %v1802_v55  ;;  %1806 = vadd.xlane.f32.xlu0 %v1803_v6 }
 0x757   :  { %1825 = vadd.xlane.f32.xlu1 %v1823_v59  ;;  %1827 = vadd.xlane.f32.xlu0 %v1824_v9 }
 0x75b   :  { %1846 = vadd.xlane.f32.xlu1 %v1844_v5  ;;  %1848 = vadd.xlane.f32.xlu0 %v1845_v19 }
 0x7d0   :  { %v1744_v22 = vpop.xlane.xlu1 %1743  ;;  %v1724_v23 = vpop.xlane.xlu0 %1723 }
 0x7d1   :  { %v1746_v12 = vcvt.f32.s32 %v1744_v22  ;;  %v1726_v13 = vcvt.f32.s32 %v1724_v23 }
 0x7d3   :  { %v1747_v17 = vshll.u32 %v1746_v12, 16  ;;  %v1727_v35 = vshll.u32 %v1726_v13, 16 }
 0x7d4   :  { %v1742_v26 = vpop.xlane.xlu1 %1741  ;;  %v1722_v11 = vpop.xlane.xlu0 %1721 }
 0x7d5   :  { %v1745_v33 = vcvt.f32.s32 %v1742_v26  ;;  %v1725_v16 = vcvt.f32.s32 %v1722_v11 }
 0x7d7   :  { %v1748_v2 = vadd.s32 %v1747_v17, %v1745_v33  ;;  %v1728_v38 = vadd.s32 %v1727_v35, %v1725_v16 }
 0x7d8   :  { %v1763_v27 = vpop.xlane.xlu1 %1762  ;;  %v1765_v32 = vpop.xlane.xlu0 %1764 }
 0x7d9   :  { %v1767_v34 = vcvt.f32.s32 %v1765_v32  ;;  %v1766_v20 = vcvt.f32.s32 %v1763_v27  ;;  %vm1749_vm6 = vcmp.ge.s32.totalorder %v1748_v2, %v2816_v63  ;;  %vm1729_vm7 = vcmp.ge.s32.totalorder %v1728_v38, %v2816_v63 }
 0x7da   :  { %v1750_v48 = vsel %vm1749_vm6, 1, %v2534_v42  ;;  %v1730_v50 = vsel %vm1729_vm7, 1, %v2534_v42 }
 0x7db   :  { %v1768_v36 = vshll.u32 %v1767_v34, 16  ;;  %v1751_v47 = vadd.s32 %v1750_v48, %v1730_v50 }
 0x7dc   :  { %v1784_v0 = vpop.xlane.xlu1 %1783  ;;  %v1786_v37 = vpop.xlane.xlu0 %1785 }
 0x7dd   :  { %v1788_v21 = vcvt.f32.s32 %v1786_v37  ;;  %v1769_v29 = vadd.s32 %v1768_v36, %v1766_v20  ;;  %v1787_v39 = vcvt.f32.s32 %v1784_v0  ;;  %v1900_v37 = vlaneseq }
 0x7df   :  { %v1789_v40 = vshll.u32 %v1788_v21, 16  ;;  %vm1770_vm8 = vcmp.ge.s32.totalorder %v1769_v29, %v2816_v63  ;;  %v3305_v38 = vand.u32 127, %v1900_v37 }
 0x7e0   :  { %v1805_v41 = vpop.xlane.xlu1 %1804  ;;  %v1807_v3 = vpop.xlane.xlu0 %1806  ;;  %v1771_v4 = vsel %vm1770_vm8, 1, %v2534_v42 }
 0x7e1   :  { %v1790_v44 = vadd.s32 %v1789_v40, %v1787_v39  ;;  %v1809_v45 = vcvt.f32.s32 %v1807_v3  ;;  %v1808_v46 = vcvt.f32.s32 %v1805_v41  ;;  %v1772_v61 = vadd.s32 %v1771_v4, %v1751_v47 }
 0x7e2   :  { %vm1924_vm14 = vcmp.le.s32.totalorder %v3305_v38, 63  ;;  %vm1903_vm15 = vcmp.le.s32.totalorder %v3305_v38, 31  ;;  %vm1946_vm7 = vcmp.le.s32.totalorder %v3305_v38, 95 }
 0x7e3   :  { %v1810_v25 = vshll.u32 %v1809_v45, 16  ;;  %vm1791_vm9 = vcmp.ge.s32.totalorder %v1790_v44, %v2816_v63  ;;  %v3327_v44 = vadd.s32 128, %v3305_v38 }
 0x7e4   :  { %v1826_v51 = vpop.xlane.xlu1 %1825  ;;  %v1828_v1 = vpop.xlane.xlu0 %1827  ;;  %v1792_v7 = vsel %vm1791_vm9, 1, %v2534_v42 }
 0x7e5   :  { %v1811_v53 = vadd.s32 %v1810_v25, %v1808_v46  ;;  %v1830_v54 = vcvt.f32.s32 %v1828_v1  ;;  %v1829_v56 = vcvt.f32.s32 %v1826_v51  ;;  %v1793_v10 = vadd.s32 %v1792_v7, %v1772_v61 }
 0x7e7   :  { %vm1812_vm10 = vcmp.ge.s32.totalorder %v1811_v53, %v2816_v63  ;;  %v1831_v58 = vshll.u32 %v1830_v54, 16 }
 0x7e8   :  { %v1847_v52 = vpop.xlane.xlu1 %1846  ;;  %v1849_v60 = vpop.xlane.xlu0 %1848  ;;  %v1813_v6 = vsel %vm1812_vm10, 1, %v2534_v42 }
 0x7e9   :  { %v1832_v62 = vadd.s32 %v1831_v58, %v1829_v56  ;;  %v1851_v55 = vcvt.f32.s32 %v1849_v60  ;;  %v1850_v8 = vcvt.f32.s32 %v1847_v52  ;;  %v1814_v14 = vadd.s32 %v1813_v6, %v1793_v10 }
 0x7eb   :  { %vm1833_vm11 = vcmp.ge.s32.totalorder %v1832_v62, %v2816_v63  ;;  %v1852_v59 = vshll.u32 %v1851_v55, 16 }
 0x7ec   :  { %v1834_v9 = vsel %vm1833_vm11, 1, %v2534_v42 }
 0x7ed   :  { %v1853_v15 = vadd.s32 %v1852_v59, %v1850_v8  ;;  %v1835_v5 = vadd.s32 %v1834_v9, %v1814_v14 }
 0x7ef   :  { %vm1854_vm2 = vcmp.ge.s32.totalorder %v1853_v15, %v2816_v63 }
 0x7f0   :  { %v1855_v19 = vsel %vm1854_vm2, 1, %v2534_v42  ;;  %vm1991_vm2 = vcmp.le.s32.totalorder %v3327_v44, 159 }
 0x7f1   :  { %v1856_v22 = vadd.s32 %v1855_v19, %v1835_v5 }
 0x7f3   :  { %v1857_v23 = vmul.u32 2, %v1856_v22 }
 0x7f5   :  { %v1858_v26 = vor.u32 %v1857_v23, %v3248_v18 }
 0x7f7   :  { %v1859_v11 = vor.u32 1, %v1858_v26 }
 0x7f9   :  { %vm1860_vm12 = vcmp.ge.s32.totalorder %v2781_v30, %v1859_v11  ;;  %vm1861_vm13 = vcmp.ge.s32.totalorder %v2783_v57, %v1859_v11 }
 0x7fa   :  { %v1862_v12 = vsel %vm1860_vm12, 1, %v2534_v42  ;;  %v1863_v13 = vsel %vm1861_vm13, 1, %v2534_v42  ;;  %vm2013_vm13 = vcmp.le.s32.totalorder %v3327_v44, 191 }
 0x7fb   :  { %v1864_v27 = vadd.s32 %v1863_v13, %v1862_v12 }
 0x7fd   :  { %v1866_v32 = vshrl.u32 %v1864_v27, 16  ;;  %v1865_v33 = vand.u32 65535, %v1864_v27 }
 0x7ff   :  { %v1868_v16 = vcvt.s32.f32 %v1866_v32  ;;  %v1867_v34 = vcvt.s32.f32 %v1865_v33 }
 0x801   :  { %1871 = vadd.xlane.f32.xlu0 %v1868_v16  ;;  %1869 = vadd.xlane.f32.xlu1 %v1867_v34 }
 0x88e   :  { %v1872_v17 = vpop.xlane.xlu0 %1871  ;;  %v1870_v35 = vpop.xlane.xlu1 %1869 }
 0x88f   :  { %v1874_v36 = vcvt.f32.s32 %v1872_v17  ;;  %v1873_v0 = vcvt.f32.s32 %v1870_v35 }
 0x891   :  { %v1875_v18 = vshll.u32 %v1874_v36, 16 }
 0x893   :  { %v1876_v2 = vadd.s32 %v1875_v18, %v1873_v0 }
 0x895   :  { %vm1877_vm3 = vcmp.ge.s32.totalorder %v1876_v2, %v2816_v63 }
 0x896   :  { %v1878_v20 = vsel %vm1877_vm3, 1, %v2534_v42 }
 0x897   :  { %v3308_v21 = vor.u32 %v1878_v20, %v1858_v26 }
 0x899   :  { %vm3314_vm4 = vcmp.eq.s32.totalorder %v2781_v30, %v3308_v21  ;;  %vm1880_vm8 = vcmp.gt.s32.totalorder %v2781_v30, %v3308_v21  ;;  %vm1881_vm9 = vcmp.gt.s32.totalorder %v2783_v57, %v3308_v21  ;;  %vm3339_vm11 = vcmp.eq.s32.totalorder %v2783_v57, %v3308_v21 }
 0x89a   :  { %v1972_v39 = vsel %vm3314_vm4, 1, %v2534_v42  ;;  %vm1926_vm5 = vmand %vm3314_vm4, %vm1924_vm14  ;;  %v1882_v1 = vsel %vm1880_vm8, 1, %v2534_v42  ;;  %v1883_v53 = vsel %vm1881_vm9, 1, %v2534_v42  ;;  %vm2035_vm14 = vcmp.le.s32.totalorder %v3327_v44, 223 }
 0x89b   :  { %v1976_v40 = vshrl.u32 %v1972_v39, 16  ;;  %v1975_v41 = vand.u32 65535, %v1972_v39  ;;  %v1928_v3 = vsel %vm1926_vm5, 1, %v2534_v42  ;;  %vm1905_vm6 = vmand %vm3314_vm4, %vm1903_vm15  ;;  %v1884_v7 = vadd.s32 %v1883_v53, %v1882_v1 }
 0x89c   :  { %v1907_v45 = vsel %vm1905_vm6, 1, %v2534_v42  ;;  %v1932_v48 = vshrl.u32 %v1928_v3, 16  ;;  %vm1948_vm10 = vmand %vm3314_vm4, %vm1946_vm7  ;;  %v1931_v47 = vand.u32 65535, %v1928_v3  ;;  %v2535_v21 = vmov 0.0  }
 0x89d   :  { %v1978_v46 = vcvt.s32.f32 %v1976_v40  ;;  %v1977_v25 = vcvt.s32.f32 %v1975_v41  ;;  %v1911_v50 = vshrl.u32 %v1907_v45, 16  ;;  %v1910_v56 = vand.u32 65535, %v1907_v45  ;;  %vm1993_vm12 = vmand %vm3339_vm11, %vm1991_vm2  ;;  %95 = vst [vmem:[#allocation10] sm:$0x1] %v2535_v21 }
 0x89e   :  { %v1934_v54 = vcvt.s32.f32 %v1932_v48  ;;  %v1950_v58 = vsel %vm1948_vm10, 1, %v2534_v42  ;;  %v1933_v52 = vcvt.s32.f32 %v1931_v47  ;;  %v1995_v55 = vsel %vm1993_vm12, 1, %v2534_v42  ;;  %vm2015_vm3 = vmand %vm3339_vm11, %vm2013_vm13 }
 0x89f   :  { %1981 = vadd.xlane.f32.xlu0 %v1978_v46  ;;  %1979 = vadd.xlane.f32.xlu1 %v1977_v25  ;;  %v1913_v4 = vcvt.s32.f32 %v1911_v50  ;;  %v1912_v60 = vcvt.s32.f32 %v1910_v56  ;;  %v1953_v61 = vand.u32 65535, %v1950_v58  ;;  %v1954_v62 = vshrl.u32 %v1950_v58, 16  ;;  %vm2037_vm15 = vmand %vm3339_vm11, %vm2035_vm14 }
 0x8a0   :  { %v1886_v6 = vshrl.u32 %v1884_v7, 16  ;;  %v1885_v10 = vand.u32 65535, %v1884_v7  ;;  %v1996_v9 = vadd.s32 %v1995_v55, %v1972_v39  ;;  %v2017_v14 = vsel %vm2015_vm3, 1, %v2534_v42 }
 0x8a1   :  { %v1955_v8 = vcvt.s32.f32 %v1953_v61  ;;  %v1956_v59 = vcvt.s32.f32 %v1954_v62  ;;  %v2018_v15 = vadd.s32 %v2017_v14, %v1972_v39  ;;  %v2039_v26 = vsel %vm2037_vm15, 1, %v2534_v42 }
 0x8a2   :  { %v1888_v5 = vcvt.s32.f32 %v1886_v6  ;;  %v1887_v19 = vcvt.s32.f32 %v1885_v10  ;;  %v1998_v22 = vshrl.u32 %v1996_v9, 16  ;;  %v1997_v23 = vand.u32 65535, %v1996_v9 }
 0x8a3   :  { %1937 = vadd.xlane.f32.xlu1 %v1934_v54  ;;  %1916 = vadd.xlane.f32.xlu0 %v1913_v4  ;;  %v2020_v11 = vshrl.u32 %v2018_v15, 16  ;;  %v2019_v27 = vand.u32 65535, %v2018_v15  ;;  %v2040_v32 = vadd.s32 %v2039_v26, %v1972_v39 }
 0x8a4   :  { %v2000_v12 = vcvt.s32.f32 %v1998_v22  ;;  %v1999_v13 = vcvt.s32.f32 %v1997_v23 }
 0x8a5   :  { %v2022_v33 = vcvt.s32.f32 %v2020_v11  ;;  %v2021_v16 = vcvt.s32.f32 %v2019_v27  ;;  %v2042_v34 = vshrl.u32 %v2040_v32, 16  ;;  %v2041_v17 = vand.u32 65535, %v2040_v32 }
 0x8a7   :  { %1935 = vadd.xlane.f32.xlu1 %v1933_v52  ;;  %1914 = vadd.xlane.f32.xlu0 %v1912_v60  ;;  %v2044_v35 = vcvt.s32.f32 %v2042_v34  ;;  %v2043_v36 = vcvt.s32.f32 %v2041_v17 }
 0x8ab   :  { %1957 = vadd.xlane.f32.xlu1 %v1955_v8  ;;  %1959 = vadd.xlane.f32.xlu0 %v1956_v59 }
 0x8af   :  { %1891 = vadd.xlane.f32.xlu0 %v1888_v5  ;;  %1889 = vadd.xlane.f32.xlu1 %v1887_v19 }
 0x8b3   :  { %2003 = vadd.xlane.f32.xlu0 %v2000_v12  ;;  %2001 = vadd.xlane.f32.xlu1 %v1999_v13 }
 0x8b7   :  { %2025 = vadd.xlane.f32.xlu0 %v2022_v33  ;;  %2023 = vadd.xlane.f32.xlu1 %v2021_v16 }
 0x8bb   :  { %2047 = vadd.xlane.f32.xlu0 %v2044_v35  ;;  %2045 = vadd.xlane.f32.xlu1 %v2043_v36 }
 0x92c   :  { %v1982_v18 = vpop.xlane.xlu0 %1981  ;;  %v1980_v0 = vpop.xlane.xlu1 %1979 }
 0x92d   :  { %v1984_v45 = vcvt.f32.s32 %v1982_v18  ;;  %v1983_v10 = vcvt.f32.s32 %v1980_v0 }
 0x92f   :  { %v1985_v58 = vshll.u32 %v1984_v45, 16 }
 0x930   :  { %v1938_v37 = vpop.xlane.xlu1 %1937  ;;  %v1917_v2 = vpop.xlane.xlu0 %1916 }
 0x931   :  { %v1940_v46 = vcvt.f32.s32 %v1938_v37  ;;  %v1919_v50 = vcvt.f32.s32 %v1917_v2  ;;  %v1986_v5 = vadd.s32 %v1985_v58, %v1983_v10 }
 0x933   :  { %v1941_v7 = vshll.u32 %v1940_v46, 16  ;;  %v1920_v61 = vshll.u32 %v1919_v50, 16 }
 0x934   :  { %v1936_v20 = vpop.xlane.xlu1 %1935  ;;  %v1915_v40 = vpop.xlane.xlu0 %1914 }
 0x935   :  { %v1939_v53 = vcvt.f32.s32 %v1936_v20  ;;  %v1918_v54 = vcvt.f32.s32 %v1915_v40 }
 0x937   :  { %v1942_v8 = vadd.s32 %v1941_v7, %v1939_v53  ;;  %v1921_v59 = vadd.s32 %v1920_v61, %v1918_v54 }
 0x938   :  { %v1958_v41 = vpop.xlane.xlu1 %1957  ;;  %v1960_v39 = vpop.xlane.xlu0 %1959 }
 0x939   :  { %v1962_v3 = vcvt.f32.s32 %v1960_v39  ;;  %v1961_v62 = vcvt.f32.s32 %v1958_v41 }
 0x93b   :  { %v1963_v4 = vshll.u32 %v1962_v3, 16 }
 0x93c   :  { %v1892_v25 = vpop.xlane.xlu0 %1891  ;;  %v1890_v48 = vpop.xlane.xlu1 %1889 }
 0x93d   :  { %v1894_v1 = vcvt.f32.s32 %v1892_v25  ;;  %v1893_v56 = vcvt.f32.s32 %v1890_v48  ;;  %v1964_v9 = vadd.s32 %v1963_v4, %v1961_v62 }
 0x93f   :  { %v1895_v47 = vshll.u32 %v1894_v1, 16 }
 0x940   :  { %v2004_v52 = vpop.xlane.xlu0 %2003  ;;  %v2002_v60 = vpop.xlane.xlu1 %2001 }
 0x941   :  { %v1896_v55 = vadd.s32 %v1895_v47, %v1893_v56  ;;  %v2006_v6 = vcvt.f32.s32 %v2004_v52  ;;  %v2005_v23 = vcvt.f32.s32 %v2002_v60 }
 0x943   :  { %v3365_v14 = vsub.s32 %v2816_v63, %v1896_v55  ;;  %v2007_v15 = vshll.u32 %v2006_v6, 16 }
 0x944   :  { %v2026_v19 = vpop.xlane.xlu0 %2025  ;;  %v2024_v22 = vpop.xlane.xlu1 %2023 }
 0x945   :  { %vm1922_vm5 = vcmp.lt.s32.totalorder %v1921_v59, %v3365_v14  ;;  %vm1943_vm6 = vcmp.lt.s32.totalorder %v1942_v8, %v3365_v14  ;;  %vm1965_vm7 = vcmp.lt.s32.totalorder %v1964_v9, %v3365_v14  ;;  %vm1987_vm10 = vcmp.lt.s32.totalorder %v1986_v5, %v3365_v14 }
 0x946   :  { %v1923_v26 = vsel %vm1922_vm5, 1, %v2534_v42  ;;  %v1944_v11 = vsel %vm1943_vm6, 1, %v2534_v42  ;;  %v2008_v63 = vadd.s32 %v2007_v15, %v2005_v23  ;;  %v2028_v13 = vcvt.f32.s32 %v2026_v19 }
 0x947   :  { %v1945_v12 = vadd.s32 %v1944_v11, %v1923_v26  ;;  %v1966_v27 = vsel %vm1965_vm7, 1, %v2534_v42  ;;  %v2027_v32 = vcvt.f32.s32 %v2024_v22  ;;  %v1988_v36 = vsel %vm1987_vm10, 1, %v2534_v42 }
 0x948   :  { %v2048_v33 = vpop.xlane.xlu0 %2047  ;;  %v2046_v16 = vpop.xlane.xlu1 %2045  ;;  %vm2009_vm2 = vcmp.lt.s32.totalorder %v2008_v63, %v3365_v14  ;;  %v2029_v17 = vshll.u32 %v2028_v13, 16 }
 0x949   :  { %v1967_v34 = vadd.s32 %v1966_v27, %v1945_v12  ;;  %v2050_v35 = vcvt.f32.s32 %v2048_v33  ;;  %v2049_v2 = vcvt.f32.s32 %v2046_v16  ;;  %v2010_v20 = vsel %vm2009_vm2, 1, %v2534_v42 }
 0x94a   :  { %v2030_v0 = vadd.s32 %v2029_v17, %v2027_v32 }
 0x94b   :  { %v1989_v18 = vadd.s32 %v1988_v36, %v1967_v34  ;;  %v2051_v37 = vshll.u32 %v2050_v35, 16 }
 0x94c   :  { %vm2031_vm12 = vcmp.lt.s32.totalorder %v2030_v0, %v3365_v14 }
 0x94d   :  { %v2011_v40 = vadd.s32 %v2010_v20, %v1989_v18  ;;  %v2052_v41 = vadd.s32 %v2051_v37, %v2049_v2  ;;  %v2032_v39 = vsel %vm2031_vm12, 1, %v2534_v42 }
 0x94f   :  { %v2033_v3 = vadd.s32 %v2032_v39, %v2011_v40  ;;  %vm2053_vm13 = vcmp.lt.s32.totalorder %v2052_v41, %v3365_v14 }
 0x950   :  { %v2054_v45 = vsel %vm2053_vm13, 1, %v2534_v42 }
 0x951   :  { %v2055_v46 = vadd.s32 %v2054_v45, %v2033_v3 }
 0x953   :  { %v3381_v25 = vmul.u32 32, %v2055_v46 }
 0x955   :  { %v2079_v48 = vor.u32 7, %v3381_v25  ;;  %v2057_v50 = vor.u32 3, %v3381_v25  ;;  %v2102_v1 = vor.u32 11, %v3381_v25  ;;  %v2125_v53 = vor.u32 15, %v3381_v25 }
 0x956   :  { %v2148_v47 = vor.u32 19, %v3381_v25  ;;  %v2171_v62 = vor.u32 23, %v3381_v25  ;;  %v2194_v13 = vor.u32 27, %v3381_v25 }
 0x957   :  { %vm2080_vm3 = vcmp.le.s32.totalorder %v3305_v38, %v2079_v48  ;;  %vm2081_vm14 = vcmp.le.s32.totalorder %v3327_v44, %v2079_v48  ;;  %vm2058_vm15 = vcmp.le.s32.totalorder %v3305_v38, %v2057_v50  ;;  %vm2059_vm6 = vcmp.le.s32.totalorder %v3327_v44, %v2057_v50 }
 0x958   :  { %vm2082_vm5 = vmand %vm3314_vm4, %vm2080_vm3  ;;  %vm3397_vm10 = vcmp.le.s32.totalorder %v3305_v38, %v2102_v1  ;;  %vm2104_vm12 = vcmp.le.s32.totalorder %v3327_v44, %v2102_v1  ;;  %vm3410_vm3 = vcmp.le.s32.totalorder %v3305_v38, %v2125_v53 }
 0x959   :  { %vm2083_vm7 = vmand %vm3339_vm11, %vm2081_vm14  ;;  %v2084_v54 = vsel %vm2082_vm5, 1, %v2534_v42 }
 0x95a   :  { %v2085_v56 = vsel %vm2083_vm7, 1, %v2534_v42  ;;  %vm2060_vm2 = vmand %vm3314_vm4, %vm2058_vm15  ;;  %vm3420_vm15 = vcmp.le.s32.totalorder %v3327_v44, %v2125_v53 }
 0x95b   :  { %v2086_v58 = vadd.s32 %v2085_v56, %v2084_v54  ;;  %vm2061_vm13 = vmand %vm3339_vm11, %vm2059_vm6  ;;  %v2062_v7 = vsel %vm2060_vm2, 1, %v2534_v42  ;;  %vm3429_vm6 = vcmp.le.s32.totalorder %v3305_v38, %v2148_v47 }
 0x95c   :  { %v2063_v60 = vsel %vm2061_vm13, 1, %v2534_v42  ;;  %vm2105_vm14 = vmand %vm3314_vm4, %vm3397_vm10  ;;  %vm3439_vm10 = vcmp.le.s32.totalorder %v3327_v44, %v2148_v47 }
 0x95d   :  { %v2088_v55 = vshrl.u32 %v2086_v58, 16  ;;  %v2064_v6 = vadd.s32 %v2063_v60, %v2062_v7  ;;  %vm2106_vm5 = vmand %vm3339_vm11, %vm2104_vm12  ;;  %v2107_v10 = vsel %vm2105_vm14, 1, %v2534_v42  ;;  %v2087_v19 = vand.u32 65535, %v2086_v58 }
 0x95e   :  { %v2108_v59 = vsel %vm2106_vm5, 1, %v2534_v42  ;;  %vm2128_vm7 = vmand %vm3314_vm4, %vm3410_vm3  ;;  %vm3458_vm3 = vcmp.le.s32.totalorder %v3305_v38, %v2171_v62  ;;  %vm3464_vm14 = vcmp.le.s32.totalorder %v3327_v44, %v2171_v62 }
 0x95f   :  { %v2090_v15 = vcvt.s32.f32 %v2088_v55  ;;  %v2066_v5 = vshrl.u32 %v2064_v6, 16  ;;  %vm2129_vm2 = vmand %vm3339_vm11, %vm3420_vm15  ;;  %v2109_v22 = vadd.s32 %v2108_v59, %v2107_v10  ;;  %v2130_v23 = vsel %vm2128_vm7, 1, %v2534_v42 }
 0x960   :  { %v2131_v26 = vsel %vm2129_vm2, 1, %v2534_v42  ;;  %vm2151_vm12 = vmand %vm3314_vm4, %vm3429_vm6  ;;  %v2065_v12 = vand.u32 65535, %v2064_v6  ;;  %v2089_v32 = vcvt.s32.f32 %v2087_v19  ;;  %vm3479_vm6 = vcmp.le.s32.totalorder %v3305_v38, %v2194_v13 }
 0x961   :  { %2093 = vadd.xlane.f32.xlu1 %v2090_v15  ;;  %v2068_v11 = vcvt.s32.f32 %v2066_v5  ;;  %vm2152_vm13 = vmand %vm3339_vm11, %vm3439_vm10  ;;  %v2110_v33 = vand.u32 65535, %v2109_v22  ;;  %v2132_v16 = vadd.s32 %v2131_v26, %v2130_v23  ;;  %v2153_v34 = vsel %vm2151_vm12, 1, %v2534_v42 }
 0x962   :  { %v2154_v17 = vsel %vm2152_vm13, 1, %v2534_v42  ;;  %vm2174_vm15 = vmand %vm3314_vm4, %vm3458_vm3  ;;  %v2067_v35 = vcvt.s32.f32 %v2065_v12  ;;  %v2111_v36 = vshrl.u32 %v2109_v22, 16  ;;  %vm3484_vm7 = vcmp.le.s32.totalorder %v3327_v44, %v2194_v13 }
 0x963   :  { %2071 = vadd.xlane.f32.xlu0 %v2068_v11  ;;  %vm2175_vm5 = vmand %vm3339_vm11, %vm3464_vm14  ;;  %v2112_v37 = vcvt.s32.f32 %v2110_v33  ;;  %v2133_v2 = vand.u32 65535, %v2132_v16  ;;  %v2155_v20 = vadd.s32 %v2154_v17, %v2153_v34  ;;  %v2176_v40 = vsel %vm2174_vm15, 1, %v2534_v42 }
 0x964   :  { %v2177_v41 = vsel %vm2175_vm5, 1, %v2534_v42  ;;  %vm2197_vm10 = vmand %vm3314_vm4, %vm3479_vm6  ;;  %v2113_v39 = vcvt.s32.f32 %v2111_v36  ;;  %v2134_v3 = vshrl.u32 %v2132_v16, 16 }
 0x965   :  { %2091 = vadd.xlane.f32.xlu1 %v2089_v32  ;;  %vm2198_vm2 = vmand %vm3339_vm11, %vm3484_vm7  ;;  %v2135_v45 = vcvt.s32.f32 %v2133_v2  ;;  %v2156_v46 = vand.u32 65535, %v2155_v20  ;;  %v2178_v48 = vadd.s32 %v2177_v41, %v2176_v40  ;;  %v2199_v50 = vsel %vm2197_vm10, 1, %v2534_v42 }
 0x966   :  { %v2200_v1 = vsel %vm2198_vm2, 1, %v2534_v42  ;;  %v2136_v53 = vcvt.s32.f32 %v2134_v3  ;;  %v2157_v54 = vshrl.u32 %v2155_v20, 16 }
 0x967   :  { %2069 = vadd.xlane.f32.xlu0 %v2067_v35  ;;  %v2158_v4 = vcvt.s32.f32 %v2156_v46  ;;  %v2179_v47 = vand.u32 65535, %v2178_v48  ;;  %v2201_v56 = vadd.s32 %v2200_v1, %v2199_v50  ;;  %v2180_v7 = vshrl.u32 %v2178_v48, 16 }
 0x968   :  { %v2159_v58 = vcvt.s32.f32 %v2157_v54 }
 0x969   :  { %2114 = vadd.xlane.f32.xlu1 %v2112_v37  ;;  %v2181_v52 = vcvt.s32.f32 %v2179_v47  ;;  %v2202_v60 = vand.u32 65535, %v2201_v56  ;;  %v2182_v61 = vcvt.s32.f32 %v2180_v7  ;;  %v2203_v62 = vshrl.u32 %v2201_v56, 16 }
 0x96b   :  { %2116 = vadd.xlane.f32.xlu0 %v2113_v39  ;;  %v2204_v55 = vcvt.s32.f32 %v2202_v60  ;;  %v2205_v6 = vcvt.s32.f32 %v2203_v62 }
 0x96d   :  { %2137 = vadd.xlane.f32.xlu1 %v2135_v45 }
 0x96f   :  { %2139 = vadd.xlane.f32.xlu0 %v2136_v53 }
 0x971   :  { %2160 = vadd.xlane.f32.xlu1 %v2158_v4 }
 0x973   :  { %2162 = vadd.xlane.f32.xlu0 %v2159_v58 }
 0x975   :  { %2183 = vadd.xlane.f32.xlu1 %v2181_v52 }
 0x977   :  { %2185 = vadd.xlane.f32.xlu0 %v2182_v61 }
 0x979   :  { %2206 = vadd.xlane.f32.xlu1 %v2204_v55 }
 0x97b   :  { %2208 = vadd.xlane.f32.xlu0 %v2205_v6 }
 0x9ee   :  { %v2094_v10 = vpop.xlane.xlu1 %2093 }
 0x9ef   :  { %v2096_v5 = vcvt.f32.s32 %v2094_v10 }
 0x9f0   :  { %v2072_v8 = vpop.xlane.xlu0 %2071 }
 0x9f1   :  { %v2074_v19 = vcvt.f32.s32 %v2072_v8  ;;  %v2097_v63 = vshll.u32 %v2096_v5, 16 }
 0x9f2   :  { %v2092_v59 = vpop.xlane.xlu1 %2091 }
 0x9f3   :  { %v2095_v23 = vcvt.f32.s32 %v2092_v59  ;;  %v2075_v13 = vshll.u32 %v2074_v19, 16 }
 0x9f4   :  { %v2070_v9 = vpop.xlane.xlu0 %2069 }
 0x9f5   :  { %v2073_v26 = vcvt.f32.s32 %v2070_v9  ;;  %v2098_v33 = vadd.s32 %v2097_v63, %v2095_v23 }
 0x9f6   :  { %v2115_v15 = vpop.xlane.xlu1 %2114 }
 0x9f7   :  { %v2076_v16 = vadd.s32 %v2075_v13, %v2073_v26  ;;  %v2118_v34 = vcvt.f32.s32 %v2115_v15  ;;  %vm2099_vm12 = vcmp.lt.s32.totalorder %v2098_v33, %v3365_v14 }
 0x9f8   :  { %v2117_v22 = vpop.xlane.xlu0 %2116  ;;  %v2100_v3 = vsel %vm2099_vm12, 1, %v2534_v42 }
 0x9f9   :  { %v2119_v11 = vcvt.f32.s32 %v2117_v22  ;;  %vm2077_vm13 = vcmp.lt.s32.totalorder %v2076_v16, %v3365_v14 }
 0x9fa   :  { %v2138_v12 = vpop.xlane.xlu1 %2137  ;;  %v2078_v45 = vsel %vm2077_vm13, 1, %v2534_v42 }
 0x9fb   :  { %v2120_v27 = vshll.u32 %v2119_v11, 16  ;;  %v2141_v18 = vcvt.f32.s32 %v2138_v12  ;;  %v2101_v53 = vadd.s32 %v2100_v3, %v2078_v45  ;;  %v104_v3 = vld [vmem:[#allocation7] sm:$0xff]  ;;  %v105_v45 = vld [vmem:[#allocation7 + $0x8] sm:$0xff] }
 0x9fc   :  { %v2140_v32 = vpop.xlane.xlu0 %2139 }
 0x9fd   :  { %v2142_v17 = vcvt.f32.s32 %v2140_v32  ;;  %v2121_v36 = vadd.s32 %v2120_v27, %v2118_v34 }
 0x9fe   :  { %v2161_v35 = vpop.xlane.xlu1 %2160 }
 0x9ff   :  { %v2143_v0 = vshll.u32 %v2142_v17, 16  ;;  %vm2122_vm3 = vcmp.lt.s32.totalorder %v2121_v36, %v3365_v14  ;;  %v2164_v41 = vcvt.f32.s32 %v2161_v35 }
 0xa00   :  { %v2163_v37 = vpop.xlane.xlu0 %2162  ;;  %v2123_v1 = vsel %vm2122_vm3, 1, %v2534_v42 }
 0xa01   :  { %v2144_v2 = vadd.s32 %v2143_v0, %v2141_v18  ;;  %v2165_v20 = vcvt.f32.s32 %v2163_v37  ;;  %v2124_v7 = vadd.s32 %v2123_v1, %v2101_v53  ;;  %v106_v1 = vld [vmem:[#allocation7 + $0x10] sm:$0xff] }
 0xa02   :  { %v2184_v40 = vpop.xlane.xlu1 %2183  ;;  %v114_v53 = vld [vmem:[#allocation5 + $0x10] sm:$0xff] }
 0xa03   :  { %v2166_v39 = vshll.u32 %v2165_v20, 16  ;;  %vm2145_vm14 = vcmp.lt.s32.totalorder %v2144_v2, %v3365_v14  ;;  %v2187_v54 = vcvt.f32.s32 %v2184_v40 }
 0xa04   :  { %v2186_v46 = vpop.xlane.xlu0 %2185  ;;  %v2146_v47 = vsel %vm2145_vm14, 1, %v2534_v42 }
 0xa05   :  { %v2167_v48 = vadd.s32 %v2166_v39, %v2164_v41  ;;  %v2188_v50 = vcvt.f32.s32 %v2186_v46  ;;  %v2147_v62 = vadd.s32 %v2146_v47, %v2124_v7  ;;  %v112_v46 = vld [vmem:[#allocation5] sm:$0xff]  ;;  %v107_v47 = vld [vmem:[#allocation7 + $0x18] sm:$0xff] }
 0xa06   :  { %v2207_v56 = vpop.xlane.xlu1 %2206 }
 0xa07   :  { %vm2168_vm15 = vcmp.lt.s32.totalorder %v2167_v48, %v3365_v14  ;;  %v2189_v4 = vshll.u32 %v2188_v50, 16  ;;  %v2210_v55 = vcvt.f32.s32 %v2207_v56  ;;  %v113_v48 = vld [vmem:[#allocation5 + $0x8] sm:$0xff]  ;;  %v120_v50 = vsub.f32 %v104_v3, %v112_v46  ;;  %v115_v56 = vld [vmem:[#allocation5 + $0x18] sm:$0xff] }
 0xa08   :  { %v2209_v58 = vpop.xlane.xlu0 %2208  ;;  %v2169_v61 = vsel %vm2168_vm15, 1, %v2534_v42  ;;  %v123_v7 = vsub.f32 %v107_v47, %v115_v56 }
 0xa09   :  { %v2190_v52 = vadd.s32 %v2189_v4, %v2187_v54  ;;  %v2211_v60 = vcvt.f32.s32 %v2209_v58  ;;  %v2170_v8 = vadd.s32 %v2169_v61, %v2147_v62  ;;  %v121_v54 = vsub.f32 %v105_v45, %v113_v48  ;;  %v108_v61 = vld [vmem:[#allocation7 + $0x20] sm:$0xff] }
 0xa0a   :  { %v122_v4 = vsub.f32 %v106_v1, %v114_v53  ;;  %v144_v58 = vmul.f32 0.5, %v120_v50  ;;  %v116_v62 = vld [vmem:[#allocation5 + $0x20] sm:$0xff] }
 0xa0b   :  { %vm2191_vm5 = vcmp.lt.s32.totalorder %v2190_v52, %v3365_v14  ;;  %v2212_v6 = vshll.u32 %v2211_v60, 16  ;;  %v128_v52 = vand.u32 2147483647, %v120_v50  ;;  %v129_v60 = vand.u32 2147483647, %v121_v54 }
 0xa0c   :  { %v2192_v10 = vsel %vm2191_vm5, 1, %v2534_v42 }
 0xa0d   :  { %v2213_v59 = vadd.s32 %v2212_v6, %v2210_v55  ;;  %v2193_v9 = vadd.s32 %v2192_v10, %v2170_v8  ;;  %v130_v55 = vand.u32 2147483647, %v122_v4  ;;  %v145_v6 = vmul.f32 0.5, %v121_v54 }
 0xa0e   :  { %v146_v10 = vmul.f32 0.5, %v122_v4  ;;  %v124_v8 = vsub.f32 %v108_v61, %v116_v62 }
 0xa0f   :  { %vm2214_vm6 = vcmp.lt.s32.totalorder %v2213_v59, %v3365_v14  ;;  %v109_v59 = vld [vmem:[#allocation7 + $0x28] sm:$0xff] }
 0xa10   :  { %v2215_v15 = vsel %vm2214_vm6, 1, %v2534_v42 }
 0xa11   :  { %v2216_v5 = vadd.s32 %v2215_v15, %v2193_v9  ;;  %v117_v9 = vld [vmem:[#allocation5 + $0x28] sm:$0xff]  ;;  %v131_v15 = vand.u32 2147483647, %v123_v7 }
 0xa13   :  { %v2217_v19 = vmul.u32 4, %v2216_v5  ;;  %v147_v5 = vmul.f32 0.5, %v123_v7 }
 0xa15   :  { %v3515_v22 = vor.u32 %v2217_v19, %v3381_v25  ;;  %v152_v19 = vmul.f32 %v144_v58, %v120_v50 }
 0xa17   :  { %vm2219_vm7 = vcmp.le.s32.totalorder %v3305_v38, %v3515_v22  ;;  %vm2220_vm10 = vcmp.le.s32.totalorder %v3327_v44, %v3515_v22  ;;  %v2240_v23 = vor.u32 1, %v3515_v22  ;;  %v2263_v26 = vor.u32 2, %v3515_v22 }
 0xa18   :  { %vm2221_vm2 = vmand %vm3314_vm4, %vm2219_vm7 }
 0xa19   :  { %vm2222_vm12 = vmand %vm3339_vm11, %vm2220_vm10  ;;  %v2223_v11 = vsel %vm2221_vm2, 1, %v2534_v42  ;;  %vm2241_vm13 = vcmp.le.s32.totalorder %v3305_v38, %v2240_v23  ;;  %vm2242_vm3 = vcmp.le.s32.totalorder %v3327_v44, %v2240_v23  ;;  %vm2264_vm14 = vcmp.le.s32.totalorder %v3305_v38, %v2263_v26 }
 0xa1a   :  { %v2224_v25 = vsel %vm2222_vm12, 1, %v2534_v42  ;;  %vm2243_vm15 = vmand %vm3314_vm4, %vm2241_vm13  ;;  %vm2265_vm5 = vcmp.le.s32.totalorder %v3327_v44, %v2263_v26  ;;  %v125_v23 = vsub.f32 %v109_v59, %v117_v9  ;;  %vm3545_vm2 = vcmp.lt.f32.partialorder %v128_v52, 1.0 }
 0xa1b   :  { %v2225_v12 = vadd.s32 %v2224_v25, %v2223_v11  ;;  %vm2244_vm6 = vmand %vm3339_vm11, %vm2242_vm3  ;;  %v2245_v63 = vsel %vm2243_vm15, 1, %v2534_v42  ;;  %vm3549_vm12 = vcmp.lt.f32.partialorder %v129_v60, 1.0  ;;  %v2351_v25 = vadd.f32 -0.5, %v128_v52 }
 0xa1c   :  { %v2246_v13 = vsel %vm2244_vm6, 1, %v2534_v42  ;;  %vm2266_vm7 = vmand %vm3314_vm4, %vm2264_vm14  ;;  %vm3553_vm13 = vcmp.lt.f32.partialorder %v130_v55, 1.0  ;;  %vm3557_vm3 = vcmp.lt.f32.partialorder %v131_v15, 1.0 }
 0xa1d   :  { %v2227_v27 = vshrl.u32 %v2225_v12, 16  ;;  %v2247_v32 = vadd.s32 %v2246_v13, %v2245_v63  ;;  %vm2267_vm10 = vmand %vm3339_vm11, %vm2265_vm5  ;;  %v2268_v33 = vsel %vm2266_vm7, 1, %v2534_v42  ;;  %v2226_v35 = vand.u32 65535, %v2225_v12  ;;  %v110_v12 = vld [vmem:[#allocation7 + $0x30] sm:$0xff]  ;;  %v111_v63 = vld [vmem:[#allocation7 + $0x38] sm:$0xff] }
 0xa1e   :  { %v2269_v16 = vsel %vm2267_vm10, 1, %v2534_v42  ;;  %v118_v13 = vld [vmem:[#allocation5 + $0x30] sm:$0xff] }
 0xa1f   :  { %v2229_v34 = vcvt.s32.f32 %v2227_v27  ;;  %v2249_v17 = vshrl.u32 %v2247_v32, 16  ;;  %v2270_v36 = vadd.s32 %v2269_v16, %v2268_v33  ;;  %v2248_v0 = vand.u32 65535, %v2247_v32 }
 0xa20   :  { %v2228_v37 = vcvt.s32.f32 %v2226_v35  ;;  %v153_v27 = vmul.f32 %v145_v6, %v121_v54  ;;  %v154_v32 = vmul.f32 %v146_v10, %v122_v4  ;;  %v2352_v33 = vadd.f32 -0.5, %v129_v60 }
 0xa21   :  { %2232 = vadd.xlane.f32.xlu0 %v2229_v34  ;;  %v2251_v18 = vcvt.s32.f32 %v2249_v17  ;;  %v2272_v2 = vshrl.u32 %v2270_v36, 16  ;;  %v2250_v20 = vcvt.s32.f32 %v2248_v0  ;;  %v2271_v40 = vand.u32 65535, %v2270_v36  ;;  %v119_v34 = vld [vmem:[#allocation5 + $0x38] sm:$0xff] }
 0xa22   :  { %v2353_v16 = vadd.f32 -0.5, %v130_v55  ;;  %v126_v17 = vsub.f32 %v110_v12, %v118_v13  ;;  %v132_v35 = vand.u32 2147483647, %v124_v8  ;;  %v149_v0 = vmul.f32 0.5, %v125_v23 }
 0xa23   :  { %2254 = vadd.xlane.f32.xlu1 %v2251_v18  ;;  %v2274_v41 = vcvt.s32.f32 %v2272_v2  ;;  %v2273_v39 = vcvt.s32.f32 %v2271_v40  ;;  %v148_v18 = vmul.f32 0.5, %v124_v8  ;;  %v2354_v2 = vadd.f32 -0.5, %v131_v15 }
 0xa24   :  { %v133_v40 = vand.u32 2147483647, %v125_v23  ;;  %v169_v3 = vsel %vm3549_vm12, %v153_v27, %v2352_v33  ;;  %v170_v45 = vsel %vm3553_vm13, %v154_v32, %v2353_v16  ;;  %v134_v46 = vand.u32 2147483647, %v126_v17 }
 0xa25   :  { %2230 = vadd.xlane.f32.xlu0 %v2228_v37  ;;  %v155_v37 = vmul.f32 %v147_v5, %v123_v7  ;;  %v150_v48 = vmul.f32 0.5, %v126_v17  ;;  %v156_v50 = vmul.f32 %v148_v18, %v124_v8  ;;  %v2355_v1 = vadd.f32 -0.5, %v132_v35 }
 0xa26   :  { %vm3567_vm14 = vcmp.lt.f32.partialorder %v132_v35, 1.0  ;;  %v157_v54 = vmul.f32 %v149_v0, %v125_v23  ;;  %v2356_v7 = vadd.f32 -0.5, %v133_v40  ;;  %v181_v52 = vsel %vm99_vm1, %v169_v3, 0.0 }
 0xa27   :  { %2252 = vadd.xlane.f32.xlu1 %v2250_v20  ;;  %v127_v20 = vsub.f32 %v111_v63, %v119_v34  ;;  %v171_v4 = vsel %vm3557_vm3, %v155_v37, %v2354_v2  ;;  %vm3577_vm15 = vcmp.lt.f32.partialorder %v133_v40, 1.0  ;;  %v182_v61 = vsel %vm98_vm0, %v170_v45, 0.0 }
 0xa28   :  { %v158_v62 = vmul.f32 %v150_v48, %v126_v17  ;;  %v2357_v55 = vadd.f32 -0.5, %v134_v46  ;;  %v172_v6 = vsel %vm3567_vm14, %v156_v50, %v2355_v1  ;;  %vm142_vm5 = vcmp.lt.f32.partialorder %v134_v46, 1.0 }
 0xa29   :  { %2277 = vadd.xlane.f32.xlu0 %v2274_v41  ;;  %v135_v56 = vand.u32 2147483647, %v127_v20  ;;  %v151_v58 = vmul.f32 0.5, %v127_v20  ;;  %v183_v8 = vsel %vm99_vm1, %v171_v4, 0.0  ;;  %v173_v15 = vsel %vm3577_vm15, %v157_v54, %v2356_v7 }
 0xa2a   :  { %v174_v23 = vsel %vm142_vm5, %v158_v62, %v2357_v55  ;;  %v185_v11 = vsel %vm99_vm1, %v173_v15, 0.0  ;;  %vm2291_vm15 = vcmp.gt.s32.totalorder %v3365_v14, 0 }
 0xa2b   :  { %2275 = vadd.xlane.f32.xlu1 %v2273_v39  ;;  %v168_v39 = vsel %vm3545_vm2, %v152_v19, %v2351_v25  ;;  %v159_v59 = vmul.f32 %v151_v58, %v127_v20  ;;  %v2358_v9 = vadd.f32 -0.5, %v135_v56  ;;  %vm143_vm6 = vcmp.lt.f32.partialorder %v135_v56, 1.0 }
 0xa2c   :  { %v180_v47 = vsel %vm98_vm0, %v168_v39, 0.0  ;;  %v184_v19 = vsel %vm98_vm0, %v172_v6, 0.0  ;;  %v186_v63 = vsel %vm98_vm0, %v174_v23, 0.0 }
 0xa2d   :  { %v188_v10 = vadd.f32 %v181_v52, %v180_v47  ;;  %v175_v25 = vsel %vm143_vm6, %v159_v59, %v2358_v9 }
 0xa2e   :  { %v187_v27 = vsel %vm99_vm1, %v175_v25, 0.0 }
 0xa2f   :  { %v189_v5 = vadd.f32 %v188_v10, %v182_v61 }
 0xa31   :  { %v190_v26 = vadd.f32 %v189_v5, %v183_v8 }
 0xa33   :  { %v191_v12 = vadd.f32 %v190_v26, %v184_v19 }
 0xa35   :  { %v192_v13 = vadd.f32 %v191_v12, %v185_v11  ;;  %v2331_v11 = vld [vmem:[#allocation10] sm:$0x1] }
 0xa37   :  { %v193_v32 = vadd.f32 %v192_v13, %v186_v63 }
 0xa39   :  { %v194_v33 = vadd.f32 %v193_v32, %v187_v27 }
 0xa3b   :  { %195 = vadd.xlane.f32.xlu0 %v194_v33 }
 0xaae   :  { %v2233_v16 = vpop.xlane.xlu0 %2232 }
 0xaaf   :  { %v2235_v34 = vcvt.f32.s32 %v2233_v16 }
 0xab0   :  { %v2255_v17 = vpop.xlane.xlu1 %2254 }
 0xab1   :  { %v2257_v35 = vcvt.f32.s32 %v2255_v17  ;;  %v2236_v18 = vshll.u32 %v2235_v34, 16 }
 0xab2   :  { %v2231_v36 = vpop.xlane.xlu0 %2230 }
 0xab3   :  { %v2234_v0 = vcvt.f32.s32 %v2231_v36  ;;  %v2258_v2 = vshll.u32 %v2257_v35, 16 }
 0xab4   :  { %v2253_v37 = vpop.xlane.xlu1 %2252 }
 0xab5   :  { %v2237_v20 = vadd.s32 %v2236_v18, %v2234_v0  ;;  %v2256_v40 = vcvt.f32.s32 %v2253_v37 }
 0xab6   :  { %v2278_v41 = vpop.xlane.xlu0 %2277 }
 0xab7   :  { %v2259_v39 = vadd.s32 %v2258_v2, %v2256_v40  ;;  %v2280_v3 = vcvt.f32.s32 %v2278_v41  ;;  %vm2238_vm7 = vcmp.lt.s32.totalorder %v2237_v20, %v3365_v14 }
 0xab8   :  { %v2276_v45 = vpop.xlane.xlu1 %2275  ;;  %v2239_v53 = vsel %vm2238_vm7, 1, %v2534_v42 }
 0xab9   :  { %vm2260_vm10 = vcmp.lt.s32.totalorder %v2259_v39, %v3365_v14  ;;  %v2281_v46 = vshll.u32 %v2280_v3, 16  ;;  %v2279_v48 = vcvt.f32.s32 %v2276_v45 }
 0xaba   :  { %v2261_v50 = vsel %vm2260_vm10, 1, %v2534_v42 }
 0xabb   :  { %v2282_v1 = vadd.s32 %v2281_v46, %v2279_v48  ;;  %v2262_v54 = vadd.s32 %v2261_v50, %v2239_v53 }
 0xabd   :  { %vm2283_vm2 = vcmp.lt.s32.totalorder %v2282_v1, %v3365_v14 }
 0xabe   :  { %v2284_v4 = vsel %vm2283_vm2, 1, %v2534_v42 }
 0xabf   :  { %v2285_v47 = vadd.s32 %v2284_v4, %v2262_v54 }
 0xac1   :  { %v2286_v56 = vor.u32 %v2285_v47, %v3515_v22 }
 0xac3   :  { %vm2287_vm12 = vcmp.le.s32.totalorder %v3305_v38, %v2286_v56  ;;  %vm2288_vm13 = vcmp.le.s32.totalorder %v3327_v44, %v2286_v56 }
 0xac4   :  { %vm2289_vm3 = vmand %vm3314_vm4, %vm2287_vm12 }
 0xac5   :  { %vm2290_vm14 = vmand %vm3339_vm11, %vm2288_vm13 }
 0xac6   :  { %vm2294_vm5 = vmand %vm2289_vm3, %vm2291_vm15 }
 0xac7   :  { %vm2295_vm6 = vmand %vm2290_vm14, %vm2291_vm15 }
 0xac8   :  { %vm2296_vm7 = vmor %vm1880_vm8, %vm2294_vm5  ;;  %v196_v51 = vpop.xlane.xlu0 %195  ;;  %vm2327_vm8 = vcmp.eq.s32.totalorder %v3305_v38, 2 }
 0xac9   :  { %vm2297_vm10 = vmor %vm1881_vm9, %vm2295_vm6  ;;  %v197_v14 = vrot.slane %v196_v51, 4 }
 0xaca   :  { %vm2298_vm2 = vmor %vm98_vm0, %vm2296_vm7  ;;  %vm2320_vm0 = vcmp.eq.s32.totalorder %v3305_v38, 0 }
 0xacb   :  { %vm2299_vm4 = vmor %vm99_vm1, %vm2297_vm10  ;;  %v2300_v42 = vsel %vm2298_vm2, %v2771_v49, 0.0  ;;  %v198_v30 = vadd.f32 %v197_v14, %v196_v51  ;;  %v2314_v49 = vrot.slane %v2313_v31, 2  ;;  %vm2323_vm1 = vcmp.eq.s32.totalorder %v3305_v38, 1 }
 0xacc   :  { %v2301_v29 = vsel %vm2299_vm4, %v2777_v24, 0.0 }
 0xacd   :  { %v2302_v44 = vadd.f32 %v2301_v29, %v2300_v42  ;;  %v199_v22 = vrot.slane %v198_v30, 2  ;;  %v2315_v61 = vadd.s32 %v2314_v49, %v2313_v31 }
 0xacf   :  { %2303 = vadd.xlane.f32.xlu1 %v2302_v44  ;;  %v200_v58 = vadd.f32 %v199_v22, %v198_v30  ;;  %v2316_v6 = vrot.slane %v2315_v61, 1 }
 0xad1   :  { %v201_v7 = vrot.slane %v200_v58, 1  ;;  %v2317_v59 = vadd.s32 %v2316_v6, %v2315_v61 }
 0xad3   :  { %v202_v57 = vadd.f32 %v201_v7, %v200_v58 }
 0xad5   :  { %2359 = vpush %v202_v57 }
 0xb06   :  { %s2360_s3 = spop %2359 }
 0xb07   :  { %v2321_v9 = vstv %s2360_s3 }
 0xb08   :  { %v2322_v15 = vsel %vm2320_vm0, %v2321_v9, 0.0 }
 0xb5c   :  { %v2304_v52 = vpop.xlane.xlu1 %2303 }
 0xb5d   :  { %v2305_v60 = vrot.slane %v2304_v52, 4 }
 0xb5f   :  { %v2306_v24 = vadd.f32 %v2305_v60, %v2304_v52 }
 0xb61   :  { %v2307_v62 = vrot.slane %v2306_v24, 2 }
 0xb63   :  { %v2308_v55 = vadd.f32 %v2307_v62, %v2306_v24 }
 0xb65   :  { %v2309_v10 = vrot.slane %v2308_v55, 1 }
 0xb67   :  { %v2310_v8 = vadd.f32 %v2309_v10, %v2308_v55 }
 0xb69   :  { %2361 = vpush %v2310_v8 }
 0xb6a   :  { %2363 = vpush %v2317_v59 }
 0xb9a   :  { %s2362_s25 = spop %2361 }
 0xb9b   :  { %v2324_v43 = vstv %s2362_s25  ;;  %s2364_s26 = spop %2363 }
 0xb9c   :  { %v2325_v5 = vsel %vm2323_vm1, %v2324_v43, 0.0  ;;  %s2319_s12 = scvt.s32.f32 %s2364_s26 }
 0xb9d   :  { %v2326_v19 = vadd.f32 %v2325_v5, %v2322_v15 }
 0xb9e   :  { %v2328_v23 = vstv %s2319_s12 }
 0xb9f   :  { %v2329_v26 = vsel %vm2327_vm8, %v2328_v23, 0.0 }
 0xba0   :  { %v2330_v25 = vadd.f32 %v2329_v26, %v2326_v19 }
 0xba2   :  { %v2332_v12 = vadd.f32 %v2331_v11, %v2330_v25 }
 0xba4   :  { %2333 = vst [vmem:[#allocation10] sm:$0x1] %v2332_v12 }
 0xba5   :  { %2509 = shalt.err (!%p2506_p8)
}
 0xba6   :  { %s2510_s18 = scalar_lea.hbm %s3644_s4, 16 }
 0xba7   :  { %p2511_p9 = scmp.ne.s32.totalorder %s3644_s4, %s2510_s18  ;;  %p2514_p10 = scmp.lt.u32.totalorder %s2510_s18, %s3644_s4 }
 0xba9   :  { %p2516_p11 = pnand %p2514_p10, %p2511_p9 }
 0xbab   :  { %2519 = shalt.err (!%p2516_p11)
}
 0xbac   :  { %2343 = dma.vmem_to_hbm [thread:$0]  %s2341_s1, 16, %s3644_s4, [#allocation4]  }
 0xbad   :  { %2526 = dma.done.wait [#allocation4], 16  }
 0xbae   :  { %2527 = vsyncadd [#allocation4], 4294967280 }
 0xbaf   :  { %2347 = vsyncpa [#allocation3], 1 }
 0xbb0   :  { %2348 = vsyncpa [#allocation6], 1 }
 0xbb1   :  { %2349 = vsyncpa [#allocation9], 1 }
 0xbb2   :  { %2350 = vsyncpa [#allocation4], 1 }

</bundles_post_ra>
